<compile_context>
chip_gen: v6e
topology: v6e:2x2x1
jax: 0.10.0
libtpu: 0.0.40
codegen_flags: <defaults>
</compile_context>

<pallas_src>
import functools

import jax
import jax.numpy as jnp
from jax import lax
from jax.experimental import pallas as pl
from jax.experimental.pallas import tpu as pltpu


# ----------------------------------------------------------------------------
# Pallas kernel: y = (x @ w + b) [optional ReLU], full-K per grid step
# ----------------------------------------------------------------------------
def _linear_kernel(x_ref, w_ref, b_ref, o_ref, *, apply_relu):
    y = jnp.dot(x_ref[...], w_ref[...], preferred_element_type=jnp.float32)
    y = y + b_ref[...]                     # bias broadcast over rows (f32)
    if apply_relu:
        y = jnp.maximum(y, 0.0)
    o_ref[...] = y.astype(o_ref.dtype)


def pallas_linear(xp, wp, bp, *, apply_relu, out_dtype=jnp.bfloat16):
    """Fused linear(+ReLU) on pre-padded operands.

    xp: [Mp, Kp] bf16 (Mp % 8 == 0, Kp % 128 == 0)
    wp: [Kp, Np] bf16 (pre-padded once at init)
    bp: [1, Np]  f32  (pre-padded once at init)
    Returns [Mp, Np] in `out_dtype`.
    """
    Mp, Kp = xp.shape
    Kp2, Np = wp.shape
    assert Kp == Kp2 and bp.shape == (1, Np)

    tm = Mp if Mp <= 256 else 256          # cap tm (perf review)
    assert Mp % tm == 0
    tn = min(Np, 512)                      # big, lane-dense N tiles
    assert Np % tn == 0
    grid = (Mp // tm, Np // tn)

    bytes_accessed = (Mp * Kp * xp.dtype.itemsize
                      + Kp * Np * wp.dtype.itemsize
                      + Np * 4
                      + Mp * Np * jnp.dtype(out_dtype).itemsize)
    cost = pl.CostEstimate(flops=2 * Mp * Kp * Np,
                           transcendentals=0,
                           bytes_accessed=bytes_accessed)

    return pl.pallas_call(
        functools.partial(_linear_kernel, apply_relu=apply_relu),
        out_shape=jax.ShapeDtypeStruct((Mp, Np), out_dtype),
        grid_spec=pltpu.PrefetchScalarGridSpec(
            num_scalar_prefetch=0,
            grid=grid,
            in_specs=[
                pl.BlockSpec((tm, Kp), lambda i, j: (i, 0)),   # x: full K
                pl.BlockSpec((Kp, tn), lambda i, j: (0, j)),   # w: full K, N tile
                pl.BlockSpec((1, tn), lambda i, j: (0, j)),    # bias tile
            ],
            out_specs=pl.BlockSpec((tm, tn), lambda i, j: (i, j)),
        ),
        compiler_params=pltpu.CompilerParams(
            dimension_semantics=("parallel", "parallel"),
        ),
        cost_estimate=cost,
    )(xp, wp, bp)


# ----------------------------------------------------------------------------
# Small helpers (padding / im2col glue)
# ----------------------------------------------------------------------------
def _round_up(n, m):
    return (n + m - 1) // m * m


def _padded_rows(m):
    # Rows padded so the row tile (<=256) always divides evenly.
    return _round_up(m, 8) if m <= 256 else _round_up(m, 256)


def _pad2d(x, rows, cols, dtype):
    M, N = x.shape
    return jnp.zeros((rows, cols), dtype).at[:M, :N].set(x.astype(dtype))


def _prep_linear(w, b):
    """w: [K, N] f32, b: [N] f32 -> pre-padded bf16 weight [Kp, Np], f32 bias [1, Np]."""
    K, N = w.shape
    Kp, Np = _round_up(K, 128), _round_up(N, 128)
    wp = jnp.zeros((Kp, Np), jnp.bfloat16).at[:K, :N].set(w.astype(jnp.bfloat16))
    bp = jnp.zeros((1, Np), jnp.float32).at[0, :N].set(b.astype(jnp.float32))
    return wp, bp


def _im2col_1d(x, ksize):
    """x: [B, C, L] -> [B, T, C*K] patches (feature order (c, k)), T = L-K+1."""
    B, C, L = x.shape
    T = L - ksize + 1
    idx = jnp.arange(T)[:, None] + jnp.arange(ksize)[None, :]   # [T, K]
    patches = x[:, :, idx]                                      # [B, C, T, K]
    patches = jnp.transpose(patches, (0, 2, 1, 3))              # [B, T, C, K]
    return patches.reshape(B, T, C * ksize)


# ----------------------------------------------------------------------------
# Parameter init (mimics nn.Linear / nn.Conv1d defaults: U(+-1/sqrt(fan_in)))
# ----------------------------------------------------------------------------
def _uniform(key, shape, bound):
    return jax.random.uniform(key, shape, jnp.float32, -bound, bound)


def init_ae_params(key, input_dim, flow_length):
    ks = 10
    length = 10 * (flow_length - 2 * (ks - 1))
    raw = {}
    keys = iter(jax.random.split(key, 24))

    enc_dims = [input_dim, 1000, 2000, 2000, flow_length]
    for i in range(4):
        fi, fo = enc_dims[i], enc_dims[i + 1]
        bd = 1.0 / float(fi) ** 0.5
        raw[f"enc_w{i}"] = _uniform(next(keys), (fi, fo), bd)   # [in, out]
        raw[f"enc_b{i}"] = _uniform(next(keys), (fo,), bd)

    bd = 1.0 / float(1 * ks) ** 0.5
    raw["dec_cw0"] = _uniform(next(keys), (50, 1, ks), bd)      # [O, I, K]
    raw["dec_cb0"] = _uniform(next(keys), (50,), bd)
    bd = 1.0 / float(50 * ks) ** 0.5
    raw["dec_cw1"] = _uniform(next(keys), (10, 50, ks), bd)
    raw["dec_cb1"] = _uniform(next(keys), (10,), bd)
    bd = 1.0 / float(length) ** 0.5
    raw["dec_fw0"] = _uniform(next(keys), (length, 256), bd)
    raw["dec_fb0"] = _uniform(next(keys), (256,), bd)
    bd = 1.0 / 256.0 ** 0.5
    raw["dec_fw1"] = _uniform(next(keys), (256, input_dim), bd)
    raw["dec_fb1"] = _uniform(next(keys), (input_dim,), bd)
    return raw


def prepare_pallas_params(raw):
    """Pre-pad / pre-cast all weights ONCE (perf review item #1 / #3)."""
    p = {}
    for i in range(4):
        p[f"enc_w{i}"], p[f"enc_b{i}"] = _prep_linear(raw[f"enc_w{i}"], raw[f"enc_b{i}"])
    for j in range(2):
        w = raw[f"dec_cw{j}"]
        O, I, K = w.shape
        w_mat = w.reshape(O, I * K).T                 # [(c,k), O] matmul form
        p[f"dec_cw{j}"], p[f"dec_cb{j}"] = _prep_linear(w_mat, raw[f"dec_cb{j}"])
    for j in range(2):
        p[f"dec_fw{j}"], p[f"dec_fb{j}"] = _prep_linear(raw[f"dec_fw{j}"], raw[f"dec_fb{j}"])
    return p


# ----------------------------------------------------------------------------
# AE forward pass (Pallas)
# ----------------------------------------------------------------------------
def ae_forward(params, x, ipd, noise, *, input_dim, flow_length):
    ks = 10
    bf16 = jnp.bfloat16
    B = x.shape[0]
    Mp = _padded_rows(B)

    # -------- Encoder: 4x (Linear+ReLU), chained in the padded bf16 domain ----
    h = _pad2d(x, Mp, _round_up(input_dim, 128), bf16)
    for i in range(4):
        h = pallas_linear(h, params[f"enc_w{i}"], params[f"enc_b{i}"],
                          apply_relu=True, out_dtype=bf16)
    delay = h[:B, :flow_length].astype(jnp.float32)

    # -------- code = delay + ipd + Laplace(5,3) noise -------------------------
    # TODO(synk): Laplace noise is generated with jax.random in the wrapper
    # (mirrors np.random.laplace(5,3,...)) rather than with the in-kernel PRNG.
    code = delay + ipd + noise

    # -------- Decoder ----------------------------------------------------------
    c = code[:, None, :].astype(bf16)                       # [B, 1, L]

    # Conv1d(1, 50, 10) + ReLU  via im2col matmul
    T1 = flow_length - (ks - 1)
    p1 = _im2col_1d(c, ks).reshape(B * T1, 1 * ks)
    M1 = _padded_rows(B * T1)
    y1 = pallas_linear(_pad2d(p1, M1, _round_up(1 * ks, 128), bf16),
                       params["dec_cw0"], params["dec_cb0"],
                       apply_relu=True, out_dtype=bf16)
    y1 = y1[:B * T1, :50].reshape(B, T1, 50).transpose(0, 2, 1)   # [B, 50, T1]

    # Conv1d(50, 10, 10) + ReLU
    T2 = T1 - (ks - 1)
    p2 = _im2col_1d(y1, ks).reshape(B * T2, 50 * ks)
    M2 = _padded_rows(B * T2)
    y2 = pallas_linear(_pad2d(p2, M2, _round_up(50 * ks, 128), bf16),
                       params["dec_cw1"], params["dec_cb1"],
                       apply_relu=True, out_dtype=bf16)
    y2 = y2[:B * T2, :10].reshape(B, T2, 10).transpose(0, 2, 1)   # [B, 10, T2]

    # Flatten (channel-major, matches nn.Flatten) -> Linear(length,256)+ReLU
    length = 10 * T2
    flat = y2.reshape(B, length)
    hf = pallas_linear(_pad2d(flat, Mp, _round_up(length, 128), bf16),
                       params["dec_fw0"], params["dec_fb0"],
                       apply_relu=True, out_dtype=bf16)
    # Linear(256, input_dim), no activation (last decoder layer)
    out = pallas_linear(hf, params["dec_fw1"], params["dec_fb1"],
                        apply_relu=False, out_dtype=jnp.float32)
    output = out[:B, :input_dim]

    return delay, code, output


# ----------------------------------------------------------------------------
# Pure-JAX reference (same bf16 weight/activation quantization points)
# ----------------------------------------------------------------------------
def ae_reference(raw, x, ipd, noise, *, input_dim, flow_length):
    bf16 = jnp.bfloat16

    def lin(h, w, b, relu):
        y = jnp.dot(h.astype(bf16), w.astype(bf16),
                    preferred_element_type=jnp.float32) + b
        if relu:
            y = jnp.maximum(y, 0.0)
        return y.astype(bf16)

    h = x
    for i in range(4):
        h = lin(h, raw[f"enc_w{i}"], raw[f"enc_b{i}"], True)
    delay = h.astype(jnp.float32)
    code = delay + ipd + noise

    def conv1d_relu(xc, w, b):
        y = lax.conv_general_dilated(
            xc, w.astype(bf16), window_strides=(1,), padding="VALID",
            dimension_numbers=("NCH", "OIH", "NCH"),
            preferred_element_type=jnp.float32)
        y = jnp.maximum(y + b[None, :, None], 0.0)
        return y.astype(bf16)

    c = code[:, None, :].astype(bf16)
    y1 = conv1d_relu(c, raw["dec_cw0"], raw["dec_cb0"])
    y2 = conv1d_relu(y1, raw["dec_cw1"], raw["dec_cb1"])
    flat = y2.reshape(y2.shape[0], -1)
    hf = lin(flat, raw["dec_fw0"], raw["dec_fb0"], True)
    out = jnp.dot(hf.astype(bf16), raw["dec_fw1"].astype(bf16),
                  preferred_element_type=jnp.float32) + raw["dec_fb1"]
    return delay, code, out


# ----------------------------------------------------------------------------
if __name__ == "__main__":
    key = jax.random.PRNGKey(0)
    batch, input_dim, flow_length = 2, 32, 64

    k_params, k_x, k_ipd, k_noise = jax.random.split(key, 4)
    raw_params = init_ae_params(k_params, input_dim, flow_length)
    params = prepare_pallas_params(raw_params)     # padded bf16 weights, once

    x = jax.random.normal(k_x, (batch, input_dim), jnp.float32)
    ipd = jax.random.normal(k_ipd, (batch, flow_length), jnp.float32)
    # Laplace(loc=5, scale=3), mirroring np.random.laplace(5, 3, shape).
    noise = 5.0 + 3.0 * jax.random.laplace(k_noise, (batch, flow_length),
                                           jnp.float32)

    fwd = jax.jit(ae_forward, static_argnames=("input_dim", "flow_length"))
    delay, code, output = fwd(params, x, ipd, noise,
                              input_dim=input_dim, flow_length=flow_length)
    delay, code, output = jax.block_until_ready((delay, code, output))

    assert delay.shape == (batch, flow_length), delay.shape
    assert code.shape == (batch, flow_length), code.shape
    assert output.shape == (batch, input_dim), output.shape

    d_ref, c_ref, o_ref = ae_reference(raw_params, x, ipd, noise,
                                       input_dim=input_dim,
                                       flow_length=flow_length)
    assert jnp.allclose(delay, d_ref, rtol=5e-2, atol=5e-2), "delay mismatch"
    assert jnp.allclose(code, c_ref, rtol=5e-2, atol=5e-2), "code mismatch"
    assert jnp.allclose(output, o_ref, rtol=5e-2, atol=5e-2), "output mismatch"

    print("KERNEL_OK")
</pallas_src>

<mosaic_0001>
module attributes {stable_mosaic.version = 11 : i64} {
  func.func @_linear_kernel(%arg0: i32, %arg1: i32, %arg2: memref<8x1024xbf16, #tpu.memory_space<vmem>>, %arg3: memref<1024x512xbf16, #tpu.memory_space<vmem>>, %arg4: memref<1x512xf32, #tpu.memory_space<vmem>>, %arg5: memref<8x512xbf16, #tpu.memory_space<vmem>>) attributes {dimension_semantics = [#tpu.dimension_semantics<parallel>, #tpu.dimension_semantics<parallel>], iteration_bounds = array<i64: 1, 4>, scalar_prefetch = 0 : i64, scratch_operands = 0 : i64, tpu.core_type = #tpu.core_type<tc>, window_params = [{transform_indices = @transform_0, window_bounds = array<i64: 8, 1024>}, {transform_indices = @transform_1, window_bounds = array<i64: 1024, 512>}, {transform_indices = @transform_2, window_bounds = array<i64: 1, 512>}, {transform_indices = @transform_3, window_bounds = array<i64: 8, 512>}]} {
    %c0 = arith.constant 0 : index
    %c0_0 = arith.constant 0 : index
    %0 = vector.load %arg2[%c0, %c0_0] : memref<8x1024xbf16, #tpu.memory_space<vmem>>, vector<8x1024xbf16>
    %c0_1 = arith.constant 0 : index
    %c0_2 = arith.constant 0 : index
    %1 = vector.load %arg3[%c0_1, %c0_2] : memref<1024x512xbf16, #tpu.memory_space<vmem>>, vector<1024x512xbf16>
    %cst = arith.constant dense<0.000000e+00> : vector<8x512xf32>
    %2 = tpu.matmul %0, %1, %cst {dimension_numbers = #tpu.dot_dimension_numbers<[1], [0], [0], [1], [0, 0, 1, 1], [], []>} : vector<8x1024xbf16>, vector<1024x512xbf16>, vector<8x512xf32> -> vector<8x512xf32>
    %c0_3 = arith.constant 0 : index
    %c0_4 = arith.constant 0 : index
    %3 = vector.load %arg4[%c0_3, %c0_4] : memref<1x512xf32, #tpu.memory_space<vmem>>, vector<1x512xf32>
    %4 = vector.broadcast %3 : vector<1x512xf32> to vector<8x512xf32>
    %5 = arith.addf %2, %4 : vector<8x512xf32>
    %cst_5 = arith.constant 0.000000e+00 : f32
    %6 = vector.broadcast %cst_5 : f32 to vector<8x512xf32>
    %7 = arith.maximumf %5, %6 : vector<8x512xf32>
    %8 = arith.truncf %7 : vector<8x512xf32> to vector<8x512xbf16>
    %c0_6 = arith.constant 0 : index
    %c0_7 = arith.constant 0 : index
    %9 = vector.load %arg5[%c0_6, %c0_7] : memref<8x512xbf16, #tpu.memory_space<vmem>>, vector<8x512xbf16>
    tpu.vector_store %arg5[%c0_6, %c0_7], %8 {strides = array<i32>} : memref<8x512xbf16, #tpu.memory_space<vmem>>, vector<8x512xbf16>,
    return
  }
  func.func @transform_0(%arg0: i32, %arg1: i32) -> (i32, i32) {
    %c0_i32 = arith.constant 0 : i32
    %c0_i32_0 = arith.constant 0 : i32
    return %arg0, %c0_i32 : i32, i32
  }
  func.func @transform_1(%arg0: i32, %arg1: i32) -> (i32, i32) {
    %c0_i32 = arith.constant 0 : i32
    %c0_i32_0 = arith.constant 0 : i32
    return %c0_i32, %arg1 : i32, i32
  }
  func.func @transform_2(%arg0: i32, %arg1: i32) -> (i32, i32) {
    %c0_i32 = arith.constant 0 : i32
    %c0_i32_0 = arith.constant 0 : i32
    return %c0_i32, %arg1 : i32, i32
  }
  func.func @transform_3(%arg0: i32, %arg1: i32) -> (i32, i32) {
    %c0_i32 = arith.constant 0 : i32
    return %arg0, %arg1 : i32, i32
  }
}

module attributes {stable_mosaic.version = 11 : i64} {
  func.func @_linear_kernel(%arg0: i32, %arg1: i32, %arg2: memref<8x128xbf16, #tpu.memory_space<vmem>>, %arg3: memref<128x512xbf16, #tpu.memory_space<vmem>>, %arg4: memref<1x512xf32, #tpu.memory_space<vmem>>, %arg5: memref<8x512xbf16, #tpu.memory_space<vmem>>) attributes {dimension_semantics = [#tpu.dimension_semantics<parallel>, #tpu.dimension_semantics<parallel>], iteration_bounds = array<i64: 1, 2>, scalar_prefetch = 0 : i64, scratch_operands = 0 : i64, tpu.core_type = #tpu.core_type<tc>, window_params = [{transform_indices = @transform_0, window_bounds = array<i64: 8, 128>}, {transform_indices = @transform_1, window_bounds = array<i64: 128, 512>}, {transform_indices = @transform_2, window_bounds = array<i64: 1, 512>}, {transform_indices = @transform_3, window_bounds = array<i64: 8, 512>}]} {
    %c0 = arith.constant 0 : index
    %c0_0 = arith.constant 0 : index
    %0 = vector.load %arg2[%c0, %c0_0] : memref<8x128xbf16, #tpu.memory_space<vmem>>, vector<8x128xbf16>
    %c0_1 = arith.constant 0 : index
    %c0_2 = arith.constant 0 : index
    %1 = vector.load %arg3[%c0_1, %c0_2] : memref<128x512xbf16, #tpu.memory_space<vmem>>, vector<128x512xbf16>
    %cst = arith.constant dense<0.000000e+00> : vector<8x512xf32>
    %2 = tpu.matmul %0, %1, %cst {dimension_numbers = #tpu.dot_dimension_numbers<[1], [0], [0], [1], [0, 0, 1, 1], [], []>} : vector<8x128xbf16>, vector<128x512xbf16>, vector<8x512xf32> -> vector<8x512xf32>
    %c0_3 = arith.constant 0 : index
    %c0_4 = arith.constant 0 : index
    %3 = vector.load %arg4[%c0_3, %c0_4] : memref<1x512xf32, #tpu.memory_space<vmem>>, vector<1x512xf32>
    %4 = vector.broadcast %3 : vector<1x512xf32> to vector<8x512xf32>
    %5 = arith.addf %2, %4 : vector<8x512xf32>
    %cst_5 = arith.constant 0.000000e+00 : f32
    %6 = vector.broadcast %cst_5 : f32 to vector<8x512xf32>
    %7 = arith.maximumf %5, %6 : vector<8x512xf32>
    %8 = arith.truncf %7 : vector<8x512xf32> to vector<8x512xbf16>
    %c0_6 = arith.constant 0 : index
    %c0_7 = arith.constant 0 : index
    %9 = vector.load %arg5[%c0_6, %c0_7] : memref<8x512xbf16, #tpu.memory_space<vmem>>, vector<8x512xbf16>
    tpu.vector_store %arg5[%c0_6, %c0_7], %8 {strides = array<i32>} : memref<8x512xbf16, #tpu.memory_space<vmem>>, vector<8x512xbf16>,
    return
  }
  func.func @transform_0(%arg0: i32, %arg1: i32) -> (i32, i32) {
    %c0_i32 = arith.constant 0 : i32
    %c0_i32_0 = arith.constant 0 : i32
    return %arg0, %c0_i32 : i32, i32
  }
  func.func @transform_1(%arg0: i32, %arg1: i32) -> (i32, i32) {
    %c0_i32 = arith.constant 0 : i32
    %c0_i32_0 = arith.constant 0 : i32
    return %c0_i32, %arg1 : i32, i32
  }
  func.func @transform_2(%arg0: i32, %arg1: i32) -> (i32, i32) {
    %c0_i32 = arith.constant 0 : i32
    %c0_i32_0 = arith.constant 0 : i32
    return %c0_i32, %arg1 : i32, i32
  }
  func.func @transform_3(%arg0: i32, %arg1: i32) -> (i32, i32) {
    %c0_i32 = arith.constant 0 : i32
    return %arg0, %arg1 : i32, i32
  }
}

module attributes {stable_mosaic.version = 11 : i64} {
  func.func @_linear_kernel(%arg0: i32, %arg1: i32, %arg2: memref<8x2048xbf16, #tpu.memory_space<vmem>>, %arg3: memref<2048x512xbf16, #tpu.memory_space<vmem>>, %arg4: memref<1x512xf32, #tpu.memory_space<vmem>>, %arg5: memref<8x512xbf16, #tpu.memory_space<vmem>>) attributes {dimension_semantics = [#tpu.dimension_semantics<parallel>, #tpu.dimension_semantics<parallel>], iteration_bounds = array<i64: 1, 4>, scalar_prefetch = 0 : i64, scratch_operands = 0 : i64, tpu.core_type = #tpu.core_type<tc>, window_params = [{transform_indices = @transform_0, window_bounds = array<i64: 8, 2048>}, {transform_indices = @transform_1, window_bounds = array<i64: 2048, 512>}, {transform_indices = @transform_2, window_bounds = array<i64: 1, 512>}, {transform_indices = @transform_3, window_bounds = array<i64: 8, 512>}]} {
    %c0 = arith.constant 0 : index
    %c0_0 = arith.constant 0 : index
    %0 = vector.load %arg2[%c0, %c0_0] : memref<8x2048xbf16, #tpu.memory_space<vmem>>, vector<8x2048xbf16>
    %c0_1 = arith.constant 0 : index
    %c0_2 = arith.constant 0 : index
    %1 = vector.load %arg3[%c0_1, %c0_2] : memref<2048x512xbf16, #tpu.memory_space<vmem>>, vector<2048x512xbf16>
    %cst = arith.constant dense<0.000000e+00> : vector<8x512xf32>
    %2 = tpu.matmul %0, %1, %cst {dimension_numbers = #tpu.dot_dimension_numbers<[1], [0], [0], [1], [0, 0, 1, 1], [], []>} : vector<8x2048xbf16>, vector<2048x512xbf16>, vector<8x512xf32> -> vector<8x512xf32>
    %c0_3 = arith.constant 0 : index
    %c0_4 = arith.constant 0 : index
    %3 = vector.load %arg4[%c0_3, %c0_4] : memref<1x512xf32, #tpu.memory_space<vmem>>, vector<1x512xf32>
    %4 = vector.broadcast %3 : vector<1x512xf32> to vector<8x512xf32>
    %5 = arith.addf %2, %4 : vector<8x512xf32>
    %cst_5 = arith.constant 0.000000e+00 : f32
    %6 = vector.broadcast %cst_5 : f32 to vector<8x512xf32>
    %7 = arith.maximumf %5, %6 : vector<8x512xf32>
    %8 = arith.truncf %7 : vector<8x512xf32> to vector<8x512xbf16>
    %c0_6 = arith.constant 0 : index
    %c0_7 = arith.constant 0 : index
    %9 = vector.load %arg5[%c0_6, %c0_7] : memref<8x512xbf16, #tpu.memory_space<vmem>>, vector<8x512xbf16>
    tpu.vector_store %arg5[%c0_6, %c0_7], %8 {strides = array<i32>} : memref<8x512xbf16, #tpu.memory_space<vmem>>, vector<8x512xbf16>,
    return
  }
  func.func @transform_0(%arg0: i32, %arg1: i32) -> (i32, i32) {
    %c0_i32 = arith.constant 0 : i32
    %c0_i32_0 = arith.constant 0 : i32
    return %arg0, %c0_i32 : i32, i32
  }
  func.func @transform_1(%arg0: i32, %arg1: i32) -> (i32, i32) {
    %c0_i32 = arith.constant 0 : i32
    %c0_i32_0 = arith.constant 0 : i32
    return %c0_i32, %arg1 : i32, i32
  }
  func.func @transform_2(%arg0: i32, %arg1: i32) -> (i32, i32) {
    %c0_i32 = arith.constant 0 : i32
    %c0_i32_0 = arith.constant 0 : i32
    return %c0_i32, %arg1 : i32, i32
  }
  func.func @transform_3(%arg0: i32, %arg1: i32) -> (i32, i32) {
    %c0_i32 = arith.constant 0 : i32
    return %arg0, %arg1 : i32, i32
  }
}

module attributes {stable_mosaic.version = 11 : i64} {
  func.func @_linear_kernel(%arg0: i32, %arg1: i32, %arg2: memref<8x2048xbf16, #tpu.memory_space<vmem>>, %arg3: memref<2048x128xbf16, #tpu.memory_space<vmem>>, %arg4: memref<1x128xf32, #tpu.memory_space<vmem>>, %arg5: memref<8x128xbf16, #tpu.memory_space<vmem>>) attributes {dimension_semantics = [#tpu.dimension_semantics<parallel>, #tpu.dimension_semantics<parallel>], iteration_bounds = array<i64: 1, 1>, scalar_prefetch = 0 : i64, scratch_operands = 0 : i64, tpu.core_type = #tpu.core_type<tc>, window_params = [{transform_indices = @transform_0, window_bounds = array<i64: 8, 2048>}, {transform_indices = @transform_1, window_bounds = array<i64: 2048, 128>}, {transform_indices = @transform_2, window_bounds = array<i64: 1, 128>}, {transform_indices = @transform_3, window_bounds = array<i64: 8, 128>}]} {
    %c0 = arith.constant 0 : index
    %c0_0 = arith.constant 0 : index
    %0 = vector.load %arg2[%c0, %c0_0] : memref<8x2048xbf16, #tpu.memory_space<vmem>>, vector<8x2048xbf16>
    %c0_1 = arith.constant 0 : index
    %c0_2 = arith.constant 0 : index
    %1 = vector.load %arg3[%c0_1, %c0_2] : memref<2048x128xbf16, #tpu.memory_space<vmem>>, vector<2048x128xbf16>
    %cst = arith.constant dense<0.000000e+00> : vector<8x128xf32>
    %2 = tpu.matmul %0, %1, %cst {dimension_numbers = #tpu.dot_dimension_numbers<[1], [0], [0], [1], [0, 0, 1, 1], [], []>} : vector<8x2048xbf16>, vector<2048x128xbf16>, vector<8x128xf32> -> vector<8x128xf32>
    %c0_3 = arith.constant 0 : index
    %c0_4 = arith.constant 0 : index
    %3 = vector.load %arg4[%c0_3, %c0_4] : memref<1x128xf32, #tpu.memory_space<vmem>>, vector<1x128xf32>
    %4 = vector.broadcast %3 : vector<1x128xf32> to vector<8x128xf32>
    %5 = arith.addf %2, %4 : vector<8x128xf32>
    %cst_5 = arith.constant 0.000000e+00 : f32
    %6 = vector.broadcast %cst_5 : f32 to vector<8x128xf32>
    %7 = arith.maximumf %5, %6 : vector<8x128xf32>
    %8 = arith.truncf %7 : vector<8x128xf32> to vector<8x128xbf16>
    %c0_6 = arith.constant 0 : index
    %c0_7 = arith.constant 0 : index
    %9 = vector.load %arg5[%c0_6, %c0_7] : memref<8x128xbf16, #tpu.memory_space<vmem>>, vector<8x128xbf16>
    tpu.vector_store %arg5[%c0_6, %c0_7], %8 {strides = array<i32>} : memref<8x128xbf16, #tpu.memory_space<vmem>>, vector<8x128xbf16>,
    return
  }
  func.func @transform_0(%arg0: i32, %arg1: i32) -> (i32, i32) {
    %c0_i32 = arith.constant 0 : i32
    %c0_i32_0 = arith.constant 0 : i32
    return %arg0, %c0_i32 : i32, i32
  }
  func.func @transform_1(%arg0: i32, %arg1: i32) -> (i32, i32) {
    %c0_i32 = arith.constant 0 : i32
    %c0_i32_0 = arith.constant 0 : i32
    return %c0_i32, %arg1 : i32, i32
  }
  func.func @transform_2(%arg0: i32, %arg1: i32) -> (i32, i32) {
    %c0_i32 = arith.constant 0 : i32
    %c0_i32_0 = arith.constant 0 : i32
    return %c0_i32, %arg1 : i32, i32
  }
  func.func @transform_3(%arg0: i32, %arg1: i32) -> (i32, i32) {
    %c0_i32 = arith.constant 0 : i32
    return %arg0, %arg1 : i32, i32
  }
}

module attributes {stable_mosaic.version = 11 : i64} {
  func.func @_linear_kernel(%arg0: i32, %arg1: i32, %arg2: memref<112x128xbf16, #tpu.memory_space<vmem>>, %arg3: memref<128x128xbf16, #tpu.memory_space<vmem>>, %arg4: memref<1x128xf32, #tpu.memory_space<vmem>>, %arg5: memref<112x128xbf16, #tpu.memory_space<vmem>>) attributes {dimension_semantics = [#tpu.dimension_semantics<parallel>, #tpu.dimension_semantics<parallel>], iteration_bounds = array<i64: 1, 1>, scalar_prefetch = 0 : i64, scratch_operands = 0 : i64, tpu.core_type = #tpu.core_type<tc>, window_params = [{transform_indices = @transform_0, window_bounds = array<i64: 112, 128>}, {transform_indices = @transform_1, window_bounds = array<i64: 128, 128>}, {transform_indices = @transform_2, window_bounds = array<i64: 1, 128>}, {transform_indices = @transform_3, window_bounds = array<i64: 112, 128>}]} {
    %c0 = arith.constant 0 : index
    %c0_0 = arith.constant 0 : index
    %0 = vector.load %arg2[%c0, %c0_0] : memref<112x128xbf16, #tpu.memory_space<vmem>>, vector<112x128xbf16>
    %c0_1 = arith.constant 0 : index
    %c0_2 = arith.constant 0 : index
    %1 = vector.load %arg3[%c0_1, %c0_2] : memref<128x128xbf16, #tpu.memory_space<vmem>>, vector<128x128xbf16>
    %cst = arith.constant dense<0.000000e+00> : vector<112x128xf32>
    %2 = tpu.matmul %0, %1, %cst {dimension_numbers = #tpu.dot_dimension_numbers<[1], [0], [0], [1], [0, 0, 1, 1], [], []>} : vector<112x128xbf16>, vector<128x128xbf16>, vector<112x128xf32> -> vector<112x128xf32>
    %c0_3 = arith.constant 0 : index
    %c0_4 = arith.constant 0 : index
    %3 = vector.load %arg4[%c0_3, %c0_4] : memref<1x128xf32, #tpu.memory_space<vmem>>, vector<1x128xf32>
    %4 = vector.broadcast %3 : vector<1x128xf32> to vector<112x128xf32>
    %5 = arith.addf %2, %4 : vector<112x128xf32>
    %cst_5 = arith.constant 0.000000e+00 : f32
    %6 = vector.broadcast %cst_5 : f32 to vector<112x128xf32>
    %7 = arith.maximumf %5, %6 : vector<112x128xf32>
    %8 = arith.truncf %7 : vector<112x128xf32> to vector<112x128xbf16>
    %c0_6 = arith.constant 0 : index
    %c0_7 = arith.constant 0 : index
    %9 = vector.load %arg5[%c0_6, %c0_7] : memref<112x128xbf16, #tpu.memory_space<vmem>>, vector<112x128xbf16>
    tpu.vector_store %arg5[%c0_6, %c0_7], %8 {strides = array<i32>} : memref<112x128xbf16, #tpu.memory_space<vmem>>, vector<112x128xbf16>,
    return
  }
  func.func @transform_0(%arg0: i32, %arg1: i32) -> (i32, i32) {
    %c0_i32 = arith.constant 0 : i32
    %c0_i32_0 = arith.constant 0 : i32
    return %arg0, %c0_i32 : i32, i32
  }
  func.func @transform_1(%arg0: i32, %arg1: i32) -> (i32, i32) {
    %c0_i32 = arith.constant 0 : i32
    %c0_i32_0 = arith.constant 0 : i32
    return %c0_i32, %arg1 : i32, i32
  }
  func.func @transform_2(%arg0: i32, %arg1: i32) -> (i32, i32) {
    %c0_i32 = arith.constant 0 : i32
    %c0_i32_0 = arith.constant 0 : i32
    return %c0_i32, %arg1 : i32, i32
  }
  func.func @transform_3(%arg0: i32, %arg1: i32) -> (i32, i32) {
    %c0_i32 = arith.constant 0 : i32
    return %arg0, %arg1 : i32, i32
  }
}

module attributes {stable_mosaic.version = 11 : i64} {
  func.func @_linear_kernel(%arg0: i32, %arg1: i32, %arg2: memref<96x512xbf16, #tpu.memory_space<vmem>>, %arg3: memref<512x128xbf16, #tpu.memory_space<vmem>>, %arg4: memref<1x128xf32, #tpu.memory_space<vmem>>, %arg5: memref<96x128xbf16, #tpu.memory_space<vmem>>) attributes {dimension_semantics = [#tpu.dimension_semantics<parallel>, #tpu.dimension_semantics<parallel>], iteration_bounds = array<i64: 1, 1>, scalar_prefetch = 0 : i64, scratch_operands = 0 : i64, tpu.core_type = #tpu.core_type<tc>, window_params = [{transform_indices = @transform_0, window_bounds = array<i64: 96, 512>}, {transform_indices = @transform_1, window_bounds = array<i64: 512, 128>}, {transform_indices = @transform_2, window_bounds = array<i64: 1, 128>}, {transform_indices = @transform_3, window_bounds = array<i64: 96, 128>}]} {
    %c0 = arith.constant 0 : index
    %c0_0 = arith.constant 0 : index
    %0 = vector.load %arg2[%c0, %c0_0] : memref<96x512xbf16, #tpu.memory_space<vmem>>, vector<96x512xbf16>
    %c0_1 = arith.constant 0 : index
    %c0_2 = arith.constant 0 : index
    %1 = vector.load %arg3[%c0_1, %c0_2] : memref<512x128xbf16, #tpu.memory_space<vmem>>, vector<512x128xbf16>
    %cst = arith.constant dense<0.000000e+00> : vector<96x128xf32>
    %2 = tpu.matmul %0, %1, %cst {dimension_numbers = #tpu.dot_dimension_numbers<[1], [0], [0], [1], [0, 0, 1, 1], [], []>} : vector<96x512xbf16>, vector<512x128xbf16>, vector<96x128xf32> -> vector<96x128xf32>
    %c0_3 = arith.constant 0 : index
    %c0_4 = arith.constant 0 : index
    %3 = vector.load %arg4[%c0_3, %c0_4] : memref<1x128xf32, #tpu.memory_space<vmem>>, vector<1x128xf32>
    %4 = vector.broadcast %3 : vector<1x128xf32> to vector<96x128xf32>
    %5 = arith.addf %2, %4 : vector<96x128xf32>
    %cst_5 = arith.constant 0.000000e+00 : f32
    %6 = vector.broadcast %cst_5 : f32 to vector<96x128xf32>
    %7 = arith.maximumf %5, %6 : vector<96x128xf32>
    %8 = arith.truncf %7 : vector<96x128xf32> to vector<96x128xbf16>
    %c0_6 = arith.constant 0 : index
    %c0_7 = arith.constant 0 : index
    %9 = vector.load %arg5[%c0_6, %c0_7] : memref<96x128xbf16, #tpu.memory_space<vmem>>, vector<96x128xbf16>
    tpu.vector_store %arg5[%c0_6, %c0_7], %8 {strides = array<i32>} : memref<96x128xbf16, #tpu.memory_space<vmem>>, vector<96x128xbf16>,
    return
  }
  func.func @transform_0(%arg0: i32, %arg1: i32) -> (i32, i32) {
    %c0_i32 = arith.constant 0 : i32
    %c0_i32_0 = arith.constant 0 : i32
    return %arg0, %c0_i32 : i32, i32
  }
  func.func @transform_1(%arg0: i32, %arg1: i32) -> (i32, i32) {
    %c0_i32 = arith.constant 0 : i32
    %c0_i32_0 = arith.constant 0 : i32
    return %c0_i32, %arg1 : i32, i32
  }
  func.func @transform_2(%arg0: i32, %arg1: i32) -> (i32, i32) {
    %c0_i32 = arith.constant 0 : i32
    %c0_i32_0 = arith.constant 0 : i32
    return %c0_i32, %arg1 : i32, i32
  }
  func.func @transform_3(%arg0: i32, %arg1: i32) -> (i32, i32) {
    %c0_i32 = arith.constant 0 : i32
    return %arg0, %arg1 : i32, i32
  }
}

module attributes {stable_mosaic.version = 11 : i64} {
  func.func @_linear_kernel(%arg0: i32, %arg1: i32, %arg2: memref<8x512xbf16, #tpu.memory_space<vmem>>, %arg3: memref<512x256xbf16, #tpu.memory_space<vmem>>, %arg4: memref<1x256xf32, #tpu.memory_space<vmem>>, %arg5: memref<8x256xbf16, #tpu.memory_space<vmem>>) attributes {dimension_semantics = [#tpu.dimension_semantics<parallel>, #tpu.dimension_semantics<parallel>], iteration_bounds = array<i64: 1, 1>, scalar_prefetch = 0 : i64, scratch_operands = 0 : i64, tpu.core_type = #tpu.core_type<tc>, window_params = [{transform_indices = @transform_0, window_bounds = array<i64: 8, 512>}, {transform_indices = @transform_1, window_bounds = array<i64: 512, 256>}, {transform_indices = @transform_2, window_bounds = array<i64: 1, 256>}, {transform_indices = @transform_3, window_bounds = array<i64: 8, 256>}]} {
    %c0 = arith.constant 0 : index
    %c0_0 = arith.constant 0 : index
    %0 = vector.load %arg2[%c0, %c0_0] : memref<8x512xbf16, #tpu.memory_space<vmem>>, vector<8x512xbf16>
    %c0_1 = arith.constant 0 : index
    %c0_2 = arith.constant 0 : index
    %1 = vector.load %arg3[%c0_1, %c0_2] : memref<512x256xbf16, #tpu.memory_space<vmem>>, vector<512x256xbf16>
    %cst = arith.constant dense<0.000000e+00> : vector<8x256xf32>
    %2 = tpu.matmul %0, %1, %cst {dimension_numbers = #tpu.dot_dimension_numbers<[1], [0], [0], [1], [0, 0, 1, 1], [], []>} : vector<8x512xbf16>, vector<512x256xbf16>, vector<8x256xf32> -> vector<8x256xf32>
    %c0_3 = arith.constant 0 : index
    %c0_4 = arith.constant 0 : index
    %3 = vector.load %arg4[%c0_3, %c0_4] : memref<1x256xf32, #tpu.memory_space<vmem>>, vector<1x256xf32>
    %4 = vector.broadcast %3 : vector<1x256xf32> to vector<8x256xf32>
    %5 = arith.addf %2, %4 : vector<8x256xf32>
    %cst_5 = arith.constant 0.000000e+00 : f32
    %6 = vector.broadcast %cst_5 : f32 to vector<8x256xf32>
    %7 = arith.maximumf %5, %6 : vector<8x256xf32>
    %8 = arith.truncf %7 : vector<8x256xf32> to vector<8x256xbf16>
    %c0_6 = arith.constant 0 : index
    %c0_7 = arith.constant 0 : index
    %9 = vector.load %arg5[%c0_6, %c0_7] : memref<8x256xbf16, #tpu.memory_space<vmem>>, vector<8x256xbf16>
    tpu.vector_store %arg5[%c0_6, %c0_7], %8 {strides = array<i32>} : memref<8x256xbf16, #tpu.memory_space<vmem>>, vector<8x256xbf16>,
    return
  }
  func.func @transform_0(%arg0: i32, %arg1: i32) -> (i32, i32) {
    %c0_i32 = arith.constant 0 : i32
    %c0_i32_0 = arith.constant 0 : i32
    return %arg0, %c0_i32 : i32, i32
  }
  func.func @transform_1(%arg0: i32, %arg1: i32) -> (i32, i32) {
    %c0_i32 = arith.constant 0 : i32
    %c0_i32_0 = arith.constant 0 : i32
    return %c0_i32, %arg1 : i32, i32
  }
  func.func @transform_2(%arg0: i32, %arg1: i32) -> (i32, i32) {
    %c0_i32 = arith.constant 0 : i32
    %c0_i32_0 = arith.constant 0 : i32
    return %c0_i32, %arg1 : i32, i32
  }
  func.func @transform_3(%arg0: i32, %arg1: i32) -> (i32, i32) {
    %c0_i32 = arith.constant 0 : i32
    return %arg0, %arg1 : i32, i32
  }
}

module attributes {stable_mosaic.version = 11 : i64} {
  func.func @_linear_kernel(%arg0: i32, %arg1: i32, %arg2: memref<8x256xbf16, #tpu.memory_space<vmem>>, %arg3: memref<256x128xbf16, #tpu.memory_space<vmem>>, %arg4: memref<1x128xf32, #tpu.memory_space<vmem>>, %arg5: memref<8x128xf32, #tpu.memory_space<vmem>>) attributes {dimension_semantics = [#tpu.dimension_semantics<parallel>, #tpu.dimension_semantics<parallel>], iteration_bounds = array<i64: 1, 1>, scalar_prefetch = 0 : i64, scratch_operands = 0 : i64, tpu.core_type = #tpu.core_type<tc>, window_params = [{transform_indices = @transform_0, window_bounds = array<i64: 8, 256>}, {transform_indices = @transform_1, window_bounds = array<i64: 256, 128>}, {transform_indices = @transform_2, window_bounds = array<i64: 1, 128>}, {transform_indices = @transform_3, window_bounds = array<i64: 8, 128>}]} {
    %c0 = arith.constant 0 : index
    %c0_0 = arith.constant 0 : index
    %0 = vector.load %arg2[%c0, %c0_0] : memref<8x256xbf16, #tpu.memory_space<vmem>>, vector<8x256xbf16>
    %c0_1 = arith.constant 0 : index
    %c0_2 = arith.constant 0 : index
    %1 = vector.load %arg3[%c0_1, %c0_2] : memref<256x128xbf16, #tpu.memory_space<vmem>>, vector<256x128xbf16>
    %cst = arith.constant dense<0.000000e+00> : vector<8x128xf32>
    %2 = tpu.matmul %0, %1, %cst {dimension_numbers = #tpu.dot_dimension_numbers<[1], [0], [0], [1], [0, 0, 1, 1], [], []>} : vector<8x256xbf16>, vector<256x128xbf16>, vector<8x128xf32> -> vector<8x128xf32>
    %c0_3 = arith.constant 0 : index
    %c0_4 = arith.constant 0 : index
    %3 = vector.load %arg4[%c0_3, %c0_4] : memref<1x128xf32, #tpu.memory_space<vmem>>, vector<1x128xf32>
    %4 = vector.broadcast %3 : vector<1x128xf32> to vector<8x128xf32>
    %5 = arith.addf %2, %4 : vector<8x128xf32>
    %c0_5 = arith.constant 0 : index
    %c0_6 = arith.constant 0 : index
    %6 = vector.load %arg5[%c0_5, %c0_6] : memref<8x128xf32, #tpu.memory_space<vmem>>, vector<8x128xf32>
    tpu.vector_store %arg5[%c0_5, %c0_6], %5 {strides = array<i32>} : memref<8x128xf32, #tpu.memory_space<vmem>>, vector<8x128xf32>,
    return
  }
  func.func @transform_0(%arg0: i32, %arg1: i32) -> (i32, i32) {
    %c0_i32 = arith.constant 0 : i32
    %c0_i32_0 = arith.constant 0 : i32
    return %arg0, %c0_i32 : i32, i32
  }
  func.func @transform_1(%arg0: i32, %arg1: i32) -> (i32, i32) {
    %c0_i32 = arith.constant 0 : i32
    %c0_i32_0 = arith.constant 0 : i32
    return %c0_i32, %arg1 : i32, i32
  }
  func.func @transform_2(%arg0: i32, %arg1: i32) -> (i32, i32) {
    %c0_i32 = arith.constant 0 : i32
    %c0_i32_0 = arith.constant 0 : i32
    return %c0_i32, %arg1 : i32, i32
  }
  func.func @transform_3(%arg0: i32, %arg1: i32) -> (i32, i32) {
    %c0_i32 = arith.constant 0 : i32
    return %arg0, %arg1 : i32, i32
  }
}

</mosaic_0001>

<bundles_post_ra>
// kernel: ae_forward.8
= control target key start
LH: loop header
LB: loop body
LE: loop exit
PB: predicated region body
PF: predicated region fallthrough
CT: control target
= control target key end

     0   :  { %8 = vsyncpa [#allocation3], 0  ;;  %s1192_s0 = inlined_call_operand.vmem [shape: bf16[8,128], index: 0, kind: input, shape index: {}]   ;;  %s1193_s1 = inlined_call_operand.hbm [shape: bf16[128,1024], index: 1, kind: input, shape index: {}]   ;;  %s1194_s2 = inlined_call_operand.hbm [shape: f32[1,1024], index: 2, kind: input, shape index: {}]   ;;  %s1195_s3 = inlined_call_operand.vmem [shape: bf16[8,1024], index: 3, kind: output, shape index: {}]  }
   0x1   :  { %10 = vsyncpa [#allocation3 + $0x1], 0 }
   0x2   :  { %11 = vsyncpa [#allocation5], 0 }
   0x3   :  { %13 = vsyncpa [#allocation5 + $0x1], 0  ;;  %s1027_s12 = smov 0   ;;  %s1029_s13 = smov 0  }
   0x4   :  { %s1031_s14 = smov 0   ;;  %s1033_s15 = smov 0  }
   0x5   :  { %s1035_s16 = smov 0   ;;  %s1037_s17 = smov 0  }
   0x6 LB: > { %s721_s18 = sadd.s32 4294967295, %s999_s17   ;;  %s28_s19 = sadd.s32 1, %s995_s16  ;;  %s999_s17 = sphi %s1037_s17, %s19_s17   ;;  %s995_s16 = sphi %s1035_s16, %s1204_s16   ;;  %s991_s15 = sphi %s1033_s15, %s1203_s15   ;;  %s987_s14 = sphi %s1031_s14, %s1202_s14   ;;  %s983_s13 = sphi %s1029_s13, %s1201_s13   ;;  %s979_s12 = sphi %s1027_s12, %s1200_s12  }
   0x7   : > { %p29_p0 = scmp.ge.s32.totalorder %s28_s19, 2  ;;  %s64_s20 = sadd.s32 1, %s987_s14 }
   0x8   : > { %p71_p1 = scmp.ne.s32.totalorder %s987_s14, %s983_s13  ;;  %p72_p2 = scmp.eq.s32.totalorder %s999_s17, 0 }
   0x9   : > { %s1206_s19 = smov (%p29_p0, %s28_s19), 0  ;;  %p77_p4 = scmp.ne.s32.totalorder %s983_s13, %s979_s12 }
   0xa   : > { %p1063_p3 = por %p72_p2, %p71_p1  ;;  %s61_s22 = ssub.s32 %s995_s16, %s1206_s19 }
   0xb   : > { %p78_p5 = scmp.eq.s32.totalorder %s721_s18, 0  ;;  %p62_p6 = scmp.eq.s32.totalorder %s61_s22, 0 }
   0xc   : > { %p788_p8 = scmp.lt.s32.totalorder %s999_s17, 2  ;;  %s1079_s25 = sand.u32 1, %s987_s14  }
   0xd   : > { %p1070_p7 = por %p78_p5, %p77_p4  ;;  %s773_s26 = sshll.u32 %s995_s16, 8 }
   0xe   : > { %s1076_s24 = scalar_select %p62_p6, %s987_s14, %s64_s20  }
   0xf   : > { %s726_s27 = sshll.u32 %s1079_s25, 8  ;;  %s172_s30 = scalar_lea.hbm %s1193_s1, %s773_s26 }
  0x10   : > { %s166_s4 = scalar_lea.vmem [#allocation2], %s726_s27  ;;  %p1088_p9 = pnand %p788_p8, %p1063_p3 }
  0x11   : > { %s173_s5 = sshll.u32 %s166_s4, 4  ;;  %p732_p10 = scmp.ge.s32.totalorder %s999_s17, 1  ;;  %s174_s5 = int_to_ptr.vmem [resolvable:$true] %s173_s5 }
  0x12   : > { %s163_s7 = scalar_lea.sflag [#allocation3], %s1079_s25  ;;  %p891_p11 = pneg %p1088_p9 }
  0x13   : > { %s902_s8 = scalar_lea.vmem %s174_s5, 4096  ;;  %s1001_s9 = smov [#allocation2]  }
  0x14   : > { %p903_p12 = scmp.ne.s32.totalorder %s174_s5, %s902_s8  ;;  %s907_s10 = sshll.u32 %s1001_s9, 4  ;;  %s908_s10 = int_to_ptr.vmem [resolvable:$false] %s907_s10 }
  0x15   : > { %s909_s11 = scalar_lea.vmem %s908_s10, 8192  ;;  %p910_p1 = scmp.lt.s32.totalorder %s174_s5, %s908_s10 }
  0x16   : > { %p905_p13 = pnand %p903_p12, %p891_p11  ;;  %p911_p2 = scmp.lt.s32.totalorder %s909_s11, %s902_s8 }
  0x18   : > { %p906_p0 = pneg %p905_p13  ;;  %p912_p3 = por %p911_p2, %p910_p1 }
  0x1a   : > { %p913_p4 = pnand %p912_p3, %p906_p0 }
  0x1c   : > { %916 = shalt.err (!%p913_p4)
}
  0x1d   : > { %s1002_s12 = smov 512   ;;  %s1003_s18 = smov 256  }
  0x1e   : > { %s1004_s20 = smov 16   ;;  %p200_p5 = scmp.lt.s32.totalorder %s999_s17, 3 }
  0x1f   : > { %784 = dma.hbm_to_vmem [thread:$0]  (!%p1088_p9), %s172_s30, 4096, %s174_s5, %s163_s7, %s1002_s12, %s1003_s18, %s1004_s20  }
  0x20   : > { %s729_s21 = sshll.u32 %s1079_s25, 2  ;;  %s774_s22 = sshll.u32 %s995_s16, 6 }
  0x21   : > { %p1106_p6 = pnand %p732_p10, %p200_p5  ;;  %s193_s29 = scalar_lea.hbm %s1194_s2, %s774_s22 }
  0x22   : > { %s187_s4 = scalar_lea.vmem [#allocation4], %s729_s21  ;;  %s184_s9 = scalar_lea.sflag [#allocation5], %s1079_s25 }
  0x23   : > { %s195_s8 = sshll.u32 %s187_s4, 4  ;;  %s1005_s30 = smov [#allocation4]   ;;  %s196_s8 = int_to_ptr.vmem [resolvable:$true] %s195_s8 }
  0x24   : > { %s930_s10 = scalar_lea.vmem %s196_s8, 64  ;;  %s935_s5 = sshll.u32 %s1005_s30, 4  ;;  %s936_s5 = int_to_ptr.vmem [resolvable:$false] %s935_s5 }
  0x25   : > { %p931_p8 = scmp.ne.s32.totalorder %s196_s8, %s930_s10  ;;  %s937_s7 = scalar_lea.vmem %s936_s5, 128 }
  0x26   : > { %p938_p10 = scmp.lt.s32.totalorder %s196_s8, %s936_s5  ;;  %p939_p0 = scmp.lt.s32.totalorder %s937_s7, %s930_s10 }
  0x27   : > { %p933_p12 = pnand %p931_p8, %p891_p11 }
  0x28   : > { %p940_p1 = por %p939_p0, %p938_p10 }
  0x29   : > { %p934_p13 = pneg %p933_p12 }
  0x2b   : > { %p941_p2 = pnand %p940_p1, %p934_p13 }
  0x2d   : > { %944 = shalt.err (!%p941_p2)
}
  0x2e   : > { %787 = dma.hbm_to_vmem [thread:$0]  (!%p1088_p9), %s193_s29, 64, %s196_s8, %s184_s9  }
  0x2f   : > { %204 = sbr.rel (%p1106_p6) target bundleno = 292 (0x124), region = 32  ;;  %s206_s25 = sand.u32 (!%p1106_p6), 1, %s983_s13  }
  0x30   : > { %s733_s11 = sshll.u32 (!%p1106_p6), %s206_s25, 8  ;;  %s207_s12 = scalar_lea.sflag (!%p1106_p6), [#allocation3], %s206_s25 }
  0x31   : > { %s1122_s18 = scalar_lea.vmem (!%p1106_p6), [#allocation2], %s733_s11 }
  0x34   : > { %970 = dma.done.wait (%p1070_p7), %s207_s12, 4096  }
  0x35   : > { %972 = vsyncadd (%p1070_p7), %s207_s12, 4294963200  ;;  %s734_s20 = sshll.u32 %s206_s25, 2  ;;  %s216_s21 = scalar_lea.sflag [#allocation5], %s206_s25 }
  0x36   : > { %s1128_s6 = scalar_lea.vmem [#allocation4], %s734_s20 }
  0x37   : > { %974 = dma.done.wait (%p1070_p7), %s216_s21, 64  }
  0x38   : > { %976 = vsyncadd (%p1070_p7), %s216_s21, 4294967232  ;;  %v1006_v0 = vmov 0   ;;  %v841_v1 = vld [vmem:[%s1122_s18 + $0xe4] ss:$16 sps:$4 sm:$0xff]   ;;  %v843_v2 = vld [vmem:[%s1122_s18 + $0xec] ss:$16 sps:$4 sm:$0xff]   ;;  %v307_v34 = vlaneseq }
  0x39   : > { %519 = vmatprep.mubr.bf16.mxu0 %v1006_v0  ;;  %560 = vmatprep.mubr.bf16.mxu1 %v1006_v0  ;;  %v845_v3 = vld [vmem:[%s1122_s18 + $0xe0] ss:$16 sps:$4 sm:$0xff]   ;;  %v846_v4 = vld [vmem:[%s1122_s18 + $0xe8] ss:$16 sps:$4 sm:$0xff]   ;;  %v847_v5 = vld [vmem:[%s1122_s18 + $0xc4] ss:$16 sps:$4 sm:$0xff]  }
  0x3a   : > { %487 = vmatprep.subr.bf16.mxu0 %v841_v1  ;;  %528 = vmatprep.subr.bf16.mxu1 %v843_v2  ;;  %v849_v6 = vld [vmem:[%s1122_s18 + $0xcc] ss:$16 sps:$4 sm:$0xff]   ;;  %v851_v7 = vld [vmem:[%s1122_s18 + $0xc0] ss:$16 sps:$4 sm:$0xff]   ;;  %v852_v8 = vld [vmem:[%s1122_s18 + $0xc8] ss:$16 sps:$4 sm:$0xff]  }
  0x3b   : > { %488 = vmatpush1.bf16.msra.mxu0 %v845_v3  ;;  %529 = vmatpush1.bf16.msra.mxu1 %v846_v4  ;;  %v853_v9 = vld [vmem:[%s1122_s18 + $0xa4] ss:$16 sps:$4 sm:$0xff]   ;;  %v855_v10 = vld [vmem:[%s1122_s18 + $0xac] ss:$16 sps:$4 sm:$0xff]   ;;  %v857_v11 = vld [vmem:[%s1122_s18 + $0xa0] ss:$16 sps:$4 sm:$0xff]  }
  0x3c   : > { %489 = vmatprep.subr.bf16.mxu0 %v847_v5  ;;  %530 = vmatprep.subr.bf16.mxu1 %v849_v6  ;;  %v858_v12 = vld [vmem:[%s1122_s18 + $0xa8] ss:$16 sps:$4 sm:$0xff]   ;;  %v859_v13 = vld [vmem:[%s1122_s18 + $0x84] ss:$16 sps:$4 sm:$0xff]   ;;  %v861_v14 = vld [vmem:[%s1122_s18 + $0x8c] ss:$16 sps:$4 sm:$0xff]  }
  0x3d   : > { %v863_v15 = vld [vmem:[%s1122_s18 + $0x80] ss:$16 sps:$4 sm:$0xff]   ;;  %v864_v16 = vld [vmem:[%s1122_s18 + $0x88] ss:$16 sps:$4 sm:$0xff]   ;;  %v865_v17 = vld [vmem:[%s1122_s18 + $0x64] ss:$16 sps:$4 sm:$0xff]  }
  0x3e   : > { %v867_v18 = vld [vmem:[%s1122_s18 + $0x6c] ss:$16 sps:$4 sm:$0xff]   ;;  %v869_v19 = vld [vmem:[%s1122_s18 + $0x60] ss:$16 sps:$4 sm:$0xff]   ;;  %v870_v20 = vld [vmem:[%s1122_s18 + $0x68] ss:$16 sps:$4 sm:$0xff]  }
  0x3f   : > { %490 = vmatpush1.bf16.msra.mxu0 %v851_v7  ;;  %531 = vmatpush1.bf16.msra.mxu1 %v852_v8  ;;  %v871_v21 = vld [vmem:[%s1122_s18 + $0x44] ss:$16 sps:$4 sm:$0xff]   ;;  %v873_v22 = vld [vmem:[%s1122_s18 + $0x4c] ss:$16 sps:$4 sm:$0xff]   ;;  %v875_v23 = vld [vmem:[%s1122_s18 + $0x40] ss:$16 sps:$4 sm:$0xff]  }
  0x40   : > { %491 = vmatprep.subr.bf16.mxu0 %v853_v9  ;;  %532 = vmatprep.subr.bf16.mxu1 %v855_v10  ;;  %v876_v24 = vld [vmem:[%s1122_s18 + $0x48] ss:$16 sps:$4 sm:$0xff]   ;;  %v877_v25 = vld [vmem:[%s1122_s18 + $0x24] ss:$16 sps:$4 sm:$0xff]   ;;  %v879_v26 = vld [vmem:[%s1122_s18 + $0x2c] ss:$16 sps:$4 sm:$0xff]  }
  0x41   : > { %v881_v27 = vld [vmem:[%s1122_s18 + $0x20] ss:$16 sps:$4 sm:$0xff]   ;;  %v882_v28 = vld [vmem:[%s1122_s18 + $0x28] ss:$16 sps:$4 sm:$0xff]   ;;  %v883_v29 = vld [vmem:[%s1122_s18 + $0x4] ss:$16 sps:$4 sm:$0xff]  }
  0x42   : > { %v885_v30 = vld [vmem:[%s1122_s18 + $0xc] ss:$16 sps:$4 sm:$0xff]   ;;  %v887_v31 = vld [vmem:[%s1122_s18] ss:$16 sps:$4 sm:$0xff]   ;;  %v888_v32 = vld [vmem:[%s1122_s18 + $0x8] ss:$16 sps:$4 sm:$0xff]  }
  0x43   : > { %492 = vmatpush1.bf16.msra.mxu0 %v857_v11  ;;  %533 = vmatpush1.bf16.msra.mxu1 %v858_v12  ;;  %v272_v33 = vld [vmem:[%s1192_s0] sm:$0xf]  ;;  %v308_v35 = vshrl.u32 %v307_v34, 7  ;;  %s735_s26 = sshll.u32 %s991_s15, 2 }
  0x44   : > { %493 = vmatprep.subr.bf16.mxu0 %v859_v13  ;;  %534 = vmatprep.subr.bf16.mxu1 %v861_v14  ;;  %v305_v38 = vld [vmem:[%s1128_s6] sm:$0xf]  ;;  %p264_p7 = scmp.lt.s32.totalorder %s735_s26, 7 }
  0x45   : > { %v309_v36 = vsub.s32 0, %v308_v35  ;;  %v317_v37 = vsub.s32 2, %v308_v35  ;;  %v313_v39 = vsub.s32 1, %v308_v35  ;;  %v321_v40 = vsub.s32 3, %v308_v35 }
  0x46   : > { %s1208_s26 = smov (!%p264_p7, %s735_s26), 7 }
  0x47   : > { %494 = vmatpush1.bf16.msra.mxu0 %v863_v15  ;;  %535 = vmatpush1.bf16.msra.mxu1 %v864_v16  ;;  %v310_v41 = vrot.slane %v305_v38, %v309_v36  ;;  %v318_v42 = vrot.slane %v305_v38, %v317_v37  ;;  %v314_v43 = vrot.slane %v305_v38, %v313_v39  ;;  %s736_s27 = sshll.u32 %s1208_s26, 2 }
  0x48   : > { %495 = vmatprep.subr.bf16.mxu0 %v865_v17  ;;  %536 = vmatprep.subr.bf16.mxu1 %v867_v18  ;;  %v322_v44 = vrot.slane %v305_v38, %v321_v40  ;;  %s269_s29 = scalar_lea.vmem %s1195_s3, %s736_s27 }
  0x4b   : > { %496 = vmatpush1.bf16.msra.mxu0 %v869_v19  ;;  %537 = vmatpush1.bf16.msra.mxu1 %v870_v20 }
  0x4c   : > { %497 = vmatprep.subr.bf16.mxu0 %v871_v21  ;;  %538 = vmatprep.subr.bf16.mxu1 %v873_v22 }
  0x4f   : > { %498 = vmatpush1.bf16.msra.mxu0 %v875_v23  ;;  %539 = vmatpush1.bf16.msra.mxu1 %v876_v24 }
  0x50   : > { %499 = vmatprep.subr.bf16.mxu0 %v877_v25  ;;  %540 = vmatprep.subr.bf16.mxu1 %v879_v26 }
  0x53   : > { %500 = vmatpush1.bf16.msra.mxu0 %v881_v27  ;;  %541 = vmatpush1.bf16.msra.mxu1 %v882_v28 }
  0x54   : > { %501 = vmatprep.subr.bf16.mxu0 %v883_v29  ;;  %542 = vmatprep.subr.bf16.mxu1 %v885_v30 }
  0x57   : > { %502 = vmatpush1.bf16.msra.mxu0 %v887_v31  ;;  %543 = vmatpush1.bf16.msra.mxu1 %v888_v32 }
  0x5a   : > { %520 = vmatmul.mubr.bf16.vlgmr.msra.gmra.mxu0 %v272_v33  ;;  %561 = vmatmul.mubr.bf16.vlgmr.msra.gmra.mxu1 %v272_v33 }
 0x11a   : > { %v521_v45 = vpop.f32.mrf.mxu0  ;;  %v562_v46 = vpop.f32.mrf.mxu1 }
 0x11b   : > { %v522_v47 = vadd.f32 %v521_v45, %v310_v41  ;;  %v563_v48 = vadd.f32 %v562_v46, %v318_v42 }
 0x11c   : > { %v523_v49 = vpop.f32.mrf.mxu0  ;;  %v564_v50 = vpop.f32.mrf.mxu1 }
 0x11d   : > { %v571_v51 = vmax.f32 %v563_v48, 0.0  ;;  %v524_v52 = vadd.f32 %v523_v49, %v314_v43  ;;  %v565_v53 = vadd.f32 %v564_v50, %v322_v44  ;;  %v569_v56 = vmax.f32 %v522_v47, 0.0 }
 0x11e   : > { %v525_v54 = vpop.f32.mrf.mxu0  ;;  %v566_v55 = vpop.f32.mrf.mxu1 }
 0x11f   : > { %v570_v57 = vmax.f32 %v524_v52, 0.0  ;;  %v572_v58 = vmax.f32 %v565_v53, 0.0 }
 0x120   : > { %v526_v59 = vpop.f32.mrf.mxu0  ;;  %v567_v60 = vpop.f32.mrf.mxu1 }
 0x121   : > { %v775_v61 = vpack.c.bf16 %v570_v57, %v569_v56  ;;  %v776_v62 = vpack.c.bf16 %v572_v58, %v571_v51 }
 0x123   : > { %589 = vst [vmem:[%s269_s29] sm:$0xff] %v775_v61  ;;  %590 = vst [vmem:[%s269_s29 + $0x8] sm:$0xff] %v776_v62 }
 0x124 PF: > { %s19_s17 = sadd.s32 1, %s999_s17   ;;  %s1200_s12 = smov %s983_s13 }
 0x125   : > { %p16_p9 = scmp.ge.s32.totalorder %s19_s17, 4   ;;  %s1201_s13 = smov %s987_s14 }
 0x126   : > { %s1202_s14 = smov %s1076_s24  ;;  %s1203_s15 = smov %s995_s16 }
 0x127   : > { %s1204_s16 = smov %s1206_s19  ;;  %18 = sbr.rel (!%p16_p9) target bundleno = 6 (0x6), region = 88 }
 0x12c   :  { %621 = vsyncpa [#allocation3], 1 }
 0x12d   :  { %623 = vsyncpa [#allocation3 + $0x1], 1 }
 0x12e   :  { %624 = vsyncpa [#allocation5], 1 }
 0x12f   :  { %626 = vsyncpa [#allocation5 + $0x1], 1 }

// kernel: ae_forward.9
= control target key start
LH: loop header
LB: loop body
LE: loop exit
PB: predicated region body
PF: predicated region fallthrough
CT: control target
= control target key end

     0   :  { %8 = vsyncpa [#allocation3], 0  ;;  %s3670_s0 = inlined_call_operand.vmem [shape: bf16[8,1024], index: 0, kind: input, shape index: {}]   ;;  %s3671_s1 = inlined_call_operand.hbm [shape: bf16[1024,2048], index: 1, kind: input, shape index: {}]   ;;  %s3672_s2 = inlined_call_operand.hbm [shape: f32[1,2048], index: 2, kind: input, shape index: {}]   ;;  %s3673_s3 = inlined_call_operand.vmem [shape: bf16[8,2048], index: 3, kind: output, shape index: {}]  }
   0x1   :  { %10 = vsyncpa [#allocation3 + $0x1], 0 }
   0x2   :  { %11 = vsyncpa [#allocation5], 0 }
   0x3   :  { %13 = vsyncpa [#allocation5 + $0x1], 0  ;;  %s3224_s12 = smov 0   ;;  %s3226_s13 = smov 0  }
   0x4   :  { %s3228_s14 = smov 0   ;;  %s3230_s15 = smov 0  }
   0x5   :  { %s3232_s16 = smov 0   ;;  %s3234_s17 = smov 0  }
   0x6 LB: > { %s2344_s18 = sadd.s32 4294967295, %s3197_s17   ;;  %s28_s19 = sadd.s32 1, %s3193_s16  ;;  %s3197_s17 = sphi %s3234_s17, %s19_s17   ;;  %s3193_s16 = sphi %s3232_s16, %s3682_s16   ;;  %s3189_s15 = sphi %s3230_s15, %s3681_s15   ;;  %s3185_s14 = sphi %s3228_s14, %s3680_s14   ;;  %s3181_s13 = sphi %s3226_s13, %s3679_s13   ;;  %s3177_s12 = sphi %s3224_s12, %s3678_s12  }
   0x7   : > { %p29_p0 = scmp.ge.s32.totalorder %s28_s19, 4  ;;  %s64_s20 = sadd.s32 1, %s3185_s14 }
   0x8   : > { %p71_p1 = scmp.ne.s32.totalorder %s3185_s14, %s3181_s13  ;;  %p72_p2 = scmp.eq.s32.totalorder %s3197_s17, 0 }
   0x9   : > { %s3684_s19 = smov (%p29_p0, %s28_s19), 0  ;;  %p77_p4 = scmp.ne.s32.totalorder %s3181_s13, %s3177_s12 }
   0xa   : > { %p3260_p3 = por %p72_p2, %p71_p1  ;;  %s61_s22 = ssub.s32 %s3193_s16, %s3684_s19 }
   0xb   : > { %p78_p5 = scmp.eq.s32.totalorder %s2344_s18, 0  ;;  %p62_p6 = scmp.eq.s32.totalorder %s61_s22, 0 }
   0xc   : > { %p2643_p8 = scmp.lt.s32.totalorder %s3197_s17, 4  ;;  %s3276_s25 = sand.u32 1, %s3185_s14  }
   0xd   : > { %p3267_p7 = por %p78_p5, %p77_p4  ;;  %s2628_s26 = sshll.u32 %s3193_s16, 8 }
   0xe   : > { %s3273_s24 = scalar_select %p62_p6, %s3185_s14, %s64_s20  }
   0xf   : > { %s2349_s27 = sshll.u32 %s3276_s25, 11  ;;  %s173_s30 = scalar_lea.hbm %s3671_s1, %s2628_s26 }
  0x10   : > { %s167_s4 = scalar_lea.vmem [#allocation2], %s2349_s27  ;;  %p3285_p9 = pnand %p2643_p8, %p3260_p3 }
  0x11   : > { %s174_s5 = sshll.u32 %s167_s4, 4  ;;  %p2355_p10 = scmp.ge.s32.totalorder %s3197_s17, 1  ;;  %s175_s5 = int_to_ptr.vmem [resolvable:$true] %s174_s5 }
  0x12   : > { %s164_s7 = scalar_lea.sflag [#allocation3], %s3276_s25  ;;  %p3089_p11 = pneg %p3285_p9 }
  0x13   : > { %s3100_s8 = scalar_lea.vmem %s175_s5, 32768  ;;  %s3199_s9 = smov [#allocation2]  }
  0x14   : > { %p3101_p12 = scmp.ne.s32.totalorder %s175_s5, %s3100_s8  ;;  %s3105_s10 = sshll.u32 %s3199_s9, 4  ;;  %s3106_s10 = int_to_ptr.vmem [resolvable:$false] %s3105_s10 }
  0x15   : > { %s3107_s11 = scalar_lea.vmem %s3106_s10, 65536  ;;  %p3108_p1 = scmp.lt.s32.totalorder %s175_s5, %s3106_s10 }
  0x16   : > { %p3103_p13 = pnand %p3101_p12, %p3089_p11  ;;  %p3109_p2 = scmp.lt.s32.totalorder %s3107_s11, %s3100_s8 }
  0x18   : > { %p3104_p0 = pneg %p3103_p13  ;;  %p3110_p3 = por %p3109_p2, %p3108_p1 }
  0x1a   : > { %p3111_p4 = pnand %p3110_p3, %p3104_p0 }
  0x1c   : > { %3114 = shalt.err (!%p3111_p4)
}
  0x1d   : > { %s3200_s12 = smov 1024   ;;  %s3201_s18 = smov 256  }
  0x1e   : > { %s3202_s20 = smov 16   ;;  %p201_p5 = scmp.lt.s32.totalorder %s3197_s17, 5 }
  0x1f   : > { %2639 = dma.hbm_to_vmem [thread:$0]  (!%p3285_p9), %s173_s30, 32768, %s175_s5, %s164_s7, %s3200_s12, %s3201_s18, %s3202_s20  }
  0x20   : > { %s2352_s21 = sshll.u32 %s3276_s25, 2  ;;  %s2629_s22 = sshll.u32 %s3193_s16, 6 }
  0x21   : > { %p3303_p6 = pnand %p2355_p10, %p201_p5  ;;  %s194_s29 = scalar_lea.hbm %s3672_s2, %s2629_s22 }
  0x22   : > { %s188_s4 = scalar_lea.vmem [#allocation4], %s2352_s21  ;;  %s185_s9 = scalar_lea.sflag [#allocation5], %s3276_s25 }
  0x23   : > { %s196_s8 = sshll.u32 %s188_s4, 4  ;;  %s3203_s30 = smov [#allocation4]   ;;  %s197_s8 = int_to_ptr.vmem [resolvable:$true] %s196_s8 }
  0x24   : > { %s3128_s10 = scalar_lea.vmem %s197_s8, 64  ;;  %s3133_s5 = sshll.u32 %s3203_s30, 4  ;;  %s3134_s5 = int_to_ptr.vmem [resolvable:$false] %s3133_s5 }
  0x25   : > { %p3129_p8 = scmp.ne.s32.totalorder %s197_s8, %s3128_s10  ;;  %s3135_s7 = scalar_lea.vmem %s3134_s5, 128 }
  0x26   : > { %p3136_p10 = scmp.lt.s32.totalorder %s197_s8, %s3134_s5  ;;  %p3137_p0 = scmp.lt.s32.totalorder %s3135_s7, %s3128_s10 }
  0x27   : > { %p3131_p12 = pnand %p3129_p8, %p3089_p11 }
  0x28   : > { %p3138_p1 = por %p3137_p0, %p3136_p10 }
  0x29   : > { %p3132_p13 = pneg %p3131_p12 }
  0x2b   : > { %p3139_p2 = pnand %p3138_p1, %p3132_p13 }
  0x2d   : > { %3142 = shalt.err (!%p3139_p2)
}
  0x2e   : > { %2642 = dma.hbm_to_vmem [thread:$0]  (!%p3285_p9), %s194_s29, 64, %s197_s8, %s185_s9  }
  0x2f   : > { %205 = sbr.rel (%p3303_p6) target bundleno = 517 (0x205), region = 32  ;;  %s207_s25 = sand.u32 (!%p3303_p6), 1, %s3181_s13  }
  0x30   : > { %s2356_s11 = sshll.u32 (!%p3303_p6), %s207_s25, 11  ;;  %s208_s12 = scalar_lea.sflag (!%p3303_p6), [#allocation3], %s207_s25 }
  0x31   : > { %s3319_s18 = scalar_lea.vmem (!%p3303_p6), [#allocation2], %s2356_s11 }
  0x34   : > { %3168 = dma.done.wait (%p3267_p7), %s208_s12, 32768  }
  0x35   : > { %3170 = vsyncadd (%p3267_p7), %s208_s12, 4294934528  ;;  %s2357_s20 = sshll.u32 %s207_s25, 2  ;;  %s217_s21 = scalar_lea.sflag [#allocation5], %s207_s25 }
  0x36   : > { %s3325_s6 = scalar_lea.vmem [#allocation4], %s2357_s20 }
  0x37   : > { %3172 = dma.done.wait (%p3267_p7), %s217_s21, 64  }
  0x38   : > { %3174 = vsyncadd (%p3267_p7), %s217_s21, 4294967232  ;;  %v2695_v0 = vld [vmem:[%s3319_s18 + $0xe4] ss:$16 sps:$4 sm:$0xff]   ;;  %v2699_v2 = vld [vmem:[%s3319_s18 + $0xe0] ss:$16 sps:$4 sm:$0xff]   ;;  %s2358_s9 = sshll.u32 %s3189_s15, 2 }
  0x39   : > { %v2697_v1 = vld [vmem:[%s3319_s18 + $0x2e4] ss:$16 sps:$4 sm:$0xff]   ;;  %1864 = vmatprep.subr.bf16.mxu0 %v2695_v0  ;;  %v2700_v3 = vld [vmem:[%s3319_s18 + $0x2e0] ss:$16 sps:$4 sm:$0xff]   ;;  %v275_v48 = vld [vmem:[%s3670_s0 + $0x8] sm:$0xff]  ;;  %p267_p7 = scmp.lt.s32.totalorder %s2358_s9, 15 }
  0x3a   : > { %1905 = vmatprep.subr.bf16.mxu1 %v2697_v1  ;;  %v2701_v4 = vld [vmem:[%s3319_s18 + $0xc4] ss:$16 sps:$4 sm:$0xff]   ;;  %1865 = vmatpush1.bf16.msra.mxu0 %v2699_v2  ;;  %v2705_v6 = vld [vmem:[%s3319_s18 + $0xc0] ss:$16 sps:$4 sm:$0xff]   ;;  %v3387_v51 = vcombine.high %v275_v48, %v275_v48 }
  0x3b   : > { %1906 = vmatpush1.bf16.msra.mxu1 %v2700_v3  ;;  %v2703_v5 = vld [vmem:[%s3319_s18 + $0x2c4] ss:$16 sps:$4 sm:$0xff]   ;;  %1866 = vmatprep.subr.bf16.mxu0 %v2701_v4  ;;  %v2706_v7 = vld [vmem:[%s3319_s18 + $0x2c0] ss:$16 sps:$4 sm:$0xff]   ;;  %s3686_s9 = smov (!%p267_p7, %s2358_s9), 15 }
  0x3c   : > { %1907 = vmatprep.subr.bf16.mxu1 %v2703_v5  ;;  %v2707_v8 = vld [vmem:[%s3319_s18 + $0xa4] ss:$16 sps:$4 sm:$0xff]   ;;  %v2711_v10 = vld [vmem:[%s3319_s18 + $0xa0] ss:$16 sps:$4 sm:$0xff]   ;;  %1937 = vmatprep.mubr.bf16.mxu1 %v3387_v51  ;;  %s2359_s10 = sshll.u32 %s3686_s9, 2 }
  0x3d   : > { %v2709_v9 = vld [vmem:[%s3319_s18 + $0x2a4] ss:$16 sps:$4 sm:$0xff]   ;;  %v2712_v11 = vld [vmem:[%s3319_s18 + $0x2a0] ss:$16 sps:$4 sm:$0xff]   ;;  %s3648_s5 = scalar_lea.vmem %s3673_s3, %s2359_s10 }
  0x3e   : > { %1867 = vmatpush1.bf16.msra.mxu0 %v2705_v6  ;;  %v2713_v12 = vld [vmem:[%s3319_s18 + $0x84] ss:$16 sps:$4 sm:$0xff]   ;;  %v2717_v14 = vld [vmem:[%s3319_s18 + $0x80] ss:$16 sps:$4 sm:$0xff]  }
  0x3f   : > { %1908 = vmatpush1.bf16.msra.mxu1 %v2706_v7  ;;  %1868 = vmatprep.subr.bf16.mxu0 %v2707_v8  ;;  %v2715_v13 = vld [vmem:[%s3319_s18 + $0x284] ss:$16 sps:$4 sm:$0xff]   ;;  %v2718_v15 = vld [vmem:[%s3319_s18 + $0x280] ss:$16 sps:$4 sm:$0xff]   ;;  %v3411_v7 = vcombine.low %v275_v48, %v275_v48 }
  0x40   : > { %1909 = vmatprep.subr.bf16.mxu1 %v2709_v9  ;;  %v2719_v16 = vld [vmem:[%s3319_s18 + $0x64] ss:$16 sps:$4 sm:$0xff]   ;;  %v2723_v18 = vld [vmem:[%s3319_s18 + $0x60] ss:$16 sps:$4 sm:$0xff]  }
  0x41   : > { %v2721_v17 = vld [vmem:[%s3319_s18 + $0x264] ss:$16 sps:$4 sm:$0xff]   ;;  %v2724_v19 = vld [vmem:[%s3319_s18 + $0x260] ss:$16 sps:$4 sm:$0xff]  }
  0x42   : > { %1869 = vmatpush1.bf16.msra.mxu0 %v2711_v10  ;;  %v2725_v20 = vld [vmem:[%s3319_s18 + $0x44] ss:$16 sps:$4 sm:$0xff]   ;;  %v2729_v22 = vld [vmem:[%s3319_s18 + $0x40] ss:$16 sps:$4 sm:$0xff]  }
  0x43   : > { %1910 = vmatpush1.bf16.msra.mxu1 %v2712_v11  ;;  %1870 = vmatprep.subr.bf16.mxu0 %v2713_v12  ;;  %v2727_v21 = vld [vmem:[%s3319_s18 + $0x244] ss:$16 sps:$4 sm:$0xff]   ;;  %v2730_v23 = vld [vmem:[%s3319_s18 + $0x240] ss:$16 sps:$4 sm:$0xff]  }
  0x44   : > { %1911 = vmatprep.subr.bf16.mxu1 %v2715_v13  ;;  %v2731_v24 = vld [vmem:[%s3319_s18 + $0x24] ss:$16 sps:$4 sm:$0xff]   ;;  %v2735_v26 = vld [vmem:[%s3319_s18 + $0x20] ss:$16 sps:$4 sm:$0xff]  }
  0x45   : > { %v2733_v25 = vld [vmem:[%s3319_s18 + $0x224] ss:$16 sps:$4 sm:$0xff]   ;;  %v2736_v27 = vld [vmem:[%s3319_s18 + $0x220] ss:$16 sps:$4 sm:$0xff]  }
  0x46   : > { %1871 = vmatpush1.bf16.msra.mxu0 %v2717_v14  ;;  %v2737_v28 = vld [vmem:[%s3319_s18 + $0x4] ss:$16 sps:$4 sm:$0xff]   ;;  %v2741_v30 = vld [vmem:[%s3319_s18] ss:$16 sps:$4 sm:$0xff]  }
  0x47   : > { %1912 = vmatpush1.bf16.msra.mxu1 %v2718_v15  ;;  %1872 = vmatprep.subr.bf16.mxu0 %v2719_v16  ;;  %v2739_v29 = vld [vmem:[%s3319_s18 + $0x204] ss:$16 sps:$4 sm:$0xff]   ;;  %v2742_v31 = vld [vmem:[%s3319_s18 + $0x200] ss:$16 sps:$4 sm:$0xff]  }
  0x48   : > { %1913 = vmatprep.subr.bf16.mxu1 %v2721_v17  ;;  %v2743_v32 = vld [vmem:[%s3319_s18 + $0x1e4] ss:$16 sps:$4 sm:$0xff]   ;;  %v2747_v34 = vld [vmem:[%s3319_s18 + $0x1e0] ss:$16 sps:$4 sm:$0xff]  }
  0x49   : > { %v2745_v33 = vld [vmem:[%s3319_s18 + $0x3e4] ss:$16 sps:$4 sm:$0xff]   ;;  %v2748_v35 = vld [vmem:[%s3319_s18 + $0x3e0] ss:$16 sps:$4 sm:$0xff]  }
  0x4a   : > { %1873 = vmatpush1.bf16.msra.mxu0 %v2723_v18  ;;  %v2749_v36 = vld [vmem:[%s3319_s18 + $0x1c4] ss:$16 sps:$4 sm:$0xff]   ;;  %v2753_v38 = vld [vmem:[%s3319_s18 + $0x1c0] ss:$16 sps:$4 sm:$0xff]  }
  0x4b   : > { %1914 = vmatpush1.bf16.msra.mxu1 %v2724_v19  ;;  %1874 = vmatprep.subr.bf16.mxu0 %v2725_v20  ;;  %v2751_v37 = vld [vmem:[%s3319_s18 + $0x3c4] ss:$16 sps:$4 sm:$0xff]   ;;  %v2754_v39 = vld [vmem:[%s3319_s18 + $0x3c0] ss:$16 sps:$4 sm:$0xff]  }
  0x4c   : > { %1915 = vmatprep.subr.bf16.mxu1 %v2727_v21  ;;  %v2755_v40 = vld [vmem:[%s3319_s18 + $0x1a4] ss:$16 sps:$4 sm:$0xff]   ;;  %v2759_v42 = vld [vmem:[%s3319_s18 + $0x1a0] ss:$16 sps:$4 sm:$0xff]  }
  0x4d   : > { %v2757_v41 = vld [vmem:[%s3319_s18 + $0x3a4] ss:$16 sps:$4 sm:$0xff]   ;;  %v2760_v43 = vld [vmem:[%s3319_s18 + $0x3a0] ss:$16 sps:$4 sm:$0xff]  }
  0x4e   : > { %1875 = vmatpush1.bf16.msra.mxu0 %v2729_v22  ;;  %v2761_v44 = vld [vmem:[%s3319_s18 + $0x184] ss:$16 sps:$4 sm:$0xff]   ;;  %v2765_v49 = vld [vmem:[%s3319_s18 + $0x180] ss:$16 sps:$4 sm:$0xff]  }
  0x4f   : > { %1916 = vmatpush1.bf16.msra.mxu1 %v2730_v23  ;;  %1876 = vmatprep.subr.bf16.mxu0 %v2731_v24  ;;  %v2763_v45 = vld [vmem:[%s3319_s18 + $0x384] ss:$16 sps:$4 sm:$0xff]   ;;  %v2766_v50 = vld [vmem:[%s3319_s18 + $0x380] ss:$16 sps:$4 sm:$0xff]  }
  0x50   : > { %1917 = vmatprep.subr.bf16.mxu1 %v2733_v25  ;;  %v274_v46 = vld [vmem:[%s3670_s0] sm:$0xff] }
  0x51   : > { %v3380_v47 = vcombine.high %v274_v46, %v274_v46  ;;  %v2767_v52 = vld [vmem:[%s3319_s18 + $0x164] ss:$16 sps:$4 sm:$0xff]   ;;  %v2771_v54 = vld [vmem:[%s3319_s18 + $0x160] ss:$16 sps:$4 sm:$0xff]   ;;  %v3409_v6 = vcombine.low %v274_v46, %v274_v46 }
  0x52   : > { %1877 = vmatpush1.bf16.msra.mxu0 %v2735_v26  ;;  %v2769_v53 = vld [vmem:[%s3319_s18 + $0x364] ss:$16 sps:$4 sm:$0xff]   ;;  %v2772_v55 = vld [vmem:[%s3319_s18 + $0x360] ss:$16 sps:$4 sm:$0xff]  }
  0x53   : > { %1918 = vmatpush1.bf16.msra.mxu1 %v2736_v27  ;;  %1878 = vmatprep.subr.bf16.mxu0 %v2737_v28  ;;  %v2773_v56 = vld [vmem:[%s3319_s18 + $0x144] ss:$16 sps:$4 sm:$0xff]   ;;  %v2777_v58 = vld [vmem:[%s3319_s18 + $0x140] ss:$16 sps:$4 sm:$0xff]  }
  0x54   : > { %1919 = vmatprep.subr.bf16.mxu1 %v2739_v29  ;;  %1896 = vmatprep.mubr.bf16.mxu0 %v3380_v47  ;;  %v2775_v57 = vld [vmem:[%s3319_s18 + $0x344] ss:$16 sps:$4 sm:$0xff]   ;;  %v2778_v59 = vld [vmem:[%s3319_s18 + $0x340] ss:$16 sps:$4 sm:$0xff]  }
  0x55   : > { %v2779_v60 = vld [vmem:[%s3319_s18 + $0x124] ss:$16 sps:$4 sm:$0xff]   ;;  %v2783_v62 = vld [vmem:[%s3319_s18 + $0x120] ss:$16 sps:$4 sm:$0xff]  }
  0x56   : > { %1879 = vmatpush1.bf16.msra.mxu0 %v2741_v30  ;;  %v2781_v61 = vld [vmem:[%s3319_s18 + $0x324] ss:$16 sps:$4 sm:$0xff]   ;;  %v2784_v63 = vld [vmem:[%s3319_s18 + $0x320] ss:$16 sps:$4 sm:$0xff]  }
  0x57   : > { %1920 = vmatpush1.bf16.msra.mxu1 %v2742_v31  ;;  %1880 = vmatprep.subr.bf16.mxu0 %v2743_v32  ;;  %v2785_v0 = vld [vmem:[%s3319_s18 + $0x104] ss:$16 sps:$4 sm:$0xff]   ;;  %v2789_v2 = vld [vmem:[%s3319_s18 + $0x100] ss:$16 sps:$4 sm:$0xff]  }
  0x58   : > { %1921 = vmatprep.subr.bf16.mxu1 %v2745_v33  ;;  %v2787_v1 = vld [vmem:[%s3319_s18 + $0x304] ss:$16 sps:$4 sm:$0xff]   ;;  %v2790_v3 = vld [vmem:[%s3319_s18 + $0x300] ss:$16 sps:$4 sm:$0xff]   ;;  %v3447_v33 = vld [vmem:[%s3670_s0 + $0x18] sm:$0xff] }
  0x59   : > { %v2797_v4 = vld [vmem:[%s3319_s18 + $0x4e4] ss:$16 sps:$4 sm:$0xff]   ;;  %v2795_v8 = vld [vmem:[%s3319_s18 + $0x4e0] ss:$16 sps:$4 sm:$0xff]  }
  0x5a   : > { %1881 = vmatpush2.bf16.msra.mxu0 %v2747_v34  ;;  %v2800_v5 = vld [vmem:[%s3319_s18 + $0x6e4] ss:$16 sps:$4 sm:$0xff]   ;;  %v2798_v9 = vld [vmem:[%s3319_s18 + $0x6e0] ss:$16 sps:$4 sm:$0xff]  }
  0x5b   : > { %1922 = vmatpush2.bf16.msra.mxu1 %v2748_v35  ;;  %1882 = vmatprep.subr.bf16.mxu0 %v2749_v36  ;;  %v2803_v10 = vld [vmem:[%s3319_s18 + $0x4c4] ss:$16 sps:$4 sm:$0xff]   ;;  %v2801_v12 = vld [vmem:[%s3319_s18 + $0x4c0] ss:$16 sps:$4 sm:$0xff]  }
  0x5c   : > { %1923 = vmatprep.subr.bf16.mxu1 %v2751_v37  ;;  %v2806_v11 = vld [vmem:[%s3319_s18 + $0x6c4] ss:$16 sps:$4 sm:$0xff]   ;;  %v2804_v13 = vld [vmem:[%s3319_s18 + $0x6c0] ss:$16 sps:$4 sm:$0xff]   ;;  %v3457_v37 = vcombine.high %v3447_v33, %v3447_v33 }
  0x5d   : > { %v2809_v14 = vld [vmem:[%s3319_s18 + $0x4a4] ss:$16 sps:$4 sm:$0xff]   ;;  %v2807_v16 = vld [vmem:[%s3319_s18 + $0x4a0] ss:$16 sps:$4 sm:$0xff]  }
  0x5e   : > { %1883 = vmatpush2.bf16.msra.mxu0 %v2753_v38  ;;  %v2812_v15 = vld [vmem:[%s3319_s18 + $0x6a4] ss:$16 sps:$4 sm:$0xff]   ;;  %v2810_v17 = vld [vmem:[%s3319_s18 + $0x6a0] ss:$16 sps:$4 sm:$0xff]  }
  0x5f   : > { %1924 = vmatpush2.bf16.msra.mxu1 %v2754_v39  ;;  %1884 = vmatprep.subr.bf16.mxu0 %v2755_v40  ;;  %v2815_v18 = vld [vmem:[%s3319_s18 + $0x484] ss:$16 sps:$4 sm:$0xff]   ;;  %v2813_v20 = vld [vmem:[%s3319_s18 + $0x480] ss:$16 sps:$4 sm:$0xff]  }
  0x60   : > { %1925 = vmatprep.subr.bf16.mxu1 %v2757_v41  ;;  %v2818_v19 = vld [vmem:[%s3319_s18 + $0x684] ss:$16 sps:$4 sm:$0xff]   ;;  %v2816_v21 = vld [vmem:[%s3319_s18 + $0x680] ss:$16 sps:$4 sm:$0xff]  }
  0x61   : > { %v2821_v22 = vld [vmem:[%s3319_s18 + $0x464] ss:$16 sps:$4 sm:$0xff]   ;;  %v2819_v24 = vld [vmem:[%s3319_s18 + $0x460] ss:$16 sps:$4 sm:$0xff]  }
  0x62   : > { %1885 = vmatpush2.bf16.msra.mxu0 %v2759_v42  ;;  %v2824_v23 = vld [vmem:[%s3319_s18 + $0x664] ss:$16 sps:$4 sm:$0xff]   ;;  %v2822_v25 = vld [vmem:[%s3319_s18 + $0x660] ss:$16 sps:$4 sm:$0xff]  }
  0x63   : > { %1926 = vmatpush2.bf16.msra.mxu1 %v2760_v43  ;;  %1886 = vmatprep.subr.bf16.mxu0 %v2761_v44  ;;  %v2827_v26 = vld [vmem:[%s3319_s18 + $0x444] ss:$16 sps:$4 sm:$0xff]   ;;  %v2825_v28 = vld [vmem:[%s3319_s18 + $0x440] ss:$16 sps:$4 sm:$0xff]  }
  0x64   : > { %1927 = vmatprep.subr.bf16.mxu1 %v2763_v45  ;;  %v2830_v27 = vld [vmem:[%s3319_s18 + $0x644] ss:$16 sps:$4 sm:$0xff]   ;;  %v2828_v29 = vld [vmem:[%s3319_s18 + $0x640] ss:$16 sps:$4 sm:$0xff]  }
  0x65   : > { %v2833_v30 = vld [vmem:[%s3319_s18 + $0x424] ss:$16 sps:$4 sm:$0xff]   ;;  %v2831_v34 = vld [vmem:[%s3319_s18 + $0x420] ss:$16 sps:$4 sm:$0xff]  }
  0x66   : > { %1887 = vmatpush2.bf16.msra.mxu0 %v2765_v49  ;;  %v2836_v31 = vld [vmem:[%s3319_s18 + $0x624] ss:$16 sps:$4 sm:$0xff]   ;;  %v2834_v35 = vld [vmem:[%s3319_s18 + $0x620] ss:$16 sps:$4 sm:$0xff]  }
  0x67   : > { %1928 = vmatpush2.bf16.msra.mxu1 %v2766_v50  ;;  %1888 = vmatprep.subr.bf16.mxu0 %v2767_v52  ;;  %v3442_v32 = vld [vmem:[%s3670_s0 + $0x10] sm:$0xff] }
  0x68   : > { %1929 = vmatprep.subr.bf16.mxu1 %v2769_v53  ;;  %v3453_v36 = vcombine.high %v3442_v32, %v3442_v32  ;;  %v2839_v38 = vld [vmem:[%s3319_s18 + $0x404] ss:$16 sps:$4 sm:$0xff]   ;;  %v2837_v40 = vld [vmem:[%s3319_s18 + $0x400] ss:$16 sps:$4 sm:$0xff]  }
  0x69   : > { %v2842_v39 = vld [vmem:[%s3319_s18 + $0x604] ss:$16 sps:$4 sm:$0xff]   ;;  %v2840_v41 = vld [vmem:[%s3319_s18 + $0x600] ss:$16 sps:$4 sm:$0xff]  }
  0x6a   : > { %1889 = vmatpush2.bf16.msra.mxu0 %v2771_v54  ;;  %v2845_v42 = vld [vmem:[%s3319_s18 + $0x5e4] ss:$16 sps:$4 sm:$0xff]   ;;  %v2843_v44 = vld [vmem:[%s3319_s18 + $0x5e0] ss:$16 sps:$4 sm:$0xff]  }
  0x6b   : > { %1930 = vmatpush2.bf16.msra.mxu1 %v2772_v55  ;;  %1890 = vmatprep.subr.bf16.mxu0 %v2773_v56  ;;  %v2848_v43 = vld [vmem:[%s3319_s18 + $0x7e4] ss:$16 sps:$4 sm:$0xff]   ;;  %v2846_v45 = vld [vmem:[%s3319_s18 + $0x7e0] ss:$16 sps:$4 sm:$0xff]  }
  0x6c   : > { %1931 = vmatprep.subr.bf16.mxu1 %v2775_v57  ;;  %v2851_v46 = vld [vmem:[%s3319_s18 + $0x5c4] ss:$16 sps:$4 sm:$0xff]   ;;  %v2849_v49 = vld [vmem:[%s3319_s18 + $0x5c0] ss:$16 sps:$4 sm:$0xff]  }
  0x6d   : > { %v2854_v48 = vld [vmem:[%s3319_s18 + $0x7c4] ss:$16 sps:$4 sm:$0xff]   ;;  %v2852_v50 = vld [vmem:[%s3319_s18 + $0x7c0] ss:$16 sps:$4 sm:$0xff]  }
  0x6e   : > { %1891 = vmatpush2.bf16.msra.mxu0 %v2777_v58  ;;  %v2857_v52 = vld [vmem:[%s3319_s18 + $0x5a4] ss:$16 sps:$4 sm:$0xff]   ;;  %v2855_v54 = vld [vmem:[%s3319_s18 + $0x5a0] ss:$16 sps:$4 sm:$0xff]  }
  0x6f   : > { %1932 = vmatpush2.bf16.msra.mxu1 %v2778_v59  ;;  %1892 = vmatprep.subr.bf16.mxu0 %v2779_v60  ;;  %v2860_v53 = vld [vmem:[%s3319_s18 + $0x7a4] ss:$16 sps:$4 sm:$0xff]   ;;  %v2858_v55 = vld [vmem:[%s3319_s18 + $0x7a0] ss:$16 sps:$4 sm:$0xff]  }
  0x70   : > { %1933 = vmatprep.subr.bf16.mxu1 %v2781_v61  ;;  %v2863_v56 = vld [vmem:[%s3319_s18 + $0x584] ss:$16 sps:$4 sm:$0xff]   ;;  %v2861_v58 = vld [vmem:[%s3319_s18 + $0x580] ss:$16 sps:$4 sm:$0xff]  }
  0x71   : > { %v2866_v57 = vld [vmem:[%s3319_s18 + $0x784] ss:$16 sps:$4 sm:$0xff]   ;;  %v2864_v59 = vld [vmem:[%s3319_s18 + $0x780] ss:$16 sps:$4 sm:$0xff]  }
  0x72   : > { %1893 = vmatpush2.bf16.msra.mxu0 %v2783_v62  ;;  %v2869_v60 = vld [vmem:[%s3319_s18 + $0x564] ss:$16 sps:$4 sm:$0xff]   ;;  %v2867_v62 = vld [vmem:[%s3319_s18 + $0x560] ss:$16 sps:$4 sm:$0xff]  }
  0x73   : > { %1934 = vmatpush2.bf16.msra.mxu1 %v2784_v63  ;;  %1894 = vmatprep.subr.bf16.mxu0 %v2785_v0  ;;  %v2872_v61 = vld [vmem:[%s3319_s18 + $0x764] ss:$16 sps:$4 sm:$0xff]   ;;  %v2870_v63 = vld [vmem:[%s3319_s18 + $0x760] ss:$16 sps:$4 sm:$0xff]  }
  0x74   : > { %1935 = vmatprep.subr.bf16.mxu1 %v2787_v1  ;;  %v2875_v0 = vld [vmem:[%s3319_s18 + $0x544] ss:$16 sps:$4 sm:$0xff]  }
  0x75   : > { %v2878_v1 = vld [vmem:[%s3319_s18 + $0x744] ss:$16 sps:$4 sm:$0xff]  }
  0x76   : > { %1895 = vmatpush2.bf16.msra.mxu0 %v2789_v2  ;;  %v2873_v2 = vld [vmem:[%s3319_s18 + $0x540] ss:$16 sps:$4 sm:$0xff]  }
  0x77   : > { %1936 = vmatpush2.bf16.msra.mxu1 %v2790_v3  ;;  %1946 = vmatprep.subr.bf16.mxu0 %v2797_v4  ;;  %v2876_v3 = vld [vmem:[%s3319_s18 + $0x740] ss:$16 sps:$4 sm:$0xff]   ;;  %v2881_v4 = vld [vmem:[%s3319_s18 + $0x524] ss:$16 sps:$4 sm:$0xff]  }
  0x78   : > { %1987 = vmatprep.subr.bf16.mxu1 %v2800_v5  ;;  %v2884_v5 = vld [vmem:[%s3319_s18 + $0x724] ss:$16 sps:$4 sm:$0xff]  }
  0x79   : > { %1897 = vmatmul.mubr.bf16.vlgmr.msra.gmra.mxu0 %v3409_v6 }
  0x7a   : > { %1938 = vmatmul.mubr.bf16.vlgmr.msra.gmra.mxu1 %v3411_v7  ;;  %1947 = vmatpush1.bf16.msra.mxu0 %v2795_v8  ;;  %v2879_v8 = vld [vmem:[%s3319_s18 + $0x520] ss:$16 sps:$4 sm:$0xff]  }
  0x7b   : > { %1988 = vmatpush1.bf16.msra.mxu1 %v2798_v9  ;;  %1948 = vmatprep.subr.bf16.mxu0 %v2803_v10  ;;  %v2882_v9 = vld [vmem:[%s3319_s18 + $0x720] ss:$16 sps:$4 sm:$0xff]   ;;  %v2887_v10 = vld [vmem:[%s3319_s18 + $0x504] ss:$16 sps:$4 sm:$0xff]  }
  0x7c   : > { %1989 = vmatprep.subr.bf16.mxu1 %v2806_v11  ;;  %1978 = vmatprep.mubr.bf16.mxu0 %v3453_v36  ;;  %v2890_v11 = vld [vmem:[%s3319_s18 + $0x704] ss:$16 sps:$4 sm:$0xff]  }
  0x7d   : > { %2019 = vmatprep.mubr.bf16.mxu1 %v3457_v37 }
  0x7e   : > { %1949 = vmatpush1.bf16.msra.mxu0 %v2801_v12  ;;  %v2885_v12 = vld [vmem:[%s3319_s18 + $0x500] ss:$16 sps:$4 sm:$0xff]  }
  0x7f   : > { %1990 = vmatpush1.bf16.msra.mxu1 %v2804_v13  ;;  %1950 = vmatprep.subr.bf16.mxu0 %v2809_v14  ;;  %v2888_v13 = vld [vmem:[%s3319_s18 + $0x700] ss:$16 sps:$4 sm:$0xff]   ;;  %v2897_v14 = vld [vmem:[%s3319_s18 + $0xec] ss:$16 sps:$4 sm:$0xff]  }
  0x80   : > { %1991 = vmatprep.subr.bf16.mxu1 %v2812_v15  ;;  %v2900_v15 = vld [vmem:[%s3319_s18 + $0x2ec] ss:$16 sps:$4 sm:$0xff]  }
  0x82   : > { %1951 = vmatpush1.bf16.msra.mxu0 %v2807_v16  ;;  %v3501_v16 = vcombine.low %v3442_v32, %v3442_v32  ;;  %v2919_v32 = vld [vmem:[%s3319_s18 + $0x68] ss:$16 sps:$4 sm:$0xff]  }
  0x83   : > { %1992 = vmatpush1.bf16.msra.mxu1 %v2810_v17  ;;  %1952 = vmatprep.subr.bf16.mxu0 %v2815_v18  ;;  %v3505_v17 = vcombine.low %v3447_v33, %v3447_v33  ;;  %v2895_v18 = vld [vmem:[%s3319_s18 + $0xe8] ss:$16 sps:$4 sm:$0xff]  }
  0x84   : > { %1993 = vmatprep.subr.bf16.mxu1 %v2818_v19  ;;  %v2898_v19 = vld [vmem:[%s3319_s18 + $0x2e8] ss:$16 sps:$4 sm:$0xff]  }
  0x85   : > { %v2922_v33 = vld [vmem:[%s3319_s18 + $0x268] ss:$16 sps:$4 sm:$0xff]  }
  0x86   : > { %1953 = vmatpush1.bf16.msra.mxu0 %v2813_v20  ;;  %v2903_v20 = vld [vmem:[%s3319_s18 + $0xcc] ss:$16 sps:$4 sm:$0xff]  }
  0x87   : > { %1994 = vmatpush1.bf16.msra.mxu1 %v2816_v21  ;;  %1954 = vmatprep.subr.bf16.mxu0 %v2821_v22  ;;  %v2906_v21 = vld [vmem:[%s3319_s18 + $0x2cc] ss:$16 sps:$4 sm:$0xff]   ;;  %v2901_v22 = vld [vmem:[%s3319_s18 + $0xc8] ss:$16 sps:$4 sm:$0xff]  }
  0x88   : > { %1995 = vmatprep.subr.bf16.mxu1 %v2824_v23  ;;  %v2904_v23 = vld [vmem:[%s3319_s18 + $0x2c8] ss:$16 sps:$4 sm:$0xff]  }
  0x8a   : > { %1955 = vmatpush1.bf16.msra.mxu0 %v2819_v24  ;;  %v2909_v24 = vld [vmem:[%s3319_s18 + $0xac] ss:$16 sps:$4 sm:$0xff]  }
  0x8b   : > { %1996 = vmatpush1.bf16.msra.mxu1 %v2822_v25  ;;  %1956 = vmatprep.subr.bf16.mxu0 %v2827_v26  ;;  %v2912_v25 = vld [vmem:[%s3319_s18 + $0x2ac] ss:$16 sps:$4 sm:$0xff]   ;;  %v2907_v26 = vld [vmem:[%s3319_s18 + $0xa8] ss:$16 sps:$4 sm:$0xff]  }
  0x8c   : > { %1997 = vmatprep.subr.bf16.mxu1 %v2830_v27  ;;  %v2910_v27 = vld [vmem:[%s3319_s18 + $0x2a8] ss:$16 sps:$4 sm:$0xff]  }
  0x8e   : > { %1957 = vmatpush1.bf16.msra.mxu0 %v2825_v28  ;;  %v2915_v28 = vld [vmem:[%s3319_s18 + $0x8c] ss:$16 sps:$4 sm:$0xff]  }
  0x8f   : > { %1998 = vmatpush1.bf16.msra.mxu1 %v2828_v29  ;;  %1958 = vmatprep.subr.bf16.mxu0 %v2833_v30  ;;  %v2918_v29 = vld [vmem:[%s3319_s18 + $0x28c] ss:$16 sps:$4 sm:$0xff]   ;;  %v2913_v30 = vld [vmem:[%s3319_s18 + $0x88] ss:$16 sps:$4 sm:$0xff]  }
  0x90   : > { %1999 = vmatprep.subr.bf16.mxu1 %v2836_v31  ;;  %v2916_v31 = vld [vmem:[%s3319_s18 + $0x288] ss:$16 sps:$4 sm:$0xff]  }
  0x92   : > { %1959 = vmatpush1.bf16.msra.mxu0 %v2831_v34  ;;  %v2927_v34 = vld [vmem:[%s3319_s18 + $0x4c] ss:$16 sps:$4 sm:$0xff]  }
  0x93   : > { %2000 = vmatpush1.bf16.msra.mxu1 %v2834_v35  ;;  %1960 = vmatprep.subr.bf16.mxu0 %v2839_v38  ;;  %v2930_v35 = vld [vmem:[%s3319_s18 + $0x24c] ss:$16 sps:$4 sm:$0xff]   ;;  %v2925_v38 = vld [vmem:[%s3319_s18 + $0x48] ss:$16 sps:$4 sm:$0xff]  }
  0x94   : > { %2001 = vmatprep.subr.bf16.mxu1 %v2842_v39  ;;  %v2928_v39 = vld [vmem:[%s3319_s18 + $0x248] ss:$16 sps:$4 sm:$0xff]  }
  0x96   : > { %1961 = vmatpush1.bf16.msra.mxu0 %v2837_v40  ;;  %v2933_v40 = vld [vmem:[%s3319_s18 + $0x2c] ss:$16 sps:$4 sm:$0xff]  }
  0x97   : > { %2002 = vmatpush1.bf16.msra.mxu1 %v2840_v41  ;;  %1962 = vmatprep.subr.bf16.mxu0 %v2845_v42  ;;  %v2936_v41 = vld [vmem:[%s3319_s18 + $0x22c] ss:$16 sps:$4 sm:$0xff]   ;;  %v2931_v42 = vld [vmem:[%s3319_s18 + $0x28] ss:$16 sps:$4 sm:$0xff]  }
  0x98   : > { %2003 = vmatprep.subr.bf16.mxu1 %v2848_v43  ;;  %v2934_v43 = vld [vmem:[%s3319_s18 + $0x228] ss:$16 sps:$4 sm:$0xff]  }
  0x9a   : > { %1963 = vmatpush2.bf16.msra.mxu0 %v2843_v44  ;;  %v2939_v44 = vld [vmem:[%s3319_s18 + $0xc] ss:$16 sps:$4 sm:$0xff]  }
  0x9b   : > { %2004 = vmatpush2.bf16.msra.mxu1 %v2846_v45  ;;  %1964 = vmatprep.subr.bf16.mxu0 %v2851_v46  ;;  %v2942_v45 = vld [vmem:[%s3319_s18 + $0x20c] ss:$16 sps:$4 sm:$0xff]   ;;  %v2937_v46 = vld [vmem:[%s3319_s18 + $0x8] ss:$16 sps:$4 sm:$0xff]  }
  0x9c   : > { %2005 = vmatprep.subr.bf16.mxu1 %v2854_v48  ;;  %v2940_v48 = vld [vmem:[%s3319_s18 + $0x208] ss:$16 sps:$4 sm:$0xff]  }
  0x9e   : > { %1965 = vmatpush2.bf16.msra.mxu0 %v2849_v49  ;;  %v2945_v49 = vld [vmem:[%s3319_s18 + $0x1ec] ss:$16 sps:$4 sm:$0xff]  }
  0x9f   : > { %2006 = vmatpush2.bf16.msra.mxu1 %v2852_v50  ;;  %1966 = vmatprep.subr.bf16.mxu0 %v2857_v52  ;;  %v2948_v50 = vld [vmem:[%s3319_s18 + $0x3ec] ss:$16 sps:$4 sm:$0xff]   ;;  %v2943_v52 = vld [vmem:[%s3319_s18 + $0x1e8] ss:$16 sps:$4 sm:$0xff]  }
  0xa0   : > { %2007 = vmatprep.subr.bf16.mxu1 %v2860_v53  ;;  %v2946_v53 = vld [vmem:[%s3319_s18 + $0x3e8] ss:$16 sps:$4 sm:$0xff]  }
  0xa2   : > { %1967 = vmatpush2.bf16.msra.mxu0 %v2855_v54  ;;  %v2951_v54 = vld [vmem:[%s3319_s18 + $0x1cc] ss:$16 sps:$4 sm:$0xff]  }
  0xa3   : > { %2008 = vmatpush2.bf16.msra.mxu1 %v2858_v55  ;;  %1968 = vmatprep.subr.bf16.mxu0 %v2863_v56  ;;  %v2954_v55 = vld [vmem:[%s3319_s18 + $0x3cc] ss:$16 sps:$4 sm:$0xff]   ;;  %v2949_v56 = vld [vmem:[%s3319_s18 + $0x1c8] ss:$16 sps:$4 sm:$0xff]  }
  0xa4   : > { %2009 = vmatprep.subr.bf16.mxu1 %v2866_v57  ;;  %v2952_v57 = vld [vmem:[%s3319_s18 + $0x3c8] ss:$16 sps:$4 sm:$0xff]  }
  0xa6   : > { %1969 = vmatpush2.bf16.msra.mxu0 %v2861_v58  ;;  %v2957_v58 = vld [vmem:[%s3319_s18 + $0x1ac] ss:$16 sps:$4 sm:$0xff]  }
  0xa7   : > { %2010 = vmatpush2.bf16.msra.mxu1 %v2864_v59  ;;  %1970 = vmatprep.subr.bf16.mxu0 %v2869_v60  ;;  %v2960_v59 = vld [vmem:[%s3319_s18 + $0x3ac] ss:$16 sps:$4 sm:$0xff]   ;;  %v2955_v60 = vld [vmem:[%s3319_s18 + $0x1a8] ss:$16 sps:$4 sm:$0xff]  }
  0xa8   : > { %2011 = vmatprep.subr.bf16.mxu1 %v2872_v61  ;;  %v2958_v61 = vld [vmem:[%s3319_s18 + $0x3a8] ss:$16 sps:$4 sm:$0xff]  }
  0xaa   : > { %1971 = vmatpush2.bf16.msra.mxu0 %v2867_v62  ;;  %v2963_v62 = vld [vmem:[%s3319_s18 + $0x18c] ss:$16 sps:$4 sm:$0xff]  }
  0xab   : > { %2012 = vmatpush2.bf16.msra.mxu1 %v2870_v63  ;;  %1972 = vmatprep.subr.bf16.mxu0 %v2875_v0  ;;  %v2966_v63 = vld [vmem:[%s3319_s18 + $0x38c] ss:$16 sps:$4 sm:$0xff]   ;;  %v2961_v0 = vld [vmem:[%s3319_s18 + $0x188] ss:$16 sps:$4 sm:$0xff]  }
  0xac   : > { %2013 = vmatprep.subr.bf16.mxu1 %v2878_v1  ;;  %v2964_v1 = vld [vmem:[%s3319_s18 + $0x388] ss:$16 sps:$4 sm:$0xff]  }
  0xae   : > { %1973 = vmatpush2.bf16.msra.mxu0 %v2873_v2  ;;  %v2969_v2 = vld [vmem:[%s3319_s18 + $0x16c] ss:$16 sps:$4 sm:$0xff]  }
  0xaf   : > { %2014 = vmatpush2.bf16.msra.mxu1 %v2876_v3  ;;  %1974 = vmatprep.subr.bf16.mxu0 %v2881_v4  ;;  %v2972_v3 = vld [vmem:[%s3319_s18 + $0x36c] ss:$16 sps:$4 sm:$0xff]   ;;  %v2967_v4 = vld [vmem:[%s3319_s18 + $0x168] ss:$16 sps:$4 sm:$0xff]  }
  0xb0   : > { %2015 = vmatprep.subr.bf16.mxu1 %v2884_v5  ;;  %v2970_v5 = vld [vmem:[%s3319_s18 + $0x368] ss:$16 sps:$4 sm:$0xff]  }
  0xb2   : > { %1975 = vmatpush2.bf16.msra.mxu0 %v2879_v8  ;;  %v2975_v8 = vld [vmem:[%s3319_s18 + $0x14c] ss:$16 sps:$4 sm:$0xff]  }
  0xb3   : > { %2016 = vmatpush2.bf16.msra.mxu1 %v2882_v9  ;;  %1976 = vmatprep.subr.bf16.mxu0 %v2887_v10  ;;  %v2978_v9 = vld [vmem:[%s3319_s18 + $0x34c] ss:$16 sps:$4 sm:$0xff]   ;;  %v2973_v10 = vld [vmem:[%s3319_s18 + $0x148] ss:$16 sps:$4 sm:$0xff]  }
  0xb4   : > { %2017 = vmatprep.subr.bf16.mxu1 %v2890_v11  ;;  %v2976_v11 = vld [vmem:[%s3319_s18 + $0x348] ss:$16 sps:$4 sm:$0xff]  }
  0xb6   : > { %1977 = vmatpush2.bf16.msra.mxu0 %v2885_v12  ;;  %v2981_v12 = vld [vmem:[%s3319_s18 + $0x12c] ss:$16 sps:$4 sm:$0xff]  }
  0xb7   : > { %2018 = vmatpush2.bf16.msra.mxu1 %v2888_v13  ;;  %2028 = vmatprep.subr.bf16.mxu0 %v2897_v14  ;;  %v2984_v13 = vld [vmem:[%s3319_s18 + $0x32c] ss:$16 sps:$4 sm:$0xff]   ;;  %v2979_v14 = vld [vmem:[%s3319_s18 + $0x128] ss:$16 sps:$4 sm:$0xff]  }
  0xb8   : > { %2069 = vmatprep.subr.bf16.mxu1 %v2900_v15  ;;  %v2982_v15 = vld [vmem:[%s3319_s18 + $0x328] ss:$16 sps:$4 sm:$0xff]  }
  0xb9   : > { %1979 = vmatmul.mubr.bf16.vlgmr.msra.gmra.mxu0 %v3501_v16 }
  0xba   : > { %2020 = vmatmul.mubr.bf16.vlgmr.msra.gmra.mxu1 %v3505_v17  ;;  %2029 = vmatpush1.bf16.msra.mxu0 %v2895_v18  ;;  %v2987_v18 = vld [vmem:[%s3319_s18 + $0x10c] ss:$16 sps:$4 sm:$0xff]  }
  0xbb   : > { %2070 = vmatpush1.bf16.msra.mxu1 %v2898_v19  ;;  %2030 = vmatprep.subr.bf16.mxu0 %v2903_v20  ;;  %v2990_v19 = vld [vmem:[%s3319_s18 + $0x30c] ss:$16 sps:$4 sm:$0xff]   ;;  %v2985_v20 = vld [vmem:[%s3319_s18 + $0x108] ss:$16 sps:$4 sm:$0xff]  }
  0xbc   : > { %2071 = vmatprep.subr.bf16.mxu1 %v2906_v21  ;;  %2060 = vmatprep.mubr.bf16.mxu0 %v3380_v47  ;;  %v2921_v47 = vld [vmem:[%s3319_s18 + $0x6c] ss:$16 sps:$4 sm:$0xff]   ;;  %v2988_v21 = vld [vmem:[%s3319_s18 + $0x308] ss:$16 sps:$4 sm:$0xff]  }
  0xbd   : > { %2101 = vmatprep.mubr.bf16.mxu1 %v3387_v51  ;;  %v2924_v51 = vld [vmem:[%s3319_s18 + $0x26c] ss:$16 sps:$4 sm:$0xff]  }
  0xbe   : > { %2031 = vmatpush1.bf16.msra.mxu0 %v2901_v22  ;;  %v2993_v22 = vld [vmem:[%s3319_s18 + $0x4ec] ss:$16 sps:$4 sm:$0xff]  }
  0xbf   : > { %2072 = vmatpush1.bf16.msra.mxu1 %v2904_v23  ;;  %2032 = vmatprep.subr.bf16.mxu0 %v2909_v24  ;;  %v2996_v23 = vld [vmem:[%s3319_s18 + $0x6ec] ss:$16 sps:$4 sm:$0xff]   ;;  %v2991_v24 = vld [vmem:[%s3319_s18 + $0x4e8] ss:$16 sps:$4 sm:$0xff]  }
  0xc0   : > { %2073 = vmatprep.subr.bf16.mxu1 %v2912_v25  ;;  %v2994_v25 = vld [vmem:[%s3319_s18 + $0x6e8] ss:$16 sps:$4 sm:$0xff]  }
  0xc2   : > { %2033 = vmatpush1.bf16.msra.mxu0 %v2907_v26  ;;  %v2999_v26 = vld [vmem:[%s3319_s18 + $0x4cc] ss:$16 sps:$4 sm:$0xff]  }
  0xc3   : > { %2074 = vmatpush1.bf16.msra.mxu1 %v2910_v27  ;;  %2034 = vmatprep.subr.bf16.mxu0 %v2915_v28  ;;  %v3002_v27 = vld [vmem:[%s3319_s18 + $0x6cc] ss:$16 sps:$4 sm:$0xff]   ;;  %v2997_v28 = vld [vmem:[%s3319_s18 + $0x4c8] ss:$16 sps:$4 sm:$0xff]  }
  0xc4   : > { %2075 = vmatprep.subr.bf16.mxu1 %v2918_v29  ;;  %v3000_v29 = vld [vmem:[%s3319_s18 + $0x6c8] ss:$16 sps:$4 sm:$0xff]  }
  0xc6   : > { %2035 = vmatpush1.bf16.msra.mxu0 %v2913_v30  ;;  %v3005_v30 = vld [vmem:[%s3319_s18 + $0x4ac] ss:$16 sps:$4 sm:$0xff]  }
  0xc7   : > { %2076 = vmatpush1.bf16.msra.mxu1 %v2916_v31  ;;  %2036 = vmatprep.subr.bf16.mxu0 %v2921_v47  ;;  %v3008_v31 = vld [vmem:[%s3319_s18 + $0x6ac] ss:$16 sps:$4 sm:$0xff]  }
  0xc8   : > { %2077 = vmatprep.subr.bf16.mxu1 %v2924_v51  ;;  %v3011_v47 = vld [vmem:[%s3319_s18 + $0x48c] ss:$16 sps:$4 sm:$0xff]  }
  0xc9   : > { %v3014_v51 = vld [vmem:[%s3319_s18 + $0x68c] ss:$16 sps:$4 sm:$0xff]  }
  0xca   : > { %2037 = vmatpush1.bf16.msra.mxu0 %v2919_v32  ;;  %v3009_v32 = vld [vmem:[%s3319_s18 + $0x488] ss:$16 sps:$4 sm:$0xff]  }
  0xcb   : > { %2078 = vmatpush1.bf16.msra.mxu1 %v2922_v33  ;;  %2038 = vmatprep.subr.bf16.mxu0 %v2927_v34  ;;  %v3020_v33 = vld [vmem:[%s3319_s18 + $0x66c] ss:$16 sps:$4 sm:$0xff]   ;;  %v3015_v34 = vld [vmem:[%s3319_s18 + $0x468] ss:$16 sps:$4 sm:$0xff]  }
  0xcc   : > { %2079 = vmatprep.subr.bf16.mxu1 %v2930_v35  ;;  %v3018_v35 = vld [vmem:[%s3319_s18 + $0x668] ss:$16 sps:$4 sm:$0xff]  }
  0xce   : > { %2039 = vmatpush1.bf16.msra.mxu0 %v2925_v38  ;;  %v3023_v38 = vld [vmem:[%s3319_s18 + $0x44c] ss:$16 sps:$4 sm:$0xff]  }
  0xcf   : > { %2080 = vmatpush1.bf16.msra.mxu1 %v2928_v39  ;;  %2040 = vmatprep.subr.bf16.mxu0 %v2933_v40  ;;  %v3026_v39 = vld [vmem:[%s3319_s18 + $0x64c] ss:$16 sps:$4 sm:$0xff]   ;;  %v3021_v40 = vld [vmem:[%s3319_s18 + $0x448] ss:$16 sps:$4 sm:$0xff]  }
  0xd0   : > { %2081 = vmatprep.subr.bf16.mxu1 %v2936_v41  ;;  %v3024_v41 = vld [vmem:[%s3319_s18 + $0x648] ss:$16 sps:$4 sm:$0xff]  }
  0xd2   : > { %2041 = vmatpush1.bf16.msra.mxu0 %v2931_v42  ;;  %v3029_v42 = vld [vmem:[%s3319_s18 + $0x42c] ss:$16 sps:$4 sm:$0xff]  }
  0xd3   : > { %2082 = vmatpush1.bf16.msra.mxu1 %v2934_v43  ;;  %2042 = vmatprep.subr.bf16.mxu0 %v2939_v44  ;;  %v3032_v43 = vld [vmem:[%s3319_s18 + $0x62c] ss:$16 sps:$4 sm:$0xff]   ;;  %v3027_v44 = vld [vmem:[%s3319_s18 + $0x428] ss:$16 sps:$4 sm:$0xff]  }
  0xd4   : > { %2083 = vmatprep.subr.bf16.mxu1 %v2942_v45  ;;  %v3030_v45 = vld [vmem:[%s3319_s18 + $0x628] ss:$16 sps:$4 sm:$0xff]  }
  0xd6   : > { %2043 = vmatpush1.bf16.msra.mxu0 %v2937_v46  ;;  %v3035_v46 = vld [vmem:[%s3319_s18 + $0x40c] ss:$16 sps:$4 sm:$0xff]  }
  0xd7   : > { %2084 = vmatpush1.bf16.msra.mxu1 %v2940_v48  ;;  %2044 = vmatprep.subr.bf16.mxu0 %v2945_v49  ;;  %v3038_v48 = vld [vmem:[%s3319_s18 + $0x60c] ss:$16 sps:$4 sm:$0xff]   ;;  %v3033_v49 = vld [vmem:[%s3319_s18 + $0x408] ss:$16 sps:$4 sm:$0xff]  }
  0xd8   : > { %2085 = vmatprep.subr.bf16.mxu1 %v2948_v50  ;;  %v3036_v50 = vld [vmem:[%s3319_s18 + $0x608] ss:$16 sps:$4 sm:$0xff]  }
  0xda   : > { %2045 = vmatpush2.bf16.msra.mxu0 %v2943_v52  ;;  %v3041_v52 = vld [vmem:[%s3319_s18 + $0x5ec] ss:$16 sps:$4 sm:$0xff]  }
  0xdb   : > { %2086 = vmatpush2.bf16.msra.mxu1 %v2946_v53  ;;  %2046 = vmatprep.subr.bf16.mxu0 %v2951_v54  ;;  %v3044_v53 = vld [vmem:[%s3319_s18 + $0x7ec] ss:$16 sps:$4 sm:$0xff]   ;;  %v3039_v54 = vld [vmem:[%s3319_s18 + $0x5e8] ss:$16 sps:$4 sm:$0xff]  }
  0xdc   : > { %2087 = vmatprep.subr.bf16.mxu1 %v2954_v55  ;;  %v3042_v55 = vld [vmem:[%s3319_s18 + $0x7e8] ss:$16 sps:$4 sm:$0xff]  }
  0xde   : > { %2047 = vmatpush2.bf16.msra.mxu0 %v2949_v56  ;;  %v3047_v56 = vld [vmem:[%s3319_s18 + $0x5cc] ss:$16 sps:$4 sm:$0xff]  }
  0xdf   : > { %2088 = vmatpush2.bf16.msra.mxu1 %v2952_v57  ;;  %2048 = vmatprep.subr.bf16.mxu0 %v2957_v58  ;;  %v3050_v57 = vld [vmem:[%s3319_s18 + $0x7cc] ss:$16 sps:$4 sm:$0xff]   ;;  %v3045_v58 = vld [vmem:[%s3319_s18 + $0x5c8] ss:$16 sps:$4 sm:$0xff]  }
  0xe0   : > { %2089 = vmatprep.subr.bf16.mxu1 %v2960_v59  ;;  %v3048_v59 = vld [vmem:[%s3319_s18 + $0x7c8] ss:$16 sps:$4 sm:$0xff]  }
  0xe2   : > { %2049 = vmatpush2.bf16.msra.mxu0 %v2955_v60  ;;  %v3053_v60 = vld [vmem:[%s3319_s18 + $0x5ac] ss:$16 sps:$4 sm:$0xff]  }
  0xe3   : > { %2090 = vmatpush2.bf16.msra.mxu1 %v2958_v61  ;;  %2050 = vmatprep.subr.bf16.mxu0 %v2963_v62  ;;  %v3056_v61 = vld [vmem:[%s3319_s18 + $0x7ac] ss:$16 sps:$4 sm:$0xff]   ;;  %v3051_v62 = vld [vmem:[%s3319_s18 + $0x5a8] ss:$16 sps:$4 sm:$0xff]  }
  0xe4   : > { %2091 = vmatprep.subr.bf16.mxu1 %v2966_v63  ;;  %v3054_v63 = vld [vmem:[%s3319_s18 + $0x7a8] ss:$16 sps:$4 sm:$0xff]  }
  0xe6   : > { %2051 = vmatpush2.bf16.msra.mxu0 %v2961_v0  ;;  %v3059_v0 = vld [vmem:[%s3319_s18 + $0x58c] ss:$16 sps:$4 sm:$0xff]  }
  0xe7   : > { %2092 = vmatpush2.bf16.msra.mxu1 %v2964_v1  ;;  %2052 = vmatprep.subr.bf16.mxu0 %v2969_v2  ;;  %v3062_v1 = vld [vmem:[%s3319_s18 + $0x78c] ss:$16 sps:$4 sm:$0xff]   ;;  %v3057_v2 = vld [vmem:[%s3319_s18 + $0x588] ss:$16 sps:$4 sm:$0xff]  }
  0xe8   : > { %2093 = vmatprep.subr.bf16.mxu1 %v2972_v3  ;;  %v3060_v3 = vld [vmem:[%s3319_s18 + $0x788] ss:$16 sps:$4 sm:$0xff]  }
  0xea   : > { %2053 = vmatpush2.bf16.msra.mxu0 %v2967_v4  ;;  %v3065_v4 = vld [vmem:[%s3319_s18 + $0x56c] ss:$16 sps:$4 sm:$0xff]  }
  0xeb   : > { %2094 = vmatpush2.bf16.msra.mxu1 %v2970_v5  ;;  %2054 = vmatprep.subr.bf16.mxu0 %v2975_v8  ;;  %v3068_v5 = vld [vmem:[%s3319_s18 + $0x76c] ss:$16 sps:$4 sm:$0xff]   ;;  %v3063_v8 = vld [vmem:[%s3319_s18 + $0x568] ss:$16 sps:$4 sm:$0xff]  }
  0xec   : > { %2095 = vmatprep.subr.bf16.mxu1 %v2978_v9  ;;  %v3066_v9 = vld [vmem:[%s3319_s18 + $0x768] ss:$16 sps:$4 sm:$0xff]  }
  0xee   : > { %2055 = vmatpush2.bf16.msra.mxu0 %v2973_v10  ;;  %v3071_v10 = vld [vmem:[%s3319_s18 + $0x54c] ss:$16 sps:$4 sm:$0xff]  }
  0xef   : > { %2096 = vmatpush2.bf16.msra.mxu1 %v2976_v11  ;;  %2056 = vmatprep.subr.bf16.mxu0 %v2981_v12  ;;  %v3074_v11 = vld [vmem:[%s3319_s18 + $0x74c] ss:$16 sps:$4 sm:$0xff]   ;;  %v3069_v12 = vld [vmem:[%s3319_s18 + $0x548] ss:$16 sps:$4 sm:$0xff]  }
  0xf0   : > { %2097 = vmatprep.subr.bf16.mxu1 %v2984_v13  ;;  %v3072_v13 = vld [vmem:[%s3319_s18 + $0x748] ss:$16 sps:$4 sm:$0xff]  }
  0xf2   : > { %2057 = vmatpush2.bf16.msra.mxu0 %v2979_v14  ;;  %v3077_v14 = vld [vmem:[%s3319_s18 + $0x52c] ss:$16 sps:$4 sm:$0xff]  }
  0xf3   : > { %2098 = vmatpush2.bf16.msra.mxu1 %v2982_v15  ;;  %2058 = vmatprep.subr.bf16.mxu0 %v2987_v18  ;;  %v3080_v15 = vld [vmem:[%s3319_s18 + $0x72c] ss:$16 sps:$4 sm:$0xff]   ;;  %v3075_v18 = vld [vmem:[%s3319_s18 + $0x528] ss:$16 sps:$4 sm:$0xff]  }
  0xf4   : > { %2099 = vmatprep.subr.bf16.mxu1 %v2990_v19  ;;  %v3078_v19 = vld [vmem:[%s3319_s18 + $0x728] ss:$16 sps:$4 sm:$0xff]  }
  0xf6   : > { %2059 = vmatpush2.bf16.msra.mxu0 %v2985_v20  ;;  %v3083_v20 = vld [vmem:[%s3319_s18 + $0x50c] ss:$16 sps:$4 sm:$0xff]  }
  0xf7   : > { %2100 = vmatpush2.bf16.msra.mxu1 %v2988_v21  ;;  %2110 = vmatprep.subr.bf16.mxu0 %v2993_v22  ;;  %v3086_v21 = vld [vmem:[%s3319_s18 + $0x70c] ss:$16 sps:$4 sm:$0xff]   ;;  %v3081_v22 = vld [vmem:[%s3319_s18 + $0x508] ss:$16 sps:$4 sm:$0xff]  }
  0xf8   : > { %2151 = vmatprep.subr.bf16.mxu1 %v2996_v23  ;;  %v3084_v23 = vld [vmem:[%s3319_s18 + $0x708] ss:$16 sps:$4 sm:$0xff]  }
  0xf9   : > { %2061 = vmatmul.mubr.bf16.vlgmr.msra.gmra.mxu0 %v3409_v6  ;;  %v3003_v6 = vld [vmem:[%s3319_s18 + $0x4a8] ss:$16 sps:$4 sm:$0xff]  }
  0xfa   : > { %2102 = vmatmul.mubr.bf16.vlgmr.msra.gmra.mxu1 %v3411_v7  ;;  %2111 = vmatpush1.bf16.msra.mxu0 %v2991_v24  ;;  %v3006_v7 = vld [vmem:[%s3319_s18 + $0x6a8] ss:$16 sps:$4 sm:$0xff]  }
  0xfb   : > { %2152 = vmatpush1.bf16.msra.mxu1 %v2994_v25  ;;  %2112 = vmatprep.subr.bf16.mxu0 %v2999_v26 }
  0xfc   : > { %2153 = vmatprep.subr.bf16.mxu1 %v3002_v27  ;;  %2142 = vmatprep.mubr.bf16.mxu0 %v3453_v36  ;;  %v3012_v36 = vld [vmem:[%s3319_s18 + $0x688] ss:$16 sps:$4 sm:$0xff]  }
  0xfd   : > { %2183 = vmatprep.mubr.bf16.mxu1 %v3457_v37  ;;  %v3017_v37 = vld [vmem:[%s3319_s18 + $0x46c] ss:$16 sps:$4 sm:$0xff]  }
  0xfe   : > { %2113 = vmatpush1.bf16.msra.mxu0 %v2997_v28 }
  0xff   : > { %2154 = vmatpush1.bf16.msra.mxu1 %v3000_v29  ;;  %2114 = vmatprep.subr.bf16.mxu0 %v3005_v30 }
 0x100   : > { %2155 = vmatprep.subr.bf16.mxu1 %v3008_v31 }
 0x102   : > { %2115 = vmatpush1.bf16.msra.mxu0 %v3003_v6  ;;  %v536_v6 = vlaneseq }
 0x103   : > { %2156 = vmatpush1.bf16.msra.mxu1 %v3006_v7  ;;  %2116 = vmatprep.subr.bf16.mxu0 %v3011_v47 }
 0x104   : > { %2157 = vmatprep.subr.bf16.mxu1 %v3014_v51  ;;  %v537_v7 = vshrl.u32 %v536_v6, 7  ;;  %v534_v51 = vld [vmem:[%s3325_s6] sm:$0xf] }
 0x106   : > { %2117 = vmatpush1.bf16.msra.mxu0 %v3009_v32  ;;  %v538_v47 = vsub.s32 0, %v537_v7  ;;  %v542_v32 = vsub.s32 1, %v537_v7 }
 0x107   : > { %2158 = vmatpush1.bf16.msra.mxu1 %v3012_v36  ;;  %2118 = vmatprep.subr.bf16.mxu0 %v3017_v37 }
 0x108   : > { %2159 = vmatprep.subr.bf16.mxu1 %v3020_v33  ;;  %v539_v36 = vrot.slane %v534_v51, %v538_v47  ;;  %v543_v37 = vrot.slane %v534_v51, %v542_v32 }
 0x10a   : > { %2119 = vmatpush1.bf16.msra.mxu0 %v3015_v34 }
 0x10b   : > { %2160 = vmatpush1.bf16.msra.mxu1 %v3018_v35  ;;  %2120 = vmatprep.subr.bf16.mxu0 %v3023_v38 }
 0x10c   : > { %2161 = vmatprep.subr.bf16.mxu1 %v3026_v39 }
 0x10e   : > { %2121 = vmatpush1.bf16.msra.mxu0 %v3021_v40 }
 0x10f   : > { %2162 = vmatpush1.bf16.msra.mxu1 %v3024_v41  ;;  %2122 = vmatprep.subr.bf16.mxu0 %v3029_v42 }
 0x110   : > { %2163 = vmatprep.subr.bf16.mxu1 %v3032_v43 }
 0x112   : > { %2123 = vmatpush1.bf16.msra.mxu0 %v3027_v44 }
 0x113   : > { %2164 = vmatpush1.bf16.msra.mxu1 %v3030_v45  ;;  %2124 = vmatprep.subr.bf16.mxu0 %v3035_v46 }
 0x114   : > { %2165 = vmatprep.subr.bf16.mxu1 %v3038_v48 }
 0x116   : > { %2125 = vmatpush1.bf16.msra.mxu0 %v3033_v49 }
 0x117   : > { %2166 = vmatpush1.bf16.msra.mxu1 %v3036_v50  ;;  %2126 = vmatprep.subr.bf16.mxu0 %v3041_v52 }
 0x118   : > { %2167 = vmatprep.subr.bf16.mxu1 %v3044_v53 }
 0x11a   : > { %2127 = vmatpush2.bf16.msra.mxu0 %v3039_v54 }
 0x11b   : > { %2168 = vmatpush2.bf16.msra.mxu1 %v3042_v55  ;;  %2128 = vmatprep.subr.bf16.mxu0 %v3047_v56 }
 0x11c   : > { %2169 = vmatprep.subr.bf16.mxu1 %v3050_v57 }
 0x11e   : > { %2129 = vmatpush2.bf16.msra.mxu0 %v3045_v58 }
 0x11f   : > { %2170 = vmatpush2.bf16.msra.mxu1 %v3048_v59  ;;  %2130 = vmatprep.subr.bf16.mxu0 %v3053_v60 }
 0x120   : > { %2171 = vmatprep.subr.bf16.mxu1 %v3056_v61 }
 0x122   : > { %2131 = vmatpush2.bf16.msra.mxu0 %v3051_v62  ;;  %v546_v62 = vsub.s32 2, %v537_v7 }
 0x123   : > { %2172 = vmatpush2.bf16.msra.mxu1 %v3054_v63  ;;  %2132 = vmatprep.subr.bf16.mxu0 %v3059_v0  ;;  %v550_v63 = vsub.s32 3, %v537_v7 }
 0x124   : > { %2173 = vmatprep.subr.bf16.mxu1 %v3062_v1  ;;  %v547_v0 = vrot.slane %v534_v51, %v546_v62 }
 0x125   : > { %v551_v1 = vrot.slane %v534_v51, %v550_v63 }
 0x126   : > { %2133 = vmatpush2.bf16.msra.mxu0 %v3057_v2 }
 0x127   : > { %2174 = vmatpush2.bf16.msra.mxu1 %v3060_v3  ;;  %2134 = vmatprep.subr.bf16.mxu0 %v3065_v4 }
 0x128   : > { %2175 = vmatprep.subr.bf16.mxu1 %v3068_v5 }
 0x12a   : > { %2135 = vmatpush2.bf16.msra.mxu0 %v3063_v8 }
 0x12b   : > { %2176 = vmatpush2.bf16.msra.mxu1 %v3066_v9  ;;  %2136 = vmatprep.subr.bf16.mxu0 %v3071_v10 }
 0x12c   : > { %2177 = vmatprep.subr.bf16.mxu1 %v3074_v11 }
 0x12e   : > { %2137 = vmatpush2.bf16.msra.mxu0 %v3069_v12 }
 0x12f   : > { %2178 = vmatpush2.bf16.msra.mxu1 %v3072_v13  ;;  %2138 = vmatprep.subr.bf16.mxu0 %v3077_v14 }
 0x130   : > { %2179 = vmatprep.subr.bf16.mxu1 %v3080_v15 }
 0x132   : > { %2139 = vmatpush2.bf16.msra.mxu0 %v3075_v18 }
 0x133   : > { %2180 = vmatpush2.bf16.msra.mxu1 %v3078_v19  ;;  %2140 = vmatprep.subr.bf16.mxu0 %v3083_v20 }
 0x134   : > { %2181 = vmatprep.subr.bf16.mxu1 %v3086_v21 }
 0x136   : > { %2141 = vmatpush2.bf16.msra.mxu0 %v3081_v22 }
 0x137   : > { %2182 = vmatpush2.bf16.msra.mxu1 %v3084_v23 }
 0x139   : > { %v1898_v24 = vpop.f32.mrf.mxu0  ;;  %2143 = vmatmul.mubr.bf16.vlgmr.msra.gmra.mxu0 %v3501_v16 }
 0x13a   : > { %v1939_v25 = vpop.f32.mrf.mxu1  ;;  %2184 = vmatmul.mubr.bf16.vlgmr.msra.gmra.mxu1 %v3505_v17  ;;  %v1899_v33 = vadd.f32 %v1898_v24, %v539_v36 }
 0x13b   : > { %v1900_v26 = vpop.f32.mrf.mxu0 }
 0x13c   : > { %v1941_v27 = vpop.f32.mrf.mxu1  ;;  %v1901_v34 = vadd.f32 %v1900_v26, %v543_v37  ;;  %v1940_v16 = vadd.f32 %v1939_v25, %v1899_v33 }
 0x13d   : > { %v1902_v28 = vpop.f32.mrf.mxu0 }
 0x13e   : > { %v1943_v29 = vpop.f32.mrf.mxu1  ;;  %v1942_v38 = vadd.f32 %v1941_v27, %v1901_v34 }
 0x13f   : > { %v1903_v30 = vpop.f32.mrf.mxu0 }
 0x140   : > { %v1944_v31 = vpop.f32.mrf.mxu1 }
 0x179   : > { %v1980_v35 = vpop.f32.mrf.mxu0 }
 0x17a   : > { %v2021_v17 = vpop.f32.mrf.mxu1  ;;  %v1981_v39 = vadd.f32 %v1980_v35, %v1940_v16 }
 0x17b   : > { %v1982_v40 = vpop.f32.mrf.mxu0 }
 0x17c   : > { %v2023_v41 = vpop.f32.mrf.mxu1  ;;  %v2022_v42 = vadd.f32 %v2021_v17, %v1981_v39  ;;  %v1983_v43 = vadd.f32 %v1982_v40, %v1942_v38 }
 0x17d   : > { %v1984_v44 = vpop.f32.mrf.mxu0 }
 0x17e   : > { %v2025_v45 = vpop.f32.mrf.mxu1  ;;  %v2024_v46 = vadd.f32 %v2023_v41, %v1983_v43  ;;  %v2192_v50 = vmax.f32 %v2022_v42, 0.0 }
 0x17f   : > { %v1985_v48 = vpop.f32.mrf.mxu0 }
 0x180   : > { %v2026_v49 = vpop.f32.mrf.mxu1  ;;  %v2193_v52 = vmax.f32 %v2024_v46, 0.0 }
 0x182   : > { %v2630_v53 = vpack.c.bf16 %v2193_v52, %v2192_v50 }
 0x184   : > { %2212 = vst [vmem:[%s3648_s5] sm:$0xff] %v2630_v53 }
 0x1b9   : > { %v2062_v54 = vpop.f32.mrf.mxu0 }
 0x1ba   : > { %v2103_v55 = vpop.f32.mrf.mxu1  ;;  %v2063_v2 = vadd.f32 %v2062_v54, %v547_v0 }
 0x1bb   : > { %v2064_v56 = vpop.f32.mrf.mxu0 }
 0x1bc   : > { %v2105_v57 = vpop.f32.mrf.mxu1  ;;  %v2065_v3 = vadd.f32 %v2064_v56, %v551_v1  ;;  %v2104_v4 = vadd.f32 %v2103_v55, %v2063_v2 }
 0x1bd   : > { %v2066_v58 = vpop.f32.mrf.mxu0 }
 0x1be   : > { %v2107_v59 = vpop.f32.mrf.mxu1  ;;  %v2106_v9 = vadd.f32 %v2105_v57, %v2065_v3 }
 0x1bf   : > { %v2067_v60 = vpop.f32.mrf.mxu0 }
 0x1c0   : > { %v2108_v61 = vpop.f32.mrf.mxu1 }
 0x1f9   : > { %v2144_v5 = vpop.f32.mrf.mxu0 }
 0x1fa   : > { %v2185_v8 = vpop.f32.mrf.mxu1  ;;  %v2145_v10 = vadd.f32 %v2144_v5, %v2104_v4 }
 0x1fb   : > { %v2146_v11 = vpop.f32.mrf.mxu0 }
 0x1fc   : > { %v2187_v12 = vpop.f32.mrf.mxu1  ;;  %v2186_v13 = vadd.f32 %v2185_v8, %v2145_v10  ;;  %v2147_v14 = vadd.f32 %v2146_v11, %v2106_v9 }
 0x1fd   : > { %v2148_v15 = vpop.f32.mrf.mxu0 }
 0x1fe   : > { %v2189_v18 = vpop.f32.mrf.mxu1  ;;  %v2188_v19 = vadd.f32 %v2187_v12, %v2147_v14  ;;  %v2194_v22 = vmax.f32 %v2186_v13, 0.0 }
 0x1ff   : > { %v2149_v20 = vpop.f32.mrf.mxu0 }
 0x200   : > { %v2190_v21 = vpop.f32.mrf.mxu1  ;;  %v2195_v23 = vmax.f32 %v2188_v19, 0.0 }
 0x202   : > { %v2631_v24 = vpack.c.bf16 %v2195_v23, %v2194_v22 }
 0x204   : > { %2213 = vst [vmem:[%s3648_s5 + $0x8] sm:$0xff] %v2631_v24 }
 0x205 PF: > { %s19_s17 = sadd.s32 1, %s3197_s17   ;;  %s3678_s12 = smov %s3181_s13 }
 0x206   : > { %p16_p9 = scmp.ge.s32.totalorder %s19_s17, 6   ;;  %s3679_s13 = smov %s3185_s14 }
 0x207   : > { %s3680_s14 = smov %s3273_s24  ;;  %s3681_s15 = smov %s3193_s16 }
 0x208   : > { %s3682_s16 = smov %s3684_s19  ;;  %18 = sbr.rel (!%p16_p9) target bundleno = 6 (0x6), region = 88 }
 0x20d   :  { %2244 = vsyncpa [#allocation3], 1 }
 0x20e   :  { %2246 = vsyncpa [#allocation3 + $0x1], 1 }
 0x20f   :  { %2247 = vsyncpa [#allocation5], 1 }
 0x210   :  { %2249 = vsyncpa [#allocation5 + $0x1], 1 }

// kernel: ae_forward.11
= control target key start
LH: loop header
LB: loop body
LE: loop exit
PB: predicated region body
PF: predicated region fallthrough
CT: control target
= control target key end

     0   :  { %s2336_s1 = inlined_call_operand.vmem [shape: bf16[2048,128], index: 1, kind: input, shape index: {}]   ;;  %s2337_s0 = inlined_call_operand.vmem [shape: bf16[8,2048], index: 0, kind: input, shape index: {}]   ;;  %s2338_s2 = inlined_call_operand.vmem [shape: f32[1,128], index: 2, kind: input, shape index: {}]   ;;  %s2339_s3 = inlined_call_operand.vmem [shape: bf16[8,128], index: 3, kind: output, shape index: {}]  }
   0x1   :  { %v1758_v0 = vld [vmem:[%s2336_s1 + $0x78] sm:$0xff]   ;;  %v1762_v4 = vld [vmem:[%s2336_s1 + $0x70] sm:$0xff]   ;;  %v1766_v8 = vld [vmem:[%s2336_s1 + $0x68] sm:$0xff]  }
   0x2   :  { %v1759_v1 = vld [vmem:[%s2336_s1 + $0xf8] sm:$0xff]   ;;  %1582 = vmatprep.subr.bf16.mxu0 %v1758_v0  ;;  %v1763_v5 = vld [vmem:[%s2336_s1 + $0xf0] sm:$0xff]   ;;  %v1767_v9 = vld [vmem:[%s2336_s1 + $0xe8] sm:$0xff]  }
   0x3   :  { %v1760_v2 = vld [vmem:[%s2336_s1 + $0x38] sm:$0xff]   ;;  %1604 = vmatprep.subr.bf16.mxu1 %v1759_v1  ;;  %v1764_v6 = vld [vmem:[%s2336_s1 + $0x30] sm:$0xff]   ;;  %v1768_v10 = vld [vmem:[%s2336_s1 + $0x28] sm:$0xff]  }
   0x4   :  { %v1761_v3 = vld [vmem:[%s2336_s1 + $0xb8] sm:$0xff]   ;;  %1583 = vmatpush3.bf16.msra.mxu0 %v1760_v2  ;;  %v1765_v7 = vld [vmem:[%s2336_s1 + $0xb0] sm:$0xff]   ;;  %v1769_v11 = vld [vmem:[%s2336_s1 + $0xa8] sm:$0xff]  }
   0x5   :  { %1605 = vmatpush3.bf16.msra.mxu1 %v1761_v3  ;;  %1584 = vmatprep.subr.bf16.mxu0 %v1762_v4  ;;  %v1770_v12 = vld [vmem:[%s2336_s1 + $0x60] sm:$0xff]   ;;  %v1774_v16 = vld [vmem:[%s2336_s1 + $0x58] sm:$0xff]   ;;  %v1778_v20 = vld [vmem:[%s2336_s1 + $0x50] sm:$0xff]  }
   0x6   :  { %1606 = vmatprep.subr.bf16.mxu1 %v1763_v5  ;;  %v1771_v13 = vld [vmem:[%s2336_s1 + $0xe0] sm:$0xff]   ;;  %v1775_v17 = vld [vmem:[%s2336_s1 + $0xd8] sm:$0xff]   ;;  %v1779_v21 = vld [vmem:[%s2336_s1 + $0xd0] sm:$0xff]  }
   0x7   :  { %v1772_v14 = vld [vmem:[%s2336_s1 + $0x20] sm:$0xff]   ;;  %v1776_v18 = vld [vmem:[%s2336_s1 + $0x18] sm:$0xff]   ;;  %v1780_v22 = vld [vmem:[%s2336_s1 + $0x10] sm:$0xff]  }
   0x8   :  { %1585 = vmatpush3.bf16.msra.mxu0 %v1764_v6  ;;  %v1773_v15 = vld [vmem:[%s2336_s1 + $0xa0] sm:$0xff]   ;;  %v1777_v19 = vld [vmem:[%s2336_s1 + $0x98] sm:$0xff]   ;;  %v1781_v23 = vld [vmem:[%s2336_s1 + $0x90] sm:$0xff]  }
   0x9   :  { %1607 = vmatpush3.bf16.msra.mxu1 %v1765_v7  ;;  %1586 = vmatprep.subr.bf16.mxu0 %v1766_v8  ;;  %v1782_v24 = vld [vmem:[%s2336_s1 + $0x48] sm:$0xff]   ;;  %v1786_v28 = vld [vmem:[%s2336_s1 + $0x40] sm:$0xff]   ;;  %v1794_v38 = vld [vmem:[%s2336_s1 + $0x178] sm:$0xff]  }
   0xa   :  { %1608 = vmatprep.subr.bf16.mxu1 %v1767_v9  ;;  %v1783_v25 = vld [vmem:[%s2336_s1 + $0xc8] sm:$0xff]   ;;  %v1787_v29 = vld [vmem:[%s2336_s1 + $0xc0] sm:$0xff]   ;;  %v1795_v39 = vld [vmem:[%s2336_s1 + $0x1f8] sm:$0xff]  }
   0xb   :  { %v1784_v26 = vld [vmem:[%s2336_s1 + $0x8] sm:$0xff]   ;;  %v1788_v30 = vld [vmem:[%s2336_s1] sm:$0xff]   ;;  %v1796_v40 = vld [vmem:[%s2336_s1 + $0x138] sm:$0xff]  }
   0xc   :  { %1587 = vmatpush3.bf16.msra.mxu0 %v1768_v10  ;;  %v1785_v27 = vld [vmem:[%s2336_s1 + $0x88] sm:$0xff]   ;;  %v1789_v31 = vld [vmem:[%s2336_s1 + $0x80] sm:$0xff]   ;;  %v1797_v41 = vld [vmem:[%s2336_s1 + $0x1b8] sm:$0xff]  }
   0xd   :  { %1609 = vmatpush3.bf16.msra.mxu1 %v1769_v11  ;;  %1588 = vmatprep.subr.bf16.mxu0 %v1770_v12  ;;  %v15_v32 = vld [vmem:[%s2337_s0] sm:$0xff]  ;;  %v16_v33 = vld [vmem:[%s2337_s0 + $0x8] sm:$0xff]  ;;  %v1798_v42 = vld [vmem:[%s2336_s1 + $0x170] sm:$0xff]  }
   0xe   :  { %1610 = vmatprep.subr.bf16.mxu1 %v1771_v13  ;;  %v1438_v34 = vcombine.low %v15_v32, %v15_v32  ;;  %v1439_v35 = vcombine.high %v15_v32, %v15_v32  ;;  %v1440_v36 = vcombine.low %v16_v33, %v16_v33  ;;  %v1441_v37 = vcombine.high %v16_v33, %v16_v33  ;;  %v1799_v43 = vld [vmem:[%s2336_s1 + $0x1f0] sm:$0xff]   ;;  %v1802_v46 = vld [vmem:[%s2336_s1 + $0x168] sm:$0xff]   ;;  %v1806_v50 = vld [vmem:[%s2336_s1 + $0x160] sm:$0xff]  }
   0xf   :  { %v1800_v44 = vld [vmem:[%s2336_s1 + $0x130] sm:$0xff]   ;;  %v1803_v47 = vld [vmem:[%s2336_s1 + $0x1e8] sm:$0xff]   ;;  %v1807_v51 = vld [vmem:[%s2336_s1 + $0x1e0] sm:$0xff]  }
  0x10   :  { %1589 = vmatpush3.bf16.msra.mxu0 %v1772_v14  ;;  %1142 = vmatprep.mubr.bf16.mxu0 %v1439_v35  ;;  %v1801_v45 = vld [vmem:[%s2336_s1 + $0x1b0] sm:$0xff]   ;;  %v1804_v48 = vld [vmem:[%s2336_s1 + $0x128] sm:$0xff]   ;;  %v1808_v52 = vld [vmem:[%s2336_s1 + $0x120] sm:$0xff]  }
  0x11   :  { %1611 = vmatpush3.bf16.msra.mxu1 %v1773_v15  ;;  %1590 = vmatprep.subr.bf16.mxu0 %v1774_v16  ;;  %v1805_v49 = vld [vmem:[%s2336_s1 + $0x1a8] sm:$0xff]   ;;  %v1809_v53 = vld [vmem:[%s2336_s1 + $0x1a0] sm:$0xff]   ;;  %v1810_v54 = vld [vmem:[%s2336_s1 + $0x158] sm:$0xff]  }
  0x12   :  { %1612 = vmatprep.subr.bf16.mxu1 %v1775_v17  ;;  %1182 = vmatprep.mubr.bf16.mxu1 %v1441_v37  ;;  %v1811_v55 = vld [vmem:[%s2336_s1 + $0x1d8] sm:$0xff]   ;;  %v1814_v58 = vld [vmem:[%s2336_s1 + $0x150] sm:$0xff]   ;;  %v1818_v62 = vld [vmem:[%s2336_s1 + $0x148] sm:$0xff]  }
  0x13   :  { %v1812_v56 = vld [vmem:[%s2336_s1 + $0x118] sm:$0xff]   ;;  %v1815_v59 = vld [vmem:[%s2336_s1 + $0x1d0] sm:$0xff]   ;;  %v1819_v63 = vld [vmem:[%s2336_s1 + $0x1c8] sm:$0xff]  }
  0x14   :  { %1591 = vmatpush3.bf16.msra.mxu0 %v1776_v18  ;;  %v1813_v57 = vld [vmem:[%s2336_s1 + $0x198] sm:$0xff]   ;;  %v1816_v60 = vld [vmem:[%s2336_s1 + $0x110] sm:$0xff]   ;;  %v1820_v0 = vld [vmem:[%s2336_s1 + $0x108] sm:$0xff]  }
  0x15   :  { %1613 = vmatpush3.bf16.msra.mxu1 %v1777_v19  ;;  %1592 = vmatprep.subr.bf16.mxu0 %v1778_v20  ;;  %v1817_v61 = vld [vmem:[%s2336_s1 + $0x190] sm:$0xff]   ;;  %v1821_v1 = vld [vmem:[%s2336_s1 + $0x188] sm:$0xff]   ;;  %v1822_v2 = vld [vmem:[%s2336_s1 + $0x140] sm:$0xff]  }
  0x16   :  { %1614 = vmatprep.subr.bf16.mxu1 %v1779_v21  ;;  %v1823_v3 = vld [vmem:[%s2336_s1 + $0x1c0] sm:$0xff]   ;;  %v17_v6 = vld [vmem:[%s2337_s0 + $0x10] sm:$0xff]  ;;  %v18_v9 = vld [vmem:[%s2337_s0 + $0x18] sm:$0xff] }
  0x17   :  { %v1824_v4 = vld [vmem:[%s2336_s1 + $0x100] sm:$0xff]   ;;  %v1442_v7 = vcombine.low %v17_v6, %v17_v6  ;;  %v1443_v8 = vcombine.high %v17_v6, %v17_v6  ;;  %v1444_v10 = vcombine.low %v18_v9, %v18_v9  ;;  %v1445_v11 = vcombine.high %v18_v9, %v18_v9  ;;  %v1830_v12 = vld [vmem:[%s2336_s1 + $0x278] sm:$0xff]   ;;  %v1834_v16 = vld [vmem:[%s2336_s1 + $0x270] sm:$0xff]  }
  0x18   :  { %1593 = vmatpush3.bf16.msra.mxu0 %v1780_v22  ;;  %v1825_v5 = vld [vmem:[%s2336_s1 + $0x180] sm:$0xff]   ;;  %v1831_v13 = vld [vmem:[%s2336_s1 + $0x2f8] sm:$0xff]   ;;  %v1835_v17 = vld [vmem:[%s2336_s1 + $0x2f0] sm:$0xff]  }
  0x19   :  { %1615 = vmatpush3.bf16.msra.mxu1 %v1781_v23  ;;  %1594 = vmatprep.subr.bf16.mxu0 %v1782_v24  ;;  %v1832_v14 = vld [vmem:[%s2336_s1 + $0x238] sm:$0xff]   ;;  %v1836_v18 = vld [vmem:[%s2336_s1 + $0x230] sm:$0xff]   ;;  %v1838_v20 = vld [vmem:[%s2336_s1 + $0x268] sm:$0xff]  }
  0x1a   :  { %1616 = vmatprep.subr.bf16.mxu1 %v1783_v25  ;;  %v1833_v15 = vld [vmem:[%s2336_s1 + $0x2b8] sm:$0xff]   ;;  %v1837_v19 = vld [vmem:[%s2336_s1 + $0x2b0] sm:$0xff]   ;;  %v1839_v21 = vld [vmem:[%s2336_s1 + $0x2e8] sm:$0xff]  }
  0x1b   :  { %v1840_v22 = vld [vmem:[%s2336_s1 + $0x228] sm:$0xff]   ;;  %v1842_v24 = vld [vmem:[%s2336_s1 + $0x260] sm:$0xff]   ;;  %v1850_v32 = vld [vmem:[%s2336_s1 + $0x250] sm:$0xff]  }
  0x1c   :  { %1595 = vmatpush3.bf16.msra.mxu0 %v1784_v26  ;;  %v1841_v23 = vld [vmem:[%s2336_s1 + $0x2a8] sm:$0xff]   ;;  %v1843_v25 = vld [vmem:[%s2336_s1 + $0x2e0] sm:$0xff]   ;;  %v1851_v33 = vld [vmem:[%s2336_s1 + $0x2d0] sm:$0xff]  }
  0x1d   :  { %1617 = vmatpush3.bf16.msra.mxu1 %v1785_v27  ;;  %1596 = vmatprep.subr.bf16.mxu0 %v1786_v28  ;;  %v1844_v26 = vld [vmem:[%s2336_s1 + $0x220] sm:$0xff]   ;;  %v1846_v28 = vld [vmem:[%s2336_s1 + $0x258] sm:$0xff]   ;;  %v1853_v35 = vld [vmem:[%s2336_s1 + $0x290] sm:$0xff]  }
  0x1e   :  { %1618 = vmatprep.subr.bf16.mxu1 %v1787_v29  ;;  %v1845_v27 = vld [vmem:[%s2336_s1 + $0x2a0] sm:$0xff]   ;;  %v1847_v29 = vld [vmem:[%s2336_s1 + $0x2d8] sm:$0xff]   ;;  %v1855_v37 = vld [vmem:[%s2336_s1 + $0x2c8] sm:$0xff]  }
  0x1f   :  { %v1886_v6 = vld [vmem:[%s2336_s1 + $0x350] sm:$0xff]  }
  0x20   :  { %1597 = vmatpush3.bf16.msra.mxu0 %v1788_v30  ;;  %v1848_v30 = vld [vmem:[%s2336_s1 + $0x218] sm:$0xff]   ;;  %v1889_v9 = vld [vmem:[%s2336_s1 + $0x390] sm:$0xff]  }
  0x21   :  { %1619 = vmatpush3.bf16.msra.mxu1 %v1789_v31  ;;  %1626 = vmatprep.subr.bf16.mxu0 %v1794_v38  ;;  %v1849_v31 = vld [vmem:[%s2336_s1 + $0x298] sm:$0xff]   ;;  %v1856_v38 = vld [vmem:[%s2336_s1 + $0x208] sm:$0xff]  }
  0x22   :  { %1648 = vmatprep.subr.bf16.mxu1 %v1795_v39  ;;  %v1857_v39 = vld [vmem:[%s2336_s1 + $0x288] sm:$0xff]  }
  0x23   :  { %1143 = vmatmul.mubr.bf16.vlgmr.msra.gmra.mxu0 %v1438_v34  ;;  %v1852_v34 = vld [vmem:[%s2336_s1 + $0x210] sm:$0xff]  }
  0x24   :  { %1183 = vmatmul.mubr.bf16.vlgmr.msra.gmra.mxu1 %v1440_v36  ;;  %1627 = vmatpush3.bf16.msra.mxu0 %v1796_v40  ;;  %v1854_v36 = vld [vmem:[%s2336_s1 + $0x248] sm:$0xff]   ;;  %v1858_v40 = vld [vmem:[%s2336_s1 + $0x240] sm:$0xff]  }
  0x25   :  { %1649 = vmatpush3.bf16.msra.mxu1 %v1797_v41  ;;  %1628 = vmatprep.subr.bf16.mxu0 %v1798_v42  ;;  %v1859_v41 = vld [vmem:[%s2336_s1 + $0x2c0] sm:$0xff]  }
  0x26   :  { %1650 = vmatprep.subr.bf16.mxu1 %v1799_v43  ;;  %1222 = vmatprep.mubr.bf16.mxu0 %v1443_v8  ;;  %v1860_v42 = vld [vmem:[%s2336_s1 + $0x200] sm:$0xff]   ;;  %v1888_v8 = vld [vmem:[%s2336_s1 + $0x310] sm:$0xff]  }
  0x27   :  { %1262 = vmatprep.mubr.bf16.mxu1 %v1445_v11  ;;  %v1861_v43 = vld [vmem:[%s2336_s1 + $0x280] sm:$0xff]   ;;  %v1891_v11 = vld [vmem:[%s2336_s1 + $0x3c8] sm:$0xff]  }
  0x28   :  { %1629 = vmatpush3.bf16.msra.mxu0 %v1800_v44  ;;  %v19_v44 = vld [vmem:[%s2337_s0 + $0x20] sm:$0xff] }
  0x29   :  { %1651 = vmatpush3.bf16.msra.mxu1 %v1801_v45  ;;  %1630 = vmatprep.subr.bf16.mxu0 %v1802_v46  ;;  %v20_v45 = vld [vmem:[%s2337_s0 + $0x28] sm:$0xff]  ;;  %v1446_v46 = vcombine.low %v19_v44, %v19_v44 }
  0x2a   :  { %1652 = vmatprep.subr.bf16.mxu1 %v1803_v47  ;;  %v1447_v47 = vcombine.high %v19_v44, %v19_v44 }
  0x2c   :  { %1631 = vmatpush3.bf16.msra.mxu0 %v1804_v48  ;;  %v1448_v48 = vcombine.low %v20_v45, %v20_v45 }
  0x2d   :  { %1653 = vmatpush3.bf16.msra.mxu1 %v1805_v49  ;;  %1632 = vmatprep.subr.bf16.mxu0 %v1806_v50  ;;  %v1449_v49 = vcombine.high %v20_v45, %v20_v45  ;;  %v1866_v50 = vld [vmem:[%s2336_s1 + $0x378] sm:$0xff]  }
  0x2e   :  { %1654 = vmatprep.subr.bf16.mxu1 %v1807_v51  ;;  %v1867_v51 = vld [vmem:[%s2336_s1 + $0x3f8] sm:$0xff]  }
  0x30   :  { %1633 = vmatpush3.bf16.msra.mxu0 %v1808_v52  ;;  %v1868_v52 = vld [vmem:[%s2336_s1 + $0x338] sm:$0xff]  }
  0x31   :  { %1655 = vmatpush3.bf16.msra.mxu1 %v1809_v53  ;;  %1634 = vmatprep.subr.bf16.mxu0 %v1810_v54  ;;  %v1869_v53 = vld [vmem:[%s2336_s1 + $0x3b8] sm:$0xff]   ;;  %v1870_v54 = vld [vmem:[%s2336_s1 + $0x370] sm:$0xff]  }
  0x32   :  { %1656 = vmatprep.subr.bf16.mxu1 %v1811_v55  ;;  %v1871_v55 = vld [vmem:[%s2336_s1 + $0x3f0] sm:$0xff]  }
  0x34   :  { %1635 = vmatpush3.bf16.msra.mxu0 %v1812_v56  ;;  %v1872_v56 = vld [vmem:[%s2336_s1 + $0x330] sm:$0xff]  }
  0x35   :  { %1657 = vmatpush3.bf16.msra.mxu1 %v1813_v57  ;;  %1636 = vmatprep.subr.bf16.mxu0 %v1814_v58  ;;  %v1873_v57 = vld [vmem:[%s2336_s1 + $0x3b0] sm:$0xff]   ;;  %v1874_v58 = vld [vmem:[%s2336_s1 + $0x368] sm:$0xff]  }
  0x36   :  { %1658 = vmatprep.subr.bf16.mxu1 %v1815_v59  ;;  %v1875_v59 = vld [vmem:[%s2336_s1 + $0x3e8] sm:$0xff]  }
  0x38   :  { %1637 = vmatpush3.bf16.msra.mxu0 %v1816_v60  ;;  %v1876_v60 = vld [vmem:[%s2336_s1 + $0x328] sm:$0xff]  }
  0x39   :  { %1659 = vmatpush3.bf16.msra.mxu1 %v1817_v61  ;;  %1638 = vmatprep.subr.bf16.mxu0 %v1818_v62  ;;  %v1877_v61 = vld [vmem:[%s2336_s1 + $0x3a8] sm:$0xff]   ;;  %v1878_v62 = vld [vmem:[%s2336_s1 + $0x360] sm:$0xff]  }
  0x3a   :  { %1660 = vmatprep.subr.bf16.mxu1 %v1819_v63  ;;  %v1879_v63 = vld [vmem:[%s2336_s1 + $0x3e0] sm:$0xff]  }
  0x3c   :  { %1639 = vmatpush3.bf16.msra.mxu0 %v1820_v0  ;;  %v1880_v0 = vld [vmem:[%s2336_s1 + $0x320] sm:$0xff]  }
  0x3d   :  { %1661 = vmatpush3.bf16.msra.mxu1 %v1821_v1  ;;  %1640 = vmatprep.subr.bf16.mxu0 %v1822_v2  ;;  %v1881_v1 = vld [vmem:[%s2336_s1 + $0x3a0] sm:$0xff]   ;;  %v1882_v2 = vld [vmem:[%s2336_s1 + $0x358] sm:$0xff]  }
  0x3e   :  { %1662 = vmatprep.subr.bf16.mxu1 %v1823_v3  ;;  %v1883_v3 = vld [vmem:[%s2336_s1 + $0x3d8] sm:$0xff]  }
  0x40   :  { %1641 = vmatpush3.bf16.msra.mxu0 %v1824_v4  ;;  %v1884_v4 = vld [vmem:[%s2336_s1 + $0x318] sm:$0xff]  }
  0x41   :  { %1663 = vmatpush3.bf16.msra.mxu1 %v1825_v5  ;;  %1670 = vmatprep.subr.bf16.mxu0 %v1830_v12  ;;  %v1885_v5 = vld [vmem:[%s2336_s1 + $0x398] sm:$0xff]   ;;  %v1892_v12 = vld [vmem:[%s2336_s1 + $0x308] sm:$0xff]  }
  0x42   :  { %1692 = vmatprep.subr.bf16.mxu1 %v1831_v13  ;;  %v1893_v13 = vld [vmem:[%s2336_s1 + $0x388] sm:$0xff]  }
  0x43   :  { %1223 = vmatmul.mubr.bf16.vlgmr.msra.gmra.mxu0 %v1442_v7  ;;  %v1887_v7 = vld [vmem:[%s2336_s1 + $0x3d0] sm:$0xff]  }
  0x44   :  { %1263 = vmatmul.mubr.bf16.vlgmr.msra.gmra.mxu1 %v1444_v10  ;;  %1671 = vmatpush3.bf16.msra.mxu0 %v1832_v14  ;;  %v1890_v10 = vld [vmem:[%s2336_s1 + $0x348] sm:$0xff]   ;;  %v1894_v14 = vld [vmem:[%s2336_s1 + $0x340] sm:$0xff]  }
  0x45   :  { %1693 = vmatpush3.bf16.msra.mxu1 %v1833_v15  ;;  %1672 = vmatprep.subr.bf16.mxu0 %v1834_v16  ;;  %v1895_v15 = vld [vmem:[%s2336_s1 + $0x3c0] sm:$0xff]  }
  0x46   :  { %1694 = vmatprep.subr.bf16.mxu1 %v1835_v17  ;;  %1302 = vmatprep.mubr.bf16.mxu0 %v1447_v47  ;;  %v1896_v16 = vld [vmem:[%s2336_s1 + $0x300] sm:$0xff]  }
  0x47   :  { %1342 = vmatprep.mubr.bf16.mxu1 %v1449_v49  ;;  %v1897_v17 = vld [vmem:[%s2336_s1 + $0x380] sm:$0xff]  }
  0x48   :  { %1673 = vmatpush3.bf16.msra.mxu0 %v1836_v18  ;;  %v21_v18 = vld [vmem:[%s2337_s0 + $0x30] sm:$0xff] }
  0x49   :  { %1695 = vmatpush3.bf16.msra.mxu1 %v1837_v19  ;;  %1674 = vmatprep.subr.bf16.mxu0 %v1838_v20  ;;  %v22_v19 = vld [vmem:[%s2337_s0 + $0x38] sm:$0xff]  ;;  %v1450_v20 = vcombine.low %v21_v18, %v21_v18 }
  0x4a   :  { %1696 = vmatprep.subr.bf16.mxu1 %v1839_v21  ;;  %v1451_v21 = vcombine.high %v21_v18, %v21_v18 }
  0x4c   :  { %1675 = vmatpush3.bf16.msra.mxu0 %v1840_v22  ;;  %v1452_v22 = vcombine.low %v22_v19, %v22_v19 }
  0x4d   :  { %1697 = vmatpush3.bf16.msra.mxu1 %v1841_v23  ;;  %1676 = vmatprep.subr.bf16.mxu0 %v1842_v24  ;;  %v1453_v23 = vcombine.high %v22_v19, %v22_v19 }
  0x4e   :  { %1698 = vmatprep.subr.bf16.mxu1 %v1843_v25 }
  0x50   :  { %1677 = vmatpush3.bf16.msra.mxu0 %v1844_v26  ;;  %v1437_v26 = vld [vmem:[%s2338_s2] ss:$0 sm:$0xff] }
  0x51   :  { %1699 = vmatpush3.bf16.msra.mxu1 %v1845_v27  ;;  %1678 = vmatprep.subr.bf16.mxu0 %v1846_v28 }
  0x52   :  { %1700 = vmatprep.subr.bf16.mxu1 %v1847_v29 }
  0x54   :  { %1679 = vmatpush3.bf16.msra.mxu0 %v1848_v30 }
  0x55   :  { %1701 = vmatpush3.bf16.msra.mxu1 %v1849_v31  ;;  %1680 = vmatprep.subr.bf16.mxu0 %v1850_v32 }
  0x56   :  { %1702 = vmatprep.subr.bf16.mxu1 %v1851_v33 }
  0x58   :  { %1681 = vmatpush3.bf16.msra.mxu0 %v1852_v34 }
  0x59   :  { %1703 = vmatpush3.bf16.msra.mxu1 %v1853_v35  ;;  %1682 = vmatprep.subr.bf16.mxu0 %v1854_v36 }
  0x5a   :  { %1704 = vmatprep.subr.bf16.mxu1 %v1855_v37 }
  0x5c   :  { %1683 = vmatpush3.bf16.msra.mxu0 %v1856_v38 }
  0x5d   :  { %1705 = vmatpush3.bf16.msra.mxu1 %v1857_v39  ;;  %1684 = vmatprep.subr.bf16.mxu0 %v1858_v40 }
  0x5e   :  { %1706 = vmatprep.subr.bf16.mxu1 %v1859_v41 }
  0x60   :  { %1685 = vmatpush3.bf16.msra.mxu0 %v1860_v42 }
  0x61   :  { %1707 = vmatpush3.bf16.msra.mxu1 %v1861_v43  ;;  %1714 = vmatprep.subr.bf16.mxu0 %v1866_v50 }
  0x62   :  { %1736 = vmatprep.subr.bf16.mxu1 %v1867_v51 }
  0x63   :  { %1303 = vmatmul.mubr.bf16.vlgmr.msra.gmra.mxu0 %v1446_v46 }
  0x64   :  { %1343 = vmatmul.mubr.bf16.vlgmr.msra.gmra.mxu1 %v1448_v48  ;;  %1715 = vmatpush3.bf16.msra.mxu0 %v1868_v52 }
  0x65   :  { %1737 = vmatpush3.bf16.msra.mxu1 %v1869_v53  ;;  %1716 = vmatprep.subr.bf16.mxu0 %v1870_v54 }
  0x66   :  { %1738 = vmatprep.subr.bf16.mxu1 %v1871_v55  ;;  %1382 = vmatprep.mubr.bf16.mxu0 %v1451_v21 }
  0x67   :  { %1422 = vmatprep.mubr.bf16.mxu1 %v1453_v23 }
  0x68   :  { %1717 = vmatpush3.bf16.msra.mxu0 %v1872_v56 }
  0x69   :  { %1739 = vmatpush3.bf16.msra.mxu1 %v1873_v57  ;;  %1718 = vmatprep.subr.bf16.mxu0 %v1874_v58 }
  0x6a   :  { %1740 = vmatprep.subr.bf16.mxu1 %v1875_v59 }
  0x6c   :  { %1719 = vmatpush3.bf16.msra.mxu0 %v1876_v60 }
  0x6d   :  { %1741 = vmatpush3.bf16.msra.mxu1 %v1877_v61  ;;  %1720 = vmatprep.subr.bf16.mxu0 %v1878_v62 }
  0x6e   :  { %1742 = vmatprep.subr.bf16.mxu1 %v1879_v63 }
  0x70   :  { %1721 = vmatpush3.bf16.msra.mxu0 %v1880_v0 }
  0x71   :  { %1743 = vmatpush3.bf16.msra.mxu1 %v1881_v1  ;;  %1722 = vmatprep.subr.bf16.mxu0 %v1882_v2 }
  0x72   :  { %1744 = vmatprep.subr.bf16.mxu1 %v1883_v3 }
  0x74   :  { %1723 = vmatpush3.bf16.msra.mxu0 %v1884_v4 }
  0x75   :  { %1745 = vmatpush3.bf16.msra.mxu1 %v1885_v5  ;;  %1724 = vmatprep.subr.bf16.mxu0 %v1886_v6 }
  0x76   :  { %1746 = vmatprep.subr.bf16.mxu1 %v1887_v7 }
  0x78   :  { %1725 = vmatpush3.bf16.msra.mxu0 %v1888_v8 }
  0x79   :  { %1747 = vmatpush3.bf16.msra.mxu1 %v1889_v9  ;;  %1726 = vmatprep.subr.bf16.mxu0 %v1890_v10 }
  0x7a   :  { %1748 = vmatprep.subr.bf16.mxu1 %v1891_v11 }
  0x7c   :  { %1727 = vmatpush3.bf16.msra.mxu0 %v1892_v12 }
  0x7d   :  { %1749 = vmatpush3.bf16.msra.mxu1 %v1893_v13  ;;  %1728 = vmatprep.subr.bf16.mxu0 %v1894_v14 }
  0x7e   :  { %1750 = vmatprep.subr.bf16.mxu1 %v1895_v15 }
  0x80   :  { %1729 = vmatpush3.bf16.msra.mxu0 %v1896_v16 }
  0x81   :  { %1751 = vmatpush3.bf16.msra.mxu1 %v1897_v17 }
  0x83   :  { %1383 = vmatmul.mubr.bf16.vlgmr.msra.gmra.mxu0 %v1450_v20 }
  0x84   :  { %1423 = vmatmul.mubr.bf16.vlgmr.msra.gmra.mxu1 %v1452_v22 }
  0xe3   :  { %v1598_v24 = vpop.f32.mrf.mxu0 }
  0xe4   :  { %v1620_v25 = vpop.f32.mrf.mxu1 }
  0xe5   :  { %v1599_v27 = vpop.f32.mrf.mxu0 }
  0xe6   :  { %v1621_v28 = vpop.f32.mrf.mxu1  ;;  %v1600_v29 = vadd.f32 %v1599_v27, %v1598_v24 }
  0xe7   :  { %v1622_v30 = vadd.f32 %v1621_v28, %v1620_v25  ;;  %v1601_v31 = vpop.f32.mrf.mxu0 }
  0xe8   :  { %v1623_v32 = vpop.f32.mrf.mxu1  ;;  %v1145_v33 = vadd.f32 %v1600_v29, %v1437_v26 }
  0xe9   :  { %v1602_v34 = vpop.f32.mrf.mxu0 }
  0xea   :  { %v1624_v35 = vpop.f32.mrf.mxu1  ;;  %v1185_v36 = vadd.f32 %v1622_v30, %v1145_v33 }
 0x103   :  { %v1642_v37 = vpop.f32.mrf.mxu0 }
 0x104   :  { %v1664_v38 = vpop.f32.mrf.mxu1 }
 0x105   :  { %v1643_v39 = vpop.f32.mrf.mxu0 }
 0x106   :  { %v1665_v40 = vpop.f32.mrf.mxu1  ;;  %v1644_v53 = vadd.f32 %v1643_v39, %v1642_v37 }
 0x107   :  { %v1645_v41 = vpop.f32.mrf.mxu0  ;;  %v1666_v55 = vadd.f32 %v1665_v40, %v1664_v38 }
 0x108   :  { %v1667_v42 = vpop.f32.mrf.mxu1  ;;  %v1225_v54 = vadd.f32 %v1644_v53, %v1185_v36 }
 0x109   :  { %v1646_v43 = vpop.f32.mrf.mxu0 }
 0x10a   :  { %v1668_v44 = vpop.f32.mrf.mxu1  ;;  %v1265_v57 = vadd.f32 %v1666_v55, %v1225_v54 }
 0x123   :  { %v1686_v45 = vpop.f32.mrf.mxu0 }
 0x124   :  { %v1708_v46 = vpop.f32.mrf.mxu1 }
 0x125   :  { %v1687_v47 = vpop.f32.mrf.mxu0 }
 0x126   :  { %v1709_v48 = vpop.f32.mrf.mxu1  ;;  %v1688_v56 = vadd.f32 %v1687_v47, %v1686_v45 }
 0x127   :  { %v1689_v49 = vpop.f32.mrf.mxu0  ;;  %v1710_v59 = vadd.f32 %v1709_v48, %v1708_v46 }
 0x128   :  { %v1711_v50 = vpop.f32.mrf.mxu1  ;;  %v1305_v58 = vadd.f32 %v1688_v56, %v1265_v57 }
 0x129   :  { %v1690_v51 = vpop.f32.mrf.mxu0 }
 0x12a   :  { %v1712_v52 = vpop.f32.mrf.mxu1  ;;  %v1345_v63 = vadd.f32 %v1710_v59, %v1305_v58 }
 0x143   :  { %v1730_v60 = vpop.f32.mrf.mxu0 }
 0x144   :  { %v1752_v61 = vpop.f32.mrf.mxu1 }
 0x145   :  { %v1731_v62 = vpop.f32.mrf.mxu0 }
 0x146   :  { %v1732_v0 = vadd.f32 %v1731_v62, %v1730_v60  ;;  %v1753_v1 = vpop.f32.mrf.mxu1 }
 0x147   :  { %v1733_v2 = vpop.f32.mrf.mxu0  ;;  %v1754_v4 = vadd.f32 %v1753_v1, %v1752_v61 }
 0x148   :  { %v1385_v3 = vadd.f32 %v1732_v0, %v1345_v63  ;;  %v1755_v5 = vpop.f32.mrf.mxu1 }
 0x149   :  { %v1734_v6 = vpop.f32.mrf.mxu0 }
 0x14a   :  { %v1425_v7 = vadd.f32 %v1754_v4, %v1385_v3  ;;  %v1756_v8 = vpop.f32.mrf.mxu1 }
 0x14c   :  { %v1430_v9 = vmax.f32 %v1425_v7, 0.0 }
 0x14e   :  { %v1431_v10 = vpack.c.bf16 %v1430_v9, %v1430_v9 }
 0x150   :  { %1432 = vst [vmem:[%s2339_s3] sm:$0xf] %v1431_v10 }

// kernel: ae_forward.12
= control target key start
LH: loop header
LB: loop body
LE: loop exit
PB: predicated region body
PF: predicated region fallthrough
CT: control target
= control target key end

     0   :  { %v496_v0 = vmov 0.0   ;;  %vm497_vm0 = vmmov 0   ;;  %s610_s1 = inlined_call_operand.vmem [shape: bf16[128,128], index: 1, kind: input, shape index: {}]   ;;  %s611_s0 = inlined_call_operand.vmem [shape: bf16[112,128], index: 0, kind: input, shape index: {}]   ;;  %s612_s2 = inlined_call_operand.vmem [shape: f32[1,128], index: 2, kind: input, shape index: {}]   ;;  %s613_s3 = inlined_call_operand.vmem [shape: bf16[112,128], index: 3, kind: output, shape index: {}]  }
   0x1   :  { %419 = vmatprep.subr.bf16.mxu0 %v496_v0  ;;  %v481_v1 = vld [vmem:[%s610_s1 + $0x38] sm:$0xff]   ;;  %463 = vmatprep.subr.bf16.mxu1 %v496_v0  ;;  %v482_v2 = vld [vmem:[%s610_s1 + $0x30] sm:$0xff]   ;;  %v483_v3 = vld [vmem:[%s610_s1 + $0x28] sm:$0xff]  }
   0x2   :  { %435 = vmatprep.mubr.msk.bf16.mxu0 %vm497_vm0, %v496_v0  ;;  %451 = vmatprep.mubr.msk.bf16.mxu1 %vm497_vm0, %v496_v0  ;;  %v484_v4 = vld [vmem:[%s610_s1 + $0x20] sm:$0xff]   ;;  %v485_v5 = vld [vmem:[%s610_s1 + $0x18] sm:$0xff]   ;;  %v486_v6 = vld [vmem:[%s610_s1 + $0x10] sm:$0xff]  }
   0x3   :  { %420 = vmatpush3.bf16.msra.mxu0 %v481_v1  ;;  %471 = vmatpush3.bf16.msra.mxu1 %v481_v1  ;;  %v487_v7 = vld [vmem:[%s610_s1 + $0x8] sm:$0xff]   ;;  %v488_v8 = vld [vmem:[%s610_s1] sm:$0xff]   ;;  %v493_v13 = vld [vmem:[%s611_s0 + $0x10] sm:$0xff]  }
   0x4   :  { %421 = vmatprep.subr.bf16.mxu0 %v496_v0  ;;  %464 = vmatprep.subr.bf16.mxu1 %v496_v0  ;;  %v489_v9 = vld [vmem:[%s611_s0] sm:$0xff]   ;;  %v491_v11 = vld [vmem:[%s611_s0 + $0x8] sm:$0xff]   ;;  %v494_v14 = vld [vmem:[%s611_s0 + $0x30] sm:$0xff]  }
   0x5   :  { %v490_v10 = vld [vmem:[%s611_s0 + $0x20] sm:$0xff]   ;;  %v492_v12 = vld [vmem:[%s611_s0 + $0x28] sm:$0xff]   ;;  %v495_v15 = vld [vmem:[%s611_s0 + $0x18] sm:$0xff]  }
   0x6   :  { %v573_v16 = vld [vmem:[%s612_s2] ss:$0 sm:$0xff] }
   0x7   :  { %422 = vmatpush3.bf16.msra.mxu0 %v482_v2  ;;  %472 = vmatpush3.bf16.msra.mxu1 %v482_v2 }
   0x8   :  { %423 = vmatprep.subr.bf16.mxu0 %v496_v0  ;;  %465 = vmatprep.subr.bf16.mxu1 %v496_v0 }
   0xb   :  { %424 = vmatpush3.bf16.msra.mxu0 %v483_v3  ;;  %473 = vmatpush3.bf16.msra.mxu1 %v483_v3 }
   0xc   :  { %425 = vmatprep.subr.bf16.mxu0 %v496_v0  ;;  %466 = vmatprep.subr.bf16.mxu1 %v496_v0 }
   0xf   :  { %426 = vmatpush3.bf16.msra.mxu0 %v484_v4  ;;  %474 = vmatpush3.bf16.msra.mxu1 %v484_v4 }
  0x10   :  { %427 = vmatprep.subr.bf16.mxu0 %v496_v0  ;;  %467 = vmatprep.subr.bf16.mxu1 %v496_v0 }
  0x13   :  { %428 = vmatpush3.bf16.msra.mxu0 %v485_v5  ;;  %475 = vmatpush3.bf16.msra.mxu1 %v485_v5 }
  0x14   :  { %429 = vmatprep.subr.bf16.mxu0 %v496_v0  ;;  %468 = vmatprep.subr.bf16.mxu1 %v496_v0 }
  0x17   :  { %430 = vmatpush3.bf16.msra.mxu0 %v486_v6  ;;  %476 = vmatpush3.bf16.msra.mxu1 %v486_v6 }
  0x18   :  { %431 = vmatprep.subr.bf16.mxu0 %v496_v0  ;;  %469 = vmatprep.subr.bf16.mxu1 %v496_v0 }
  0x1b   :  { %432 = vmatpush3.bf16.msra.mxu0 %v487_v7  ;;  %477 = vmatpush3.bf16.msra.mxu1 %v487_v7 }
  0x1c   :  { %433 = vmatprep.subr.bf16.mxu0 %v496_v0  ;;  %470 = vmatprep.subr.bf16.mxu1 %v496_v0 }
  0x1f   :  { %434 = vmatpush3.bf16.msra.mxu0 %v488_v8  ;;  %478 = vmatpush3.bf16.msra.mxu1 %v488_v8 }
  0x22   :  { %436 = vmatmul.mubr.bf16.vlgmr.msra.gmra.mxu0 %v489_v9  ;;  %452 = vmatmul.mubr.bf16.vlgmr.msra.gmra.mxu1 %v490_v10 }
  0x23   :  { %439 = vmatprep.mubr.msk.bf16.mxu0 %vm497_vm0, %v496_v0  ;;  %455 = vmatprep.mubr.msk.bf16.mxu1 %vm497_vm0, %v496_v0 }
  0x2a   :  { %440 = vmatmul.mubr.bf16.gmra.mxu0 %v491_v11  ;;  %456 = vmatmul.mubr.bf16.gmra.mxu1 %v492_v12 }
  0x2b   :  { %443 = vmatprep.mubr.msk.bf16.mxu0 %vm497_vm0, %v496_v0  ;;  %459 = vmatprep.mubr.msk.bf16.mxu1 %vm497_vm0, %v496_v0 }
  0x32   :  { %444 = vmatmul.mubr.bf16.gmra.mxu0 %v493_v13  ;;  %460 = vmatmul.mubr.bf16.gmra.mxu1 %v494_v14 }
  0x33   :  { %447 = vmatprep.mubr.msk.bf16.mxu0 %vm497_vm0, %v496_v0 }
  0x3a   :  { %448 = vmatmul.mubr.bf16.gmra.mxu0 %v495_v15 }
  0xe2   :  { %v176_v17 = vpop.f32.mrf.mxu0  ;;  %v208_v18 = vpop.f32.mrf.mxu1 }
  0xe3   :  { %v209_v19 = vadd.f32 %v573_v16, %v208_v18  ;;  %v177_v22 = vadd.f32 %v573_v16, %v176_v17 }
  0xe4   :  { %v437_v20 = vpop.f32.mrf.mxu0  ;;  %v453_v21 = vpop.f32.mrf.mxu1 }
  0xe5   :  { %v239_v25 = vmax.f32 %v209_v19, 0.0  ;;  %v231_v30 = vmax.f32 %v177_v22, 0.0 }
  0xe6   :  { %v179_v23 = vpop.f32.mrf.mxu0  ;;  %v211_v24 = vpop.f32.mrf.mxu1 }
  0xe7   :  { %v180_v26 = vadd.f32 %v573_v16, %v179_v23  ;;  %v212_v27 = vadd.f32 %v573_v16, %v211_v24 }
  0xe8   :  { %v438_v28 = vpop.f32.mrf.mxu0  ;;  %v454_v29 = vpop.f32.mrf.mxu1 }
  0xe9   :  { %v232_v31 = vmax.f32 %v180_v26, 0.0  ;;  %v240_v32 = vmax.f32 %v212_v27, 0.0 }
  0xea   :  { %v184_v33 = vpop.f32.mrf.mxu0  ;;  %v216_v34 = vpop.f32.mrf.mxu1 }
  0xeb   :  { %v366_v35 = vpack.c.bf16 %v232_v31, %v231_v30  ;;  %v386_v36 = vpack.c.bf16 %v240_v32, %v239_v25  ;;  %v217_v37 = vadd.f32 %v573_v16, %v216_v34  ;;  %v185_v40 = vadd.f32 %v573_v16, %v184_v33 }
  0xec   :  { %v441_v38 = vpop.f32.mrf.mxu0  ;;  %v457_v39 = vpop.f32.mrf.mxu1 }
  0xed   :  { %367 = vst [vmem:[%s613_s3] sm:$0xff] %v366_v35   ;;  %401 = vst [vmem:[%s613_s3 + $0x20] sm:$0xff] %v386_v36   ;;  %v241_v43 = vmax.f32 %v217_v37, 0.0  ;;  %v233_v48 = vmax.f32 %v185_v40, 0.0 }
  0xee   :  { %v187_v41 = vpop.f32.mrf.mxu0  ;;  %v219_v42 = vpop.f32.mrf.mxu1 }
  0xef   :  { %v188_v44 = vadd.f32 %v573_v16, %v187_v41  ;;  %v220_v45 = vadd.f32 %v573_v16, %v219_v42 }
  0xf0   :  { %v442_v46 = vpop.f32.mrf.mxu0  ;;  %v458_v47 = vpop.f32.mrf.mxu1 }
  0xf1   :  { %v234_v49 = vmax.f32 %v188_v44, 0.0  ;;  %v242_v50 = vmax.f32 %v220_v45, 0.0 }
  0xf2   :  { %v192_v51 = vpop.f32.mrf.mxu0  ;;  %v224_v52 = vpop.f32.mrf.mxu1 }
  0xf3   :  { %v371_v53 = vpack.c.bf16 %v234_v49, %v233_v48  ;;  %v391_v54 = vpack.c.bf16 %v242_v50, %v241_v43  ;;  %v225_v55 = vadd.f32 %v573_v16, %v224_v52  ;;  %v193_v58 = vadd.f32 %v573_v16, %v192_v51 }
  0xf4   :  { %v445_v56 = vpop.f32.mrf.mxu0  ;;  %v461_v57 = vpop.f32.mrf.mxu1 }
  0xf5   :  { %398 = vst [vmem:[%s613_s3 + $0x8] sm:$0xff] %v371_v53   ;;  %402 = vst [vmem:[%s613_s3 + $0x28] sm:$0xff] %v391_v54   ;;  %v243_v61 = vmax.f32 %v225_v55, 0.0  ;;  %v235_v2 = vmax.f32 %v193_v58, 0.0 }
  0xf6   :  { %v195_v59 = vpop.f32.mrf.mxu0  ;;  %v227_v60 = vpop.f32.mrf.mxu1 }
  0xf7   :  { %v196_v62 = vadd.f32 %v573_v16, %v195_v59  ;;  %v228_v63 = vadd.f32 %v573_v16, %v227_v60 }
  0xf8   :  { %v446_v0 = vpop.f32.mrf.mxu0  ;;  %v462_v1 = vpop.f32.mrf.mxu1 }
  0xf9   :  { %v236_v3 = vmax.f32 %v196_v62, 0.0  ;;  %v244_v4 = vmax.f32 %v228_v63, 0.0 }
  0xfa   :  { %v200_v5 = vpop.f32.mrf.mxu0 }
  0xfb   :  { %v376_v6 = vpack.c.bf16 %v236_v3, %v235_v2  ;;  %v396_v7 = vpack.c.bf16 %v244_v4, %v243_v61  ;;  %v201_v9 = vadd.f32 %v573_v16, %v200_v5 }
  0xfc   :  { %v449_v8 = vpop.f32.mrf.mxu0 }
  0xfd   :  { %399 = vst [vmem:[%s613_s3 + $0x10] sm:$0xff] %v376_v6   ;;  %403 = vst [vmem:[%s613_s3 + $0x30] sm:$0xff] %v396_v7   ;;  %v237_v13 = vmax.f32 %v201_v9, 0.0 }
  0xfe   :  { %v203_v10 = vpop.f32.mrf.mxu0 }
  0xff   :  { %v204_v11 = vadd.f32 %v573_v16, %v203_v10 }
 0x100   :  { %v450_v12 = vpop.f32.mrf.mxu0 }
 0x101   :  { %v238_v14 = vmax.f32 %v204_v11, 0.0 }
 0x103   :  { %v381_v15 = vpack.c.bf16 %v238_v14, %v237_v13 }
 0x105   :  { %400 = vst [vmem:[%s613_s3 + $0x18] sm:$0xff] %v381_v15  }

// kernel: ae_forward.10
= control target key start
LH: loop header
LB: loop body
LE: loop exit
PB: predicated region body
PF: predicated region fallthrough
CT: control target
= control target key end

     0   :  { %8 = vsyncpa [#allocation3], 0  ;;  %s6478_s0 = inlined_call_operand.vmem [shape: bf16[8,2048], index: 0, kind: input, shape index: {}]   ;;  %s6479_s1 = inlined_call_operand.hbm [shape: bf16[2048,2048], index: 1, kind: input, shape index: {}]   ;;  %s6480_s2 = inlined_call_operand.vmem [shape: f32[1,2048], index: 2, kind: input, shape index: {}]   ;;  %s6481_s3 = inlined_call_operand.vmem [shape: bf16[8,2048], index: 3, kind: output, shape index: {}]  }
   0x1   :  { %10 = vsyncpa [#allocation3 + $0x1], 0  ;;  %s5701_s12 = smov 0   ;;  %s5703_s13 = smov 0  }
   0x2   :  { %s5705_s14 = smov 0   ;;  %s5707_s15 = smov 0  }
   0x3   :  { %s5709_s16 = smov 0   ;;  %s5711_s17 = smov 0  }
   0x4 LB: > { %s4206_s18 = sadd.s32 4294967295, %s5675_s17   ;;  %s25_s19 = sadd.s32 1, %s5671_s16  ;;  %s5675_s17 = sphi %s5711_s17, %s16_s17   ;;  %s5671_s16 = sphi %s5709_s16, %s6489_s16   ;;  %s5667_s15 = sphi %s5707_s15, %s6488_s15   ;;  %s5663_s14 = sphi %s5705_s14, %s6487_s14   ;;  %s5659_s13 = sphi %s5703_s13, %s6486_s13   ;;  %s5655_s12 = sphi %s5701_s12, %s6485_s12  }
   0x5   : > { %p26_p0 = scmp.ge.s32.totalorder %s25_s19, 4  ;;  %s61_s20 = sadd.s32 1, %s5663_s14 }
   0x6   : > { %p68_p1 = scmp.ne.s32.totalorder %s5663_s14, %s5659_s13  ;;  %p69_p2 = scmp.eq.s32.totalorder %s5675_s17, 0 }
   0x7   : > { %s6491_s19 = smov (%p26_p0, %s25_s19), 0  ;;  %p74_p4 = scmp.ne.s32.totalorder %s5659_s13, %s5655_s12 }
   0x8   : > { %p5737_p3 = por %p69_p2, %p68_p1  ;;  %s58_s22 = ssub.s32 %s5671_s16, %s6491_s19 }
   0x9   : > { %p75_p5 = scmp.eq.s32.totalorder %s4206_s18, 0  ;;  %p59_p6 = scmp.eq.s32.totalorder %s58_s22, 0 }
   0xa   : > { %p4760_p8 = scmp.lt.s32.totalorder %s5675_s17, 4  ;;  %s160_s25 = sand.u32 1, %s5663_s14  }
   0xb   : > { %p5744_p7 = por %p75_p5, %p74_p4  ;;  %s4751_s26 = sshll.u32 %s5671_s16, 8 }
   0xc   : > { %s5750_s24 = scalar_select %p59_p6, %s5663_s14, %s61_s20  }
   0xd   : > { %s4211_s27 = sshll.u32 %s160_s25, 12  ;;  %s170_s30 = scalar_lea.hbm %s6479_s1, %s4751_s26 }
   0xe   : > { %s164_s4 = scalar_lea.vmem [#allocation2], %s4211_s27  ;;  %p5759_p9 = pnand %p4760_p8, %p5737_p3 }
   0xf   : > { %s171_s5 = sshll.u32 %s164_s4, 4  ;;  %p4214_p10 = scmp.ge.s32.totalorder %s5675_s17, 1  ;;  %s172_s5 = int_to_ptr.vmem [resolvable:$true] %s171_s5 }
  0x10   : > { %s161_s7 = scalar_lea.sflag [#allocation3], %s160_s25  ;;  %p5599_p11 = pneg %p5759_p9 }
  0x11   : > { %s5610_s8 = scalar_lea.vmem %s172_s5, 65536  ;;  %s5677_s9 = smov [#allocation2]  }
  0x12   : > { %p5611_p12 = scmp.ne.s32.totalorder %s172_s5, %s5610_s8  ;;  %s5615_s10 = sshll.u32 %s5677_s9, 4  ;;  %s5616_s10 = int_to_ptr.vmem [resolvable:$false] %s5615_s10 }
  0x13   : > { %s5617_s11 = scalar_lea.vmem %s5616_s10, 131072  ;;  %p5618_p1 = scmp.lt.s32.totalorder %s172_s5, %s5616_s10 }
  0x14   : > { %p5613_p13 = pnand %p5611_p12, %p5599_p11  ;;  %p5619_p2 = scmp.lt.s32.totalorder %s5617_s11, %s5610_s8 }
  0x16   : > { %p5614_p0 = pneg %p5613_p13  ;;  %p5620_p3 = por %p5619_p2, %p5618_p1 }
  0x18   : > { %p5621_p4 = pnand %p5620_p3, %p5614_p0 }
  0x1a   : > { %5624 = shalt.err (!%p5621_p4)
}
  0x1b   : > { %s5678_s12 = smov 1024   ;;  %s5679_s18 = smov 256  }
  0x1c   : > { %s5680_s20 = smov 16   ;;  %p187_p5 = scmp.lt.s32.totalorder %s5675_s17, 5 }
  0x1d   : > { %4759 = dma.hbm_to_vmem [thread:$0]  (!%p5759_p9), %s170_s30, 65536, %s172_s5, %s161_s7, %s5678_s12, %s5679_s18, %s5680_s20  }
  0x1e   : > { %p188_p6 = pnand %p4214_p10, %p187_p5 }
  0x1f   : > { %s193_s21 = sand.u32 (!%p188_p6), 1, %s5659_s13  }
  0x20   : > { %191 = sbr.rel (%p188_p6) target bundleno = 755 (0x2f3), region = 32  ;;  %s4215_s22 = sshll.u32 (!%p188_p6), %s193_s21, 12 }
  0x21   : > { %s194_s25 = scalar_lea.sflag (!%p188_p6), [#allocation3], %s193_s21  ;;  %s5772_s26 = scalar_lea.vmem (!%p188_p6), [#allocation2], %s4215_s22 }
  0x25   : > { %5650 = dma.done.wait (%p5744_p7), %s194_s25, 65536  }
  0x26   : > { %5652 = vsyncadd (%p5744_p7), %s194_s25, 4294901760  ;;  %v4812_v0 = vld [vmem:[%s5772_s26 + $0xe4] ss:$16 sps:$4 sm:$0xff]   ;;  %v4816_v2 = vld [vmem:[%s5772_s26 + $0xe0] ss:$16 sps:$4 sm:$0xff]   ;;  %s4216_s21 = sshll.u32 %s5667_s15, 2 }
  0x27   : > { %v4814_v1 = vld [vmem:[%s5772_s26 + $0x2e4] ss:$16 sps:$4 sm:$0xff]   ;;  %3412 = vmatprep.subr.bf16.mxu0 %v4812_v0  ;;  %v4817_v3 = vld [vmem:[%s5772_s26 + $0x2e0] ss:$16 sps:$4 sm:$0xff]   ;;  %v255_v48 = vld [vmem:[%s6478_s0 + $0x8] sm:$0xff]  ;;  %p240_p7 = scmp.lt.s32.totalorder %s4216_s21, 15 }
  0x28   : > { %3453 = vmatprep.subr.bf16.mxu1 %v4814_v1  ;;  %v4818_v4 = vld [vmem:[%s5772_s26 + $0xc4] ss:$16 sps:$4 sm:$0xff]   ;;  %3413 = vmatpush1.bf16.msra.mxu0 %v4816_v2  ;;  %v4822_v6 = vld [vmem:[%s5772_s26 + $0xc0] ss:$16 sps:$4 sm:$0xff]   ;;  %v5834_v51 = vcombine.high %v255_v48, %v255_v48 }
  0x29   : > { %3454 = vmatpush1.bf16.msra.mxu1 %v4817_v3  ;;  %v4820_v5 = vld [vmem:[%s5772_s26 + $0x2c4] ss:$16 sps:$4 sm:$0xff]   ;;  %3414 = vmatprep.subr.bf16.mxu0 %v4818_v4  ;;  %v4823_v7 = vld [vmem:[%s5772_s26 + $0x2c0] ss:$16 sps:$4 sm:$0xff]   ;;  %s6493_s21 = smov (!%p240_p7, %s4216_s21), 15 }
  0x2a   : > { %3455 = vmatprep.subr.bf16.mxu1 %v4820_v5  ;;  %v4824_v8 = vld [vmem:[%s5772_s26 + $0xa4] ss:$16 sps:$4 sm:$0xff]   ;;  %v4828_v10 = vld [vmem:[%s5772_s26 + $0xa0] ss:$16 sps:$4 sm:$0xff]   ;;  %3485 = vmatprep.mubr.bf16.mxu1 %v5834_v51  ;;  %s6139_s25 = scalar_lea.vmem %s6480_s2, %s6493_s21  ;;  %s4218_s23 = sshll.u32 %s6493_s21, 2 }
  0x2b   : > { %v4826_v9 = vld [vmem:[%s5772_s26 + $0x2a4] ss:$16 sps:$4 sm:$0xff]   ;;  %v4829_v11 = vld [vmem:[%s5772_s26 + $0x2a0] ss:$16 sps:$4 sm:$0xff]   ;;  %s6401_s29 = scalar_lea.vmem %s6481_s3, %s4218_s23 }
  0x2c   : > { %3415 = vmatpush1.bf16.msra.mxu0 %v4822_v6  ;;  %v4830_v12 = vld [vmem:[%s5772_s26 + $0x84] ss:$16 sps:$4 sm:$0xff]   ;;  %v4834_v14 = vld [vmem:[%s5772_s26 + $0x80] ss:$16 sps:$4 sm:$0xff]  }
  0x2d   : > { %3456 = vmatpush1.bf16.msra.mxu1 %v4823_v7  ;;  %3416 = vmatprep.subr.bf16.mxu0 %v4824_v8  ;;  %v4832_v13 = vld [vmem:[%s5772_s26 + $0x284] ss:$16 sps:$4 sm:$0xff]   ;;  %v4835_v15 = vld [vmem:[%s5772_s26 + $0x280] ss:$16 sps:$4 sm:$0xff]   ;;  %v5858_v7 = vcombine.low %v255_v48, %v255_v48 }
  0x2e   : > { %3457 = vmatprep.subr.bf16.mxu1 %v4826_v9  ;;  %v4836_v16 = vld [vmem:[%s5772_s26 + $0x64] ss:$16 sps:$4 sm:$0xff]   ;;  %v4840_v18 = vld [vmem:[%s5772_s26 + $0x60] ss:$16 sps:$4 sm:$0xff]  }
  0x2f   : > { %v4838_v17 = vld [vmem:[%s5772_s26 + $0x264] ss:$16 sps:$4 sm:$0xff]   ;;  %v4841_v19 = vld [vmem:[%s5772_s26 + $0x260] ss:$16 sps:$4 sm:$0xff]  }
  0x30   : > { %3417 = vmatpush1.bf16.msra.mxu0 %v4828_v10  ;;  %v4842_v20 = vld [vmem:[%s5772_s26 + $0x44] ss:$16 sps:$4 sm:$0xff]   ;;  %v4846_v22 = vld [vmem:[%s5772_s26 + $0x40] ss:$16 sps:$4 sm:$0xff]  }
  0x31   : > { %3458 = vmatpush1.bf16.msra.mxu1 %v4829_v11  ;;  %3418 = vmatprep.subr.bf16.mxu0 %v4830_v12  ;;  %v4844_v21 = vld [vmem:[%s5772_s26 + $0x244] ss:$16 sps:$4 sm:$0xff]   ;;  %v4847_v23 = vld [vmem:[%s5772_s26 + $0x240] ss:$16 sps:$4 sm:$0xff]  }
  0x32   : > { %3459 = vmatprep.subr.bf16.mxu1 %v4832_v13  ;;  %v4848_v24 = vld [vmem:[%s5772_s26 + $0x24] ss:$16 sps:$4 sm:$0xff]   ;;  %v4852_v26 = vld [vmem:[%s5772_s26 + $0x20] ss:$16 sps:$4 sm:$0xff]  }
  0x33   : > { %v4850_v25 = vld [vmem:[%s5772_s26 + $0x224] ss:$16 sps:$4 sm:$0xff]   ;;  %v4853_v27 = vld [vmem:[%s5772_s26 + $0x220] ss:$16 sps:$4 sm:$0xff]  }
  0x34   : > { %3419 = vmatpush1.bf16.msra.mxu0 %v4834_v14  ;;  %v4854_v28 = vld [vmem:[%s5772_s26 + $0x4] ss:$16 sps:$4 sm:$0xff]   ;;  %v4858_v30 = vld [vmem:[%s5772_s26] ss:$16 sps:$4 sm:$0xff]  }
  0x35   : > { %3460 = vmatpush1.bf16.msra.mxu1 %v4835_v15  ;;  %3420 = vmatprep.subr.bf16.mxu0 %v4836_v16  ;;  %v4856_v29 = vld [vmem:[%s5772_s26 + $0x204] ss:$16 sps:$4 sm:$0xff]   ;;  %v4859_v31 = vld [vmem:[%s5772_s26 + $0x200] ss:$16 sps:$4 sm:$0xff]  }
  0x36   : > { %3461 = vmatprep.subr.bf16.mxu1 %v4838_v17  ;;  %v4860_v32 = vld [vmem:[%s5772_s26 + $0x1e4] ss:$16 sps:$4 sm:$0xff]   ;;  %v4864_v34 = vld [vmem:[%s5772_s26 + $0x1e0] ss:$16 sps:$4 sm:$0xff]  }
  0x37   : > { %v4862_v33 = vld [vmem:[%s5772_s26 + $0x3e4] ss:$16 sps:$4 sm:$0xff]   ;;  %v4865_v35 = vld [vmem:[%s5772_s26 + $0x3e0] ss:$16 sps:$4 sm:$0xff]  }
  0x38   : > { %3421 = vmatpush1.bf16.msra.mxu0 %v4840_v18  ;;  %v4866_v36 = vld [vmem:[%s5772_s26 + $0x1c4] ss:$16 sps:$4 sm:$0xff]   ;;  %v4870_v38 = vld [vmem:[%s5772_s26 + $0x1c0] ss:$16 sps:$4 sm:$0xff]  }
  0x39   : > { %3462 = vmatpush1.bf16.msra.mxu1 %v4841_v19  ;;  %3422 = vmatprep.subr.bf16.mxu0 %v4842_v20  ;;  %v4868_v37 = vld [vmem:[%s5772_s26 + $0x3c4] ss:$16 sps:$4 sm:$0xff]   ;;  %v4871_v39 = vld [vmem:[%s5772_s26 + $0x3c0] ss:$16 sps:$4 sm:$0xff]  }
  0x3a   : > { %3463 = vmatprep.subr.bf16.mxu1 %v4844_v21  ;;  %v4872_v40 = vld [vmem:[%s5772_s26 + $0x1a4] ss:$16 sps:$4 sm:$0xff]   ;;  %v4876_v42 = vld [vmem:[%s5772_s26 + $0x1a0] ss:$16 sps:$4 sm:$0xff]  }
  0x3b   : > { %v4874_v41 = vld [vmem:[%s5772_s26 + $0x3a4] ss:$16 sps:$4 sm:$0xff]   ;;  %v4877_v43 = vld [vmem:[%s5772_s26 + $0x3a0] ss:$16 sps:$4 sm:$0xff]  }
  0x3c   : > { %3423 = vmatpush1.bf16.msra.mxu0 %v4846_v22  ;;  %v4878_v44 = vld [vmem:[%s5772_s26 + $0x184] ss:$16 sps:$4 sm:$0xff]   ;;  %v4882_v49 = vld [vmem:[%s5772_s26 + $0x180] ss:$16 sps:$4 sm:$0xff]  }
  0x3d   : > { %3464 = vmatpush1.bf16.msra.mxu1 %v4847_v23  ;;  %3424 = vmatprep.subr.bf16.mxu0 %v4848_v24  ;;  %v4880_v45 = vld [vmem:[%s5772_s26 + $0x384] ss:$16 sps:$4 sm:$0xff]   ;;  %v4883_v50 = vld [vmem:[%s5772_s26 + $0x380] ss:$16 sps:$4 sm:$0xff]  }
  0x3e   : > { %3465 = vmatprep.subr.bf16.mxu1 %v4850_v25  ;;  %v254_v46 = vld [vmem:[%s6478_s0] sm:$0xff] }
  0x3f   : > { %v5827_v47 = vcombine.high %v254_v46, %v254_v46  ;;  %v4884_v52 = vld [vmem:[%s5772_s26 + $0x164] ss:$16 sps:$4 sm:$0xff]   ;;  %v4888_v54 = vld [vmem:[%s5772_s26 + $0x160] ss:$16 sps:$4 sm:$0xff]   ;;  %v5856_v6 = vcombine.low %v254_v46, %v254_v46 }
  0x40   : > { %3425 = vmatpush1.bf16.msra.mxu0 %v4852_v26  ;;  %v4886_v53 = vld [vmem:[%s5772_s26 + $0x364] ss:$16 sps:$4 sm:$0xff]   ;;  %v4889_v55 = vld [vmem:[%s5772_s26 + $0x360] ss:$16 sps:$4 sm:$0xff]  }
  0x41   : > { %3466 = vmatpush1.bf16.msra.mxu1 %v4853_v27  ;;  %3426 = vmatprep.subr.bf16.mxu0 %v4854_v28  ;;  %v4890_v56 = vld [vmem:[%s5772_s26 + $0x144] ss:$16 sps:$4 sm:$0xff]   ;;  %v4894_v58 = vld [vmem:[%s5772_s26 + $0x140] ss:$16 sps:$4 sm:$0xff]  }
  0x42   : > { %3467 = vmatprep.subr.bf16.mxu1 %v4856_v29  ;;  %3444 = vmatprep.mubr.bf16.mxu0 %v5827_v47  ;;  %v4892_v57 = vld [vmem:[%s5772_s26 + $0x344] ss:$16 sps:$4 sm:$0xff]   ;;  %v4895_v59 = vld [vmem:[%s5772_s26 + $0x340] ss:$16 sps:$4 sm:$0xff]  }
  0x43   : > { %v4896_v60 = vld [vmem:[%s5772_s26 + $0x124] ss:$16 sps:$4 sm:$0xff]   ;;  %v4900_v62 = vld [vmem:[%s5772_s26 + $0x120] ss:$16 sps:$4 sm:$0xff]  }
  0x44   : > { %3427 = vmatpush1.bf16.msra.mxu0 %v4858_v30  ;;  %v4898_v61 = vld [vmem:[%s5772_s26 + $0x324] ss:$16 sps:$4 sm:$0xff]   ;;  %v4901_v63 = vld [vmem:[%s5772_s26 + $0x320] ss:$16 sps:$4 sm:$0xff]  }
  0x45   : > { %3468 = vmatpush1.bf16.msra.mxu1 %v4859_v31  ;;  %3428 = vmatprep.subr.bf16.mxu0 %v4860_v32  ;;  %v4902_v0 = vld [vmem:[%s5772_s26 + $0x104] ss:$16 sps:$4 sm:$0xff]   ;;  %v4906_v2 = vld [vmem:[%s5772_s26 + $0x100] ss:$16 sps:$4 sm:$0xff]  }
  0x46   : > { %3469 = vmatprep.subr.bf16.mxu1 %v4862_v33  ;;  %v4904_v1 = vld [vmem:[%s5772_s26 + $0x304] ss:$16 sps:$4 sm:$0xff]   ;;  %v4907_v3 = vld [vmem:[%s5772_s26 + $0x300] ss:$16 sps:$4 sm:$0xff]   ;;  %v5894_v33 = vld [vmem:[%s6478_s0 + $0x18] sm:$0xff] }
  0x47   : > { %v4914_v4 = vld [vmem:[%s5772_s26 + $0x4e4] ss:$16 sps:$4 sm:$0xff]   ;;  %v4912_v8 = vld [vmem:[%s5772_s26 + $0x4e0] ss:$16 sps:$4 sm:$0xff]  }
  0x48   : > { %3429 = vmatpush2.bf16.msra.mxu0 %v4864_v34  ;;  %v4917_v5 = vld [vmem:[%s5772_s26 + $0x6e4] ss:$16 sps:$4 sm:$0xff]   ;;  %v4915_v9 = vld [vmem:[%s5772_s26 + $0x6e0] ss:$16 sps:$4 sm:$0xff]  }
  0x49   : > { %3470 = vmatpush2.bf16.msra.mxu1 %v4865_v35  ;;  %3430 = vmatprep.subr.bf16.mxu0 %v4866_v36  ;;  %v4920_v10 = vld [vmem:[%s5772_s26 + $0x4c4] ss:$16 sps:$4 sm:$0xff]   ;;  %v4918_v12 = vld [vmem:[%s5772_s26 + $0x4c0] ss:$16 sps:$4 sm:$0xff]  }
  0x4a   : > { %3471 = vmatprep.subr.bf16.mxu1 %v4868_v37  ;;  %v4923_v11 = vld [vmem:[%s5772_s26 + $0x6c4] ss:$16 sps:$4 sm:$0xff]   ;;  %v4921_v13 = vld [vmem:[%s5772_s26 + $0x6c0] ss:$16 sps:$4 sm:$0xff]   ;;  %v5904_v37 = vcombine.high %v5894_v33, %v5894_v33 }
  0x4b   : > { %v4926_v14 = vld [vmem:[%s5772_s26 + $0x4a4] ss:$16 sps:$4 sm:$0xff]   ;;  %v4924_v16 = vld [vmem:[%s5772_s26 + $0x4a0] ss:$16 sps:$4 sm:$0xff]  }
  0x4c   : > { %3431 = vmatpush2.bf16.msra.mxu0 %v4870_v38  ;;  %v4929_v15 = vld [vmem:[%s5772_s26 + $0x6a4] ss:$16 sps:$4 sm:$0xff]   ;;  %v4927_v17 = vld [vmem:[%s5772_s26 + $0x6a0] ss:$16 sps:$4 sm:$0xff]  }
  0x4d   : > { %3472 = vmatpush2.bf16.msra.mxu1 %v4871_v39  ;;  %3432 = vmatprep.subr.bf16.mxu0 %v4872_v40  ;;  %v4932_v18 = vld [vmem:[%s5772_s26 + $0x484] ss:$16 sps:$4 sm:$0xff]   ;;  %v4930_v20 = vld [vmem:[%s5772_s26 + $0x480] ss:$16 sps:$4 sm:$0xff]  }
  0x4e   : > { %3473 = vmatprep.subr.bf16.mxu1 %v4874_v41  ;;  %v4935_v19 = vld [vmem:[%s5772_s26 + $0x684] ss:$16 sps:$4 sm:$0xff]   ;;  %v4933_v21 = vld [vmem:[%s5772_s26 + $0x680] ss:$16 sps:$4 sm:$0xff]  }
  0x4f   : > { %v4938_v22 = vld [vmem:[%s5772_s26 + $0x464] ss:$16 sps:$4 sm:$0xff]   ;;  %v4936_v24 = vld [vmem:[%s5772_s26 + $0x460] ss:$16 sps:$4 sm:$0xff]  }
  0x50   : > { %3433 = vmatpush2.bf16.msra.mxu0 %v4876_v42  ;;  %v4941_v23 = vld [vmem:[%s5772_s26 + $0x664] ss:$16 sps:$4 sm:$0xff]   ;;  %v4939_v25 = vld [vmem:[%s5772_s26 + $0x660] ss:$16 sps:$4 sm:$0xff]  }
  0x51   : > { %3474 = vmatpush2.bf16.msra.mxu1 %v4877_v43  ;;  %3434 = vmatprep.subr.bf16.mxu0 %v4878_v44  ;;  %v4944_v26 = vld [vmem:[%s5772_s26 + $0x444] ss:$16 sps:$4 sm:$0xff]   ;;  %v4942_v28 = vld [vmem:[%s5772_s26 + $0x440] ss:$16 sps:$4 sm:$0xff]  }
  0x52   : > { %3475 = vmatprep.subr.bf16.mxu1 %v4880_v45  ;;  %v4947_v27 = vld [vmem:[%s5772_s26 + $0x644] ss:$16 sps:$4 sm:$0xff]   ;;  %v4945_v29 = vld [vmem:[%s5772_s26 + $0x640] ss:$16 sps:$4 sm:$0xff]  }
  0x53   : > { %v4950_v30 = vld [vmem:[%s5772_s26 + $0x424] ss:$16 sps:$4 sm:$0xff]   ;;  %v4948_v34 = vld [vmem:[%s5772_s26 + $0x420] ss:$16 sps:$4 sm:$0xff]  }
  0x54   : > { %3435 = vmatpush2.bf16.msra.mxu0 %v4882_v49  ;;  %v4953_v31 = vld [vmem:[%s5772_s26 + $0x624] ss:$16 sps:$4 sm:$0xff]   ;;  %v4951_v35 = vld [vmem:[%s5772_s26 + $0x620] ss:$16 sps:$4 sm:$0xff]  }
  0x55   : > { %3476 = vmatpush2.bf16.msra.mxu1 %v4883_v50  ;;  %3436 = vmatprep.subr.bf16.mxu0 %v4884_v52  ;;  %v5889_v32 = vld [vmem:[%s6478_s0 + $0x10] sm:$0xff] }
  0x56   : > { %3477 = vmatprep.subr.bf16.mxu1 %v4886_v53  ;;  %v5900_v36 = vcombine.high %v5889_v32, %v5889_v32  ;;  %v4956_v38 = vld [vmem:[%s5772_s26 + $0x404] ss:$16 sps:$4 sm:$0xff]   ;;  %v4954_v40 = vld [vmem:[%s5772_s26 + $0x400] ss:$16 sps:$4 sm:$0xff]  }
  0x57   : > { %v4959_v39 = vld [vmem:[%s5772_s26 + $0x604] ss:$16 sps:$4 sm:$0xff]   ;;  %v4957_v41 = vld [vmem:[%s5772_s26 + $0x600] ss:$16 sps:$4 sm:$0xff]  }
  0x58   : > { %3437 = vmatpush2.bf16.msra.mxu0 %v4888_v54  ;;  %v4962_v42 = vld [vmem:[%s5772_s26 + $0x5e4] ss:$16 sps:$4 sm:$0xff]   ;;  %v4960_v44 = vld [vmem:[%s5772_s26 + $0x5e0] ss:$16 sps:$4 sm:$0xff]  }
  0x59   : > { %3478 = vmatpush2.bf16.msra.mxu1 %v4889_v55  ;;  %3438 = vmatprep.subr.bf16.mxu0 %v4890_v56  ;;  %v4965_v43 = vld [vmem:[%s5772_s26 + $0x7e4] ss:$16 sps:$4 sm:$0xff]   ;;  %v4963_v45 = vld [vmem:[%s5772_s26 + $0x7e0] ss:$16 sps:$4 sm:$0xff]  }
  0x5a   : > { %3479 = vmatprep.subr.bf16.mxu1 %v4892_v57  ;;  %v4968_v46 = vld [vmem:[%s5772_s26 + $0x5c4] ss:$16 sps:$4 sm:$0xff]   ;;  %v4966_v49 = vld [vmem:[%s5772_s26 + $0x5c0] ss:$16 sps:$4 sm:$0xff]  }
  0x5b   : > { %v4971_v48 = vld [vmem:[%s5772_s26 + $0x7c4] ss:$16 sps:$4 sm:$0xff]   ;;  %v4969_v50 = vld [vmem:[%s5772_s26 + $0x7c0] ss:$16 sps:$4 sm:$0xff]  }
  0x5c   : > { %3439 = vmatpush2.bf16.msra.mxu0 %v4894_v58  ;;  %v4974_v52 = vld [vmem:[%s5772_s26 + $0x5a4] ss:$16 sps:$4 sm:$0xff]   ;;  %v4972_v54 = vld [vmem:[%s5772_s26 + $0x5a0] ss:$16 sps:$4 sm:$0xff]  }
  0x5d   : > { %3480 = vmatpush2.bf16.msra.mxu1 %v4895_v59  ;;  %3440 = vmatprep.subr.bf16.mxu0 %v4896_v60  ;;  %v4977_v53 = vld [vmem:[%s5772_s26 + $0x7a4] ss:$16 sps:$4 sm:$0xff]   ;;  %v4975_v55 = vld [vmem:[%s5772_s26 + $0x7a0] ss:$16 sps:$4 sm:$0xff]  }
  0x5e   : > { %3481 = vmatprep.subr.bf16.mxu1 %v4898_v61  ;;  %v4980_v56 = vld [vmem:[%s5772_s26 + $0x584] ss:$16 sps:$4 sm:$0xff]   ;;  %v4978_v58 = vld [vmem:[%s5772_s26 + $0x580] ss:$16 sps:$4 sm:$0xff]  }
  0x5f   : > { %v4983_v57 = vld [vmem:[%s5772_s26 + $0x784] ss:$16 sps:$4 sm:$0xff]   ;;  %v4981_v59 = vld [vmem:[%s5772_s26 + $0x780] ss:$16 sps:$4 sm:$0xff]  }
  0x60   : > { %3441 = vmatpush2.bf16.msra.mxu0 %v4900_v62  ;;  %v4986_v60 = vld [vmem:[%s5772_s26 + $0x564] ss:$16 sps:$4 sm:$0xff]   ;;  %v4984_v62 = vld [vmem:[%s5772_s26 + $0x560] ss:$16 sps:$4 sm:$0xff]  }
  0x61   : > { %3482 = vmatpush2.bf16.msra.mxu1 %v4901_v63  ;;  %3442 = vmatprep.subr.bf16.mxu0 %v4902_v0  ;;  %v4989_v61 = vld [vmem:[%s5772_s26 + $0x764] ss:$16 sps:$4 sm:$0xff]   ;;  %v4987_v63 = vld [vmem:[%s5772_s26 + $0x760] ss:$16 sps:$4 sm:$0xff]  }
  0x62   : > { %3483 = vmatprep.subr.bf16.mxu1 %v4904_v1  ;;  %v4992_v0 = vld [vmem:[%s5772_s26 + $0x544] ss:$16 sps:$4 sm:$0xff]  }
  0x63   : > { %v4995_v1 = vld [vmem:[%s5772_s26 + $0x744] ss:$16 sps:$4 sm:$0xff]  }
  0x64   : > { %3443 = vmatpush2.bf16.msra.mxu0 %v4906_v2  ;;  %v4990_v2 = vld [vmem:[%s5772_s26 + $0x540] ss:$16 sps:$4 sm:$0xff]  }
  0x65   : > { %3484 = vmatpush2.bf16.msra.mxu1 %v4907_v3  ;;  %3494 = vmatprep.subr.bf16.mxu0 %v4914_v4  ;;  %v4993_v3 = vld [vmem:[%s5772_s26 + $0x740] ss:$16 sps:$4 sm:$0xff]   ;;  %v4998_v4 = vld [vmem:[%s5772_s26 + $0x524] ss:$16 sps:$4 sm:$0xff]  }
  0x66   : > { %3535 = vmatprep.subr.bf16.mxu1 %v4917_v5  ;;  %v5001_v5 = vld [vmem:[%s5772_s26 + $0x724] ss:$16 sps:$4 sm:$0xff]  }
  0x67   : > { %3445 = vmatmul.mubr.bf16.vlgmr.msra.gmra.mxu0 %v5856_v6 }
  0x68   : > { %3486 = vmatmul.mubr.bf16.vlgmr.msra.gmra.mxu1 %v5858_v7  ;;  %3495 = vmatpush1.bf16.msra.mxu0 %v4912_v8  ;;  %v4996_v8 = vld [vmem:[%s5772_s26 + $0x520] ss:$16 sps:$4 sm:$0xff]  }
  0x69   : > { %3536 = vmatpush1.bf16.msra.mxu1 %v4915_v9  ;;  %3496 = vmatprep.subr.bf16.mxu0 %v4920_v10  ;;  %v4999_v9 = vld [vmem:[%s5772_s26 + $0x720] ss:$16 sps:$4 sm:$0xff]   ;;  %v5004_v10 = vld [vmem:[%s5772_s26 + $0x504] ss:$16 sps:$4 sm:$0xff]  }
  0x6a   : > { %3537 = vmatprep.subr.bf16.mxu1 %v4923_v11  ;;  %3526 = vmatprep.mubr.bf16.mxu0 %v5900_v36  ;;  %v5007_v11 = vld [vmem:[%s5772_s26 + $0x704] ss:$16 sps:$4 sm:$0xff]  }
  0x6b   : > { %3567 = vmatprep.mubr.bf16.mxu1 %v5904_v37 }
  0x6c   : > { %3497 = vmatpush1.bf16.msra.mxu0 %v4918_v12  ;;  %v5002_v12 = vld [vmem:[%s5772_s26 + $0x500] ss:$16 sps:$4 sm:$0xff]  }
  0x6d   : > { %3538 = vmatpush1.bf16.msra.mxu1 %v4921_v13  ;;  %3498 = vmatprep.subr.bf16.mxu0 %v4926_v14  ;;  %v5005_v13 = vld [vmem:[%s5772_s26 + $0x700] ss:$16 sps:$4 sm:$0xff]   ;;  %v5014_v14 = vld [vmem:[%s5772_s26 + $0x8e4] ss:$16 sps:$4 sm:$0xff]  }
  0x6e   : > { %3539 = vmatprep.subr.bf16.mxu1 %v4929_v15  ;;  %v5017_v15 = vld [vmem:[%s5772_s26 + $0xae4] ss:$16 sps:$4 sm:$0xff]  }
  0x70   : > { %3499 = vmatpush1.bf16.msra.mxu0 %v4924_v16  ;;  %v5948_v16 = vcombine.low %v5889_v32, %v5889_v32  ;;  %v5032_v32 = vld [vmem:[%s5772_s26 + $0x884] ss:$16 sps:$4 sm:$0xff]  }
  0x71   : > { %3540 = vmatpush1.bf16.msra.mxu1 %v4927_v17  ;;  %3500 = vmatprep.subr.bf16.mxu0 %v4932_v18  ;;  %v5952_v17 = vcombine.low %v5894_v33, %v5894_v33  ;;  %v5012_v18 = vld [vmem:[%s5772_s26 + $0x8e0] ss:$16 sps:$4 sm:$0xff]   ;;  %v5035_v33 = vld [vmem:[%s5772_s26 + $0xa84] ss:$16 sps:$4 sm:$0xff]  }
  0x72   : > { %3541 = vmatprep.subr.bf16.mxu1 %v4935_v19  ;;  %v5015_v19 = vld [vmem:[%s5772_s26 + $0xae0] ss:$16 sps:$4 sm:$0xff]  }
  0x74   : > { %3501 = vmatpush1.bf16.msra.mxu0 %v4930_v20  ;;  %v5020_v20 = vld [vmem:[%s5772_s26 + $0x8c4] ss:$16 sps:$4 sm:$0xff]  }
  0x75   : > { %3542 = vmatpush1.bf16.msra.mxu1 %v4933_v21  ;;  %3502 = vmatprep.subr.bf16.mxu0 %v4938_v22  ;;  %v5023_v21 = vld [vmem:[%s5772_s26 + $0xac4] ss:$16 sps:$4 sm:$0xff]  }
  0x76   : > { %3543 = vmatprep.subr.bf16.mxu1 %v4941_v23  ;;  %v5961_v22 = vld [vmem:[%s6478_s0 + $0x20] sm:$0xff]  ;;  %v5966_v23 = vld [vmem:[%s6478_s0 + $0x28] sm:$0xff] }
  0x78   : > { %3503 = vmatpush1.bf16.msra.mxu0 %v4936_v24  ;;  %v5970_v24 = vcombine.high %v5961_v22, %v5961_v22 }
  0x79   : > { %3544 = vmatpush1.bf16.msra.mxu1 %v4939_v25  ;;  %3504 = vmatprep.subr.bf16.mxu0 %v4944_v26  ;;  %v5974_v25 = vcombine.high %v5966_v23, %v5966_v23  ;;  %v5018_v26 = vld [vmem:[%s5772_s26 + $0x8c0] ss:$16 sps:$4 sm:$0xff]  }
  0x7a   : > { %3545 = vmatprep.subr.bf16.mxu1 %v4947_v27  ;;  %v5021_v27 = vld [vmem:[%s5772_s26 + $0xac0] ss:$16 sps:$4 sm:$0xff]  }
  0x7c   : > { %3505 = vmatpush1.bf16.msra.mxu0 %v4942_v28  ;;  %v5026_v28 = vld [vmem:[%s5772_s26 + $0x8a4] ss:$16 sps:$4 sm:$0xff]  }
  0x7d   : > { %3546 = vmatpush1.bf16.msra.mxu1 %v4945_v29  ;;  %3506 = vmatprep.subr.bf16.mxu0 %v4950_v30  ;;  %v5029_v29 = vld [vmem:[%s5772_s26 + $0xaa4] ss:$16 sps:$4 sm:$0xff]   ;;  %v5024_v30 = vld [vmem:[%s5772_s26 + $0x8a0] ss:$16 sps:$4 sm:$0xff]  }
  0x7e   : > { %3547 = vmatprep.subr.bf16.mxu1 %v4953_v31  ;;  %v5027_v31 = vld [vmem:[%s5772_s26 + $0xaa0] ss:$16 sps:$4 sm:$0xff]  }
  0x80   : > { %3507 = vmatpush1.bf16.msra.mxu0 %v4948_v34  ;;  %v5030_v34 = vld [vmem:[%s5772_s26 + $0x880] ss:$16 sps:$4 sm:$0xff]  }
  0x81   : > { %3548 = vmatpush1.bf16.msra.mxu1 %v4951_v35  ;;  %3508 = vmatprep.subr.bf16.mxu0 %v4956_v38  ;;  %v5033_v35 = vld [vmem:[%s5772_s26 + $0xa80] ss:$16 sps:$4 sm:$0xff]   ;;  %v5038_v38 = vld [vmem:[%s5772_s26 + $0x864] ss:$16 sps:$4 sm:$0xff]  }
  0x82   : > { %3549 = vmatprep.subr.bf16.mxu1 %v4959_v39  ;;  %v5041_v39 = vld [vmem:[%s5772_s26 + $0xa64] ss:$16 sps:$4 sm:$0xff]  }
  0x84   : > { %3509 = vmatpush1.bf16.msra.mxu0 %v4954_v40  ;;  %v5036_v40 = vld [vmem:[%s5772_s26 + $0x860] ss:$16 sps:$4 sm:$0xff]  }
  0x85   : > { %3550 = vmatpush1.bf16.msra.mxu1 %v4957_v41  ;;  %3510 = vmatprep.subr.bf16.mxu0 %v4962_v42  ;;  %v5039_v41 = vld [vmem:[%s5772_s26 + $0xa60] ss:$16 sps:$4 sm:$0xff]   ;;  %v5044_v42 = vld [vmem:[%s5772_s26 + $0x844] ss:$16 sps:$4 sm:$0xff]  }
  0x86   : > { %3551 = vmatprep.subr.bf16.mxu1 %v4965_v43  ;;  %v5047_v43 = vld [vmem:[%s5772_s26 + $0xa44] ss:$16 sps:$4 sm:$0xff]  }
  0x88   : > { %3511 = vmatpush2.bf16.msra.mxu0 %v4960_v44  ;;  %v5042_v44 = vld [vmem:[%s5772_s26 + $0x840] ss:$16 sps:$4 sm:$0xff]  }
  0x89   : > { %3552 = vmatpush2.bf16.msra.mxu1 %v4963_v45  ;;  %3512 = vmatprep.subr.bf16.mxu0 %v4968_v46  ;;  %v5045_v45 = vld [vmem:[%s5772_s26 + $0xa40] ss:$16 sps:$4 sm:$0xff]   ;;  %v5050_v46 = vld [vmem:[%s5772_s26 + $0x824] ss:$16 sps:$4 sm:$0xff]  }
  0x8a   : > { %3553 = vmatprep.subr.bf16.mxu1 %v4971_v48  ;;  %v5053_v48 = vld [vmem:[%s5772_s26 + $0xa24] ss:$16 sps:$4 sm:$0xff]  }
  0x8c   : > { %3513 = vmatpush2.bf16.msra.mxu0 %v4966_v49  ;;  %v5048_v49 = vld [vmem:[%s5772_s26 + $0x820] ss:$16 sps:$4 sm:$0xff]  }
  0x8d   : > { %3554 = vmatpush2.bf16.msra.mxu1 %v4969_v50  ;;  %3514 = vmatprep.subr.bf16.mxu0 %v4974_v52  ;;  %v5051_v50 = vld [vmem:[%s5772_s26 + $0xa20] ss:$16 sps:$4 sm:$0xff]   ;;  %v5056_v52 = vld [vmem:[%s5772_s26 + $0x804] ss:$16 sps:$4 sm:$0xff]  }
  0x8e   : > { %3555 = vmatprep.subr.bf16.mxu1 %v4977_v53  ;;  %v5059_v53 = vld [vmem:[%s5772_s26 + $0xa04] ss:$16 sps:$4 sm:$0xff]  }
  0x90   : > { %3515 = vmatpush2.bf16.msra.mxu0 %v4972_v54  ;;  %v5054_v54 = vld [vmem:[%s5772_s26 + $0x800] ss:$16 sps:$4 sm:$0xff]  }
  0x91   : > { %3556 = vmatpush2.bf16.msra.mxu1 %v4975_v55  ;;  %3516 = vmatprep.subr.bf16.mxu0 %v4980_v56  ;;  %v5057_v55 = vld [vmem:[%s5772_s26 + $0xa00] ss:$16 sps:$4 sm:$0xff]   ;;  %v5062_v56 = vld [vmem:[%s5772_s26 + $0x9e4] ss:$16 sps:$4 sm:$0xff]  }
  0x92   : > { %3557 = vmatprep.subr.bf16.mxu1 %v4983_v57  ;;  %v5065_v57 = vld [vmem:[%s5772_s26 + $0xbe4] ss:$16 sps:$4 sm:$0xff]  }
  0x94   : > { %3517 = vmatpush2.bf16.msra.mxu0 %v4978_v58  ;;  %v5060_v58 = vld [vmem:[%s5772_s26 + $0x9e0] ss:$16 sps:$4 sm:$0xff]  }
  0x95   : > { %3558 = vmatpush2.bf16.msra.mxu1 %v4981_v59  ;;  %3518 = vmatprep.subr.bf16.mxu0 %v4986_v60  ;;  %v5063_v59 = vld [vmem:[%s5772_s26 + $0xbe0] ss:$16 sps:$4 sm:$0xff]   ;;  %v5068_v60 = vld [vmem:[%s5772_s26 + $0x9c4] ss:$16 sps:$4 sm:$0xff]  }
  0x96   : > { %3559 = vmatprep.subr.bf16.mxu1 %v4989_v61  ;;  %v5071_v61 = vld [vmem:[%s5772_s26 + $0xbc4] ss:$16 sps:$4 sm:$0xff]  }
  0x98   : > { %3519 = vmatpush2.bf16.msra.mxu0 %v4984_v62  ;;  %v5066_v62 = vld [vmem:[%s5772_s26 + $0x9c0] ss:$16 sps:$4 sm:$0xff]  }
  0x99   : > { %3560 = vmatpush2.bf16.msra.mxu1 %v4987_v63  ;;  %3520 = vmatprep.subr.bf16.mxu0 %v4992_v0  ;;  %v5069_v63 = vld [vmem:[%s5772_s26 + $0xbc0] ss:$16 sps:$4 sm:$0xff]   ;;  %v5074_v0 = vld [vmem:[%s5772_s26 + $0x9a4] ss:$16 sps:$4 sm:$0xff]  }
  0x9a   : > { %3561 = vmatprep.subr.bf16.mxu1 %v4995_v1  ;;  %v5077_v1 = vld [vmem:[%s5772_s26 + $0xba4] ss:$16 sps:$4 sm:$0xff]  }
  0x9c   : > { %3521 = vmatpush2.bf16.msra.mxu0 %v4990_v2  ;;  %v5072_v2 = vld [vmem:[%s5772_s26 + $0x9a0] ss:$16 sps:$4 sm:$0xff]  }
  0x9d   : > { %3562 = vmatpush2.bf16.msra.mxu1 %v4993_v3  ;;  %3522 = vmatprep.subr.bf16.mxu0 %v4998_v4  ;;  %v5075_v3 = vld [vmem:[%s5772_s26 + $0xba0] ss:$16 sps:$4 sm:$0xff]   ;;  %v5080_v4 = vld [vmem:[%s5772_s26 + $0x984] ss:$16 sps:$4 sm:$0xff]  }
  0x9e   : > { %3563 = vmatprep.subr.bf16.mxu1 %v5001_v5  ;;  %v5083_v5 = vld [vmem:[%s5772_s26 + $0xb84] ss:$16 sps:$4 sm:$0xff]  }
  0xa0   : > { %3523 = vmatpush2.bf16.msra.mxu0 %v4996_v8  ;;  %v5078_v8 = vld [vmem:[%s5772_s26 + $0x980] ss:$16 sps:$4 sm:$0xff]  }
  0xa1   : > { %3564 = vmatpush2.bf16.msra.mxu1 %v4999_v9  ;;  %3524 = vmatprep.subr.bf16.mxu0 %v5004_v10  ;;  %v5081_v9 = vld [vmem:[%s5772_s26 + $0xb80] ss:$16 sps:$4 sm:$0xff]   ;;  %v5086_v10 = vld [vmem:[%s5772_s26 + $0x964] ss:$16 sps:$4 sm:$0xff]  }
  0xa2   : > { %3565 = vmatprep.subr.bf16.mxu1 %v5007_v11  ;;  %v5089_v11 = vld [vmem:[%s5772_s26 + $0xb64] ss:$16 sps:$4 sm:$0xff]  }
  0xa4   : > { %3525 = vmatpush2.bf16.msra.mxu0 %v5002_v12  ;;  %v5084_v12 = vld [vmem:[%s5772_s26 + $0x960] ss:$16 sps:$4 sm:$0xff]  }
  0xa5   : > { %3566 = vmatpush2.bf16.msra.mxu1 %v5005_v13  ;;  %3576 = vmatprep.subr.bf16.mxu0 %v5014_v14  ;;  %v5087_v13 = vld [vmem:[%s5772_s26 + $0xb60] ss:$16 sps:$4 sm:$0xff]   ;;  %v5092_v14 = vld [vmem:[%s5772_s26 + $0x944] ss:$16 sps:$4 sm:$0xff]  }
  0xa6   : > { %3617 = vmatprep.subr.bf16.mxu1 %v5017_v15  ;;  %v5095_v15 = vld [vmem:[%s5772_s26 + $0xb44] ss:$16 sps:$4 sm:$0xff]  }
  0xa7   : > { %3527 = vmatmul.mubr.bf16.vlgmr.msra.gmra.mxu0 %v5948_v16 }
  0xa8   : > { %3568 = vmatmul.mubr.bf16.vlgmr.msra.gmra.mxu1 %v5952_v17  ;;  %3577 = vmatpush1.bf16.msra.mxu0 %v5012_v18  ;;  %v5090_v18 = vld [vmem:[%s5772_s26 + $0x940] ss:$16 sps:$4 sm:$0xff]  }
  0xa9   : > { %3618 = vmatpush1.bf16.msra.mxu1 %v5015_v19  ;;  %3578 = vmatprep.subr.bf16.mxu0 %v5020_v20  ;;  %v5093_v19 = vld [vmem:[%s5772_s26 + $0xb40] ss:$16 sps:$4 sm:$0xff]   ;;  %v5098_v20 = vld [vmem:[%s5772_s26 + $0x924] ss:$16 sps:$4 sm:$0xff]  }
  0xaa   : > { %3619 = vmatprep.subr.bf16.mxu1 %v5023_v21  ;;  %3608 = vmatprep.mubr.bf16.mxu0 %v5970_v24  ;;  %v5101_v21 = vld [vmem:[%s5772_s26 + $0xb24] ss:$16 sps:$4 sm:$0xff]  }
  0xab   : > { %3649 = vmatprep.mubr.bf16.mxu1 %v5974_v25 }
  0xac   : > { %3579 = vmatpush1.bf16.msra.mxu0 %v5018_v26  ;;  %v5096_v26 = vld [vmem:[%s5772_s26 + $0x920] ss:$16 sps:$4 sm:$0xff]  }
  0xad   : > { %3620 = vmatpush1.bf16.msra.mxu1 %v5021_v27  ;;  %3580 = vmatprep.subr.bf16.mxu0 %v5026_v28  ;;  %v5099_v27 = vld [vmem:[%s5772_s26 + $0xb20] ss:$16 sps:$4 sm:$0xff]   ;;  %v5104_v28 = vld [vmem:[%s5772_s26 + $0x904] ss:$16 sps:$4 sm:$0xff]  }
  0xae   : > { %3621 = vmatprep.subr.bf16.mxu1 %v5029_v29  ;;  %v5107_v29 = vld [vmem:[%s5772_s26 + $0xb04] ss:$16 sps:$4 sm:$0xff]  }
  0xb0   : > { %3581 = vmatpush1.bf16.msra.mxu0 %v5024_v30  ;;  %v5102_v30 = vld [vmem:[%s5772_s26 + $0x900] ss:$16 sps:$4 sm:$0xff]  }
  0xb1   : > { %3622 = vmatpush1.bf16.msra.mxu1 %v5027_v31  ;;  %3582 = vmatprep.subr.bf16.mxu0 %v5032_v32  ;;  %v5105_v31 = vld [vmem:[%s5772_s26 + $0xb00] ss:$16 sps:$4 sm:$0xff]   ;;  %v5114_v32 = vld [vmem:[%s5772_s26 + $0xce4] ss:$16 sps:$4 sm:$0xff]  }
  0xb2   : > { %3623 = vmatprep.subr.bf16.mxu1 %v5035_v33  ;;  %v5117_v33 = vld [vmem:[%s5772_s26 + $0xee4] ss:$16 sps:$4 sm:$0xff]  }
  0xb4   : > { %3583 = vmatpush1.bf16.msra.mxu0 %v5030_v34  ;;  %v5112_v34 = vld [vmem:[%s5772_s26 + $0xce0] ss:$16 sps:$4 sm:$0xff]  }
  0xb5   : > { %3624 = vmatpush1.bf16.msra.mxu1 %v5033_v35  ;;  %3584 = vmatprep.subr.bf16.mxu0 %v5038_v38  ;;  %v6044_v35 = vld [vmem:[%s6478_s0 + $0x30] sm:$0xff]  ;;  %v6048_v38 = vcombine.low %v5961_v22, %v5961_v22 }
  0xb6   : > { %3625 = vmatprep.subr.bf16.mxu1 %v5041_v39  ;;  %v6052_v39 = vcombine.low %v5966_v23, %v5966_v23  ;;  %v5123_v22 = vld [vmem:[%s5772_s26 + $0xec4] ss:$16 sps:$4 sm:$0xff]   ;;  %v6064_v23 = vcombine.high %v6044_v35, %v6044_v35 }
  0xb8   : > { %3585 = vmatpush1.bf16.msra.mxu0 %v5036_v40  ;;  %v6057_v40 = vld [vmem:[%s6478_s0 + $0x38] sm:$0xff] }
  0xb9   : > { %3626 = vmatpush1.bf16.msra.mxu1 %v5039_v41  ;;  %3586 = vmatprep.subr.bf16.mxu0 %v5044_v42  ;;  %v5115_v41 = vld [vmem:[%s5772_s26 + $0xee0] ss:$16 sps:$4 sm:$0xff]   ;;  %v5120_v42 = vld [vmem:[%s5772_s26 + $0xcc4] ss:$16 sps:$4 sm:$0xff]  }
  0xba   : > { %3627 = vmatprep.subr.bf16.mxu1 %v5047_v43  ;;  %v6068_v43 = vcombine.high %v6057_v40, %v6057_v40 }
  0xbc   : > { %3587 = vmatpush1.bf16.msra.mxu0 %v5042_v44  ;;  %v5118_v44 = vld [vmem:[%s5772_s26 + $0xcc0] ss:$16 sps:$4 sm:$0xff]  }
  0xbd   : > { %3628 = vmatpush1.bf16.msra.mxu1 %v5045_v45  ;;  %3588 = vmatprep.subr.bf16.mxu0 %v5050_v46  ;;  %v5121_v45 = vld [vmem:[%s5772_s26 + $0xec0] ss:$16 sps:$4 sm:$0xff]   ;;  %v5126_v46 = vld [vmem:[%s5772_s26 + $0xca4] ss:$16 sps:$4 sm:$0xff]  }
  0xbe   : > { %3629 = vmatprep.subr.bf16.mxu1 %v5053_v48  ;;  %v5129_v48 = vld [vmem:[%s5772_s26 + $0xea4] ss:$16 sps:$4 sm:$0xff]  }
  0xc0   : > { %3589 = vmatpush1.bf16.msra.mxu0 %v5048_v49  ;;  %v5124_v49 = vld [vmem:[%s5772_s26 + $0xca0] ss:$16 sps:$4 sm:$0xff]  }
  0xc1   : > { %3630 = vmatpush1.bf16.msra.mxu1 %v5051_v50  ;;  %3590 = vmatprep.subr.bf16.mxu0 %v5056_v52  ;;  %v5127_v50 = vld [vmem:[%s5772_s26 + $0xea0] ss:$16 sps:$4 sm:$0xff]   ;;  %v5132_v52 = vld [vmem:[%s5772_s26 + $0xc84] ss:$16 sps:$4 sm:$0xff]  }
  0xc2   : > { %3631 = vmatprep.subr.bf16.mxu1 %v5059_v53  ;;  %v5135_v53 = vld [vmem:[%s5772_s26 + $0xe84] ss:$16 sps:$4 sm:$0xff]  }
  0xc4   : > { %3591 = vmatpush1.bf16.msra.mxu0 %v5054_v54  ;;  %v5130_v54 = vld [vmem:[%s5772_s26 + $0xc80] ss:$16 sps:$4 sm:$0xff]  }
  0xc5   : > { %3632 = vmatpush1.bf16.msra.mxu1 %v5057_v55  ;;  %3592 = vmatprep.subr.bf16.mxu0 %v5062_v56  ;;  %v5133_v55 = vld [vmem:[%s5772_s26 + $0xe80] ss:$16 sps:$4 sm:$0xff]   ;;  %v5138_v56 = vld [vmem:[%s5772_s26 + $0xc64] ss:$16 sps:$4 sm:$0xff]  }
  0xc6   : > { %3633 = vmatprep.subr.bf16.mxu1 %v5065_v57  ;;  %v5141_v57 = vld [vmem:[%s5772_s26 + $0xe64] ss:$16 sps:$4 sm:$0xff]  }
  0xc8   : > { %3593 = vmatpush2.bf16.msra.mxu0 %v5060_v58  ;;  %v5136_v58 = vld [vmem:[%s5772_s26 + $0xc60] ss:$16 sps:$4 sm:$0xff]  }
  0xc9   : > { %3634 = vmatpush2.bf16.msra.mxu1 %v5063_v59  ;;  %3594 = vmatprep.subr.bf16.mxu0 %v5068_v60  ;;  %v5139_v59 = vld [vmem:[%s5772_s26 + $0xe60] ss:$16 sps:$4 sm:$0xff]   ;;  %v5144_v60 = vld [vmem:[%s5772_s26 + $0xc44] ss:$16 sps:$4 sm:$0xff]  }
  0xca   : > { %3635 = vmatprep.subr.bf16.mxu1 %v5071_v61  ;;  %v5147_v61 = vld [vmem:[%s5772_s26 + $0xe44] ss:$16 sps:$4 sm:$0xff]  }
  0xcc   : > { %3595 = vmatpush2.bf16.msra.mxu0 %v5066_v62  ;;  %v5142_v62 = vld [vmem:[%s5772_s26 + $0xc40] ss:$16 sps:$4 sm:$0xff]  }
  0xcd   : > { %3636 = vmatpush2.bf16.msra.mxu1 %v5069_v63  ;;  %3596 = vmatprep.subr.bf16.mxu0 %v5074_v0  ;;  %v5145_v63 = vld [vmem:[%s5772_s26 + $0xe40] ss:$16 sps:$4 sm:$0xff]   ;;  %v5150_v0 = vld [vmem:[%s5772_s26 + $0xc24] ss:$16 sps:$4 sm:$0xff]  }
  0xce   : > { %3637 = vmatprep.subr.bf16.mxu1 %v5077_v1  ;;  %v5153_v1 = vld [vmem:[%s5772_s26 + $0xe24] ss:$16 sps:$4 sm:$0xff]  }
  0xd0   : > { %3597 = vmatpush2.bf16.msra.mxu0 %v5072_v2  ;;  %v5148_v2 = vld [vmem:[%s5772_s26 + $0xc20] ss:$16 sps:$4 sm:$0xff]  }
  0xd1   : > { %3638 = vmatpush2.bf16.msra.mxu1 %v5075_v3  ;;  %3598 = vmatprep.subr.bf16.mxu0 %v5080_v4  ;;  %v5151_v3 = vld [vmem:[%s5772_s26 + $0xe20] ss:$16 sps:$4 sm:$0xff]   ;;  %v5156_v4 = vld [vmem:[%s5772_s26 + $0xc04] ss:$16 sps:$4 sm:$0xff]  }
  0xd2   : > { %3639 = vmatprep.subr.bf16.mxu1 %v5083_v5  ;;  %v5159_v5 = vld [vmem:[%s5772_s26 + $0xe04] ss:$16 sps:$4 sm:$0xff]  }
  0xd4   : > { %3599 = vmatpush2.bf16.msra.mxu0 %v5078_v8  ;;  %v5154_v8 = vld [vmem:[%s5772_s26 + $0xc00] ss:$16 sps:$4 sm:$0xff]  }
  0xd5   : > { %3640 = vmatpush2.bf16.msra.mxu1 %v5081_v9  ;;  %3600 = vmatprep.subr.bf16.mxu0 %v5086_v10  ;;  %v5157_v9 = vld [vmem:[%s5772_s26 + $0xe00] ss:$16 sps:$4 sm:$0xff]   ;;  %v5162_v10 = vld [vmem:[%s5772_s26 + $0xde4] ss:$16 sps:$4 sm:$0xff]  }
  0xd6   : > { %3641 = vmatprep.subr.bf16.mxu1 %v5089_v11  ;;  %v5165_v11 = vld [vmem:[%s5772_s26 + $0xfe4] ss:$16 sps:$4 sm:$0xff]  }
  0xd8   : > { %3601 = vmatpush2.bf16.msra.mxu0 %v5084_v12  ;;  %v5160_v12 = vld [vmem:[%s5772_s26 + $0xde0] ss:$16 sps:$4 sm:$0xff]  }
  0xd9   : > { %3642 = vmatpush2.bf16.msra.mxu1 %v5087_v13  ;;  %3602 = vmatprep.subr.bf16.mxu0 %v5092_v14  ;;  %v5163_v13 = vld [vmem:[%s5772_s26 + $0xfe0] ss:$16 sps:$4 sm:$0xff]   ;;  %v5168_v14 = vld [vmem:[%s5772_s26 + $0xdc4] ss:$16 sps:$4 sm:$0xff]  }
  0xda   : > { %3643 = vmatprep.subr.bf16.mxu1 %v5095_v15  ;;  %v5171_v15 = vld [vmem:[%s5772_s26 + $0xfc4] ss:$16 sps:$4 sm:$0xff]  }
  0xdc   : > { %3603 = vmatpush2.bf16.msra.mxu0 %v5090_v18  ;;  %v5166_v18 = vld [vmem:[%s5772_s26 + $0xdc0] ss:$16 sps:$4 sm:$0xff]  }
  0xdd   : > { %3644 = vmatpush2.bf16.msra.mxu1 %v5093_v19  ;;  %3604 = vmatprep.subr.bf16.mxu0 %v5098_v20  ;;  %v5169_v19 = vld [vmem:[%s5772_s26 + $0xfc0] ss:$16 sps:$4 sm:$0xff]   ;;  %v5174_v20 = vld [vmem:[%s5772_s26 + $0xda4] ss:$16 sps:$4 sm:$0xff]  }
  0xde   : > { %3645 = vmatprep.subr.bf16.mxu1 %v5101_v21  ;;  %v5177_v21 = vld [vmem:[%s5772_s26 + $0xfa4] ss:$16 sps:$4 sm:$0xff]  }
  0xe0   : > { %3605 = vmatpush2.bf16.msra.mxu0 %v5096_v26  ;;  %v5172_v26 = vld [vmem:[%s5772_s26 + $0xda0] ss:$16 sps:$4 sm:$0xff]  }
  0xe1   : > { %3646 = vmatpush2.bf16.msra.mxu1 %v5099_v27  ;;  %3606 = vmatprep.subr.bf16.mxu0 %v5104_v28  ;;  %v5175_v27 = vld [vmem:[%s5772_s26 + $0xfa0] ss:$16 sps:$4 sm:$0xff]   ;;  %v5180_v28 = vld [vmem:[%s5772_s26 + $0xd84] ss:$16 sps:$4 sm:$0xff]  }
  0xe2   : > { %3647 = vmatprep.subr.bf16.mxu1 %v5107_v29  ;;  %v5183_v29 = vld [vmem:[%s5772_s26 + $0xf84] ss:$16 sps:$4 sm:$0xff]  }
  0xe4   : > { %3607 = vmatpush2.bf16.msra.mxu0 %v5102_v30  ;;  %v5178_v30 = vld [vmem:[%s5772_s26 + $0xd80] ss:$16 sps:$4 sm:$0xff]  }
  0xe5   : > { %3648 = vmatpush2.bf16.msra.mxu1 %v5105_v31  ;;  %3658 = vmatprep.subr.bf16.mxu0 %v5114_v32  ;;  %v5181_v31 = vld [vmem:[%s5772_s26 + $0xf80] ss:$16 sps:$4 sm:$0xff]   ;;  %v5186_v32 = vld [vmem:[%s5772_s26 + $0xd64] ss:$16 sps:$4 sm:$0xff]  }
  0xe6   : > { %3699 = vmatprep.subr.bf16.mxu1 %v5117_v33  ;;  %v5189_v33 = vld [vmem:[%s5772_s26 + $0xf64] ss:$16 sps:$4 sm:$0xff]  }
  0xe7   : > { %3609 = vmatmul.mubr.bf16.vlgmr.msra.gmra.mxu0 %v6048_v38 }
  0xe8   : > { %3650 = vmatmul.mubr.bf16.vlgmr.msra.gmra.mxu1 %v6052_v39  ;;  %3659 = vmatpush1.bf16.msra.mxu0 %v5112_v34  ;;  %v5184_v34 = vld [vmem:[%s5772_s26 + $0xd60] ss:$16 sps:$4 sm:$0xff]  }
  0xe9   : > { %3700 = vmatpush1.bf16.msra.mxu1 %v5115_v41  ;;  %3660 = vmatprep.subr.bf16.mxu0 %v5120_v42  ;;  %v5187_v41 = vld [vmem:[%s5772_s26 + $0xf60] ss:$16 sps:$4 sm:$0xff]   ;;  %v5192_v42 = vld [vmem:[%s5772_s26 + $0xd44] ss:$16 sps:$4 sm:$0xff]  }
  0xea   : > { %3701 = vmatprep.subr.bf16.mxu1 %v5123_v22  ;;  %3690 = vmatprep.mubr.bf16.mxu0 %v6064_v23  ;;  %v5195_v22 = vld [vmem:[%s5772_s26 + $0xf44] ss:$16 sps:$4 sm:$0xff]  }
  0xeb   : > { %3731 = vmatprep.mubr.bf16.mxu1 %v6068_v43 }
  0xec   : > { %3661 = vmatpush1.bf16.msra.mxu0 %v5118_v44  ;;  %v5190_v44 = vld [vmem:[%s5772_s26 + $0xd40] ss:$16 sps:$4 sm:$0xff]  }
  0xed   : > { %3702 = vmatpush1.bf16.msra.mxu1 %v5121_v45  ;;  %3662 = vmatprep.subr.bf16.mxu0 %v5126_v46  ;;  %v5193_v45 = vld [vmem:[%s5772_s26 + $0xf40] ss:$16 sps:$4 sm:$0xff]   ;;  %v776_v46 = vlaneseq }
  0xee   : > { %3703 = vmatprep.subr.bf16.mxu1 %v5129_v48  ;;  %v5198_v48 = vld [vmem:[%s5772_s26 + $0xd24] ss:$16 sps:$4 sm:$0xff]  }
  0xf0   : > { %3663 = vmatpush1.bf16.msra.mxu0 %v5124_v49  ;;  %v5201_v49 = vld [vmem:[%s5772_s26 + $0xf24] ss:$16 sps:$4 sm:$0xff]  }
  0xf1   : > { %3704 = vmatpush1.bf16.msra.mxu1 %v5127_v50  ;;  %3664 = vmatprep.subr.bf16.mxu0 %v5132_v52  ;;  %v5196_v50 = vld [vmem:[%s5772_s26 + $0xd20] ss:$16 sps:$4 sm:$0xff]  }
  0xf2   : > { %3705 = vmatprep.subr.bf16.mxu1 %v5135_v53  ;;  %v5199_v52 = vld [vmem:[%s5772_s26 + $0xf20] ss:$16 sps:$4 sm:$0xff]   ;;  %v6131_v53 = vshrl.u32 %v776_v46, 7  ;;  %v5245_v46 = vld [vmem:[%s5772_s26 + $0x248] ss:$16 sps:$4 sm:$0xff]  }
  0xf4   : > { %3665 = vmatpush1.bf16.msra.mxu0 %v5130_v54  ;;  %v5204_v54 = vld [vmem:[%s5772_s26 + $0xd04] ss:$16 sps:$4 sm:$0xff]  }
  0xf5   : > { %3706 = vmatpush1.bf16.msra.mxu1 %v5133_v55  ;;  %3666 = vmatprep.subr.bf16.mxu0 %v5138_v56  ;;  %v5207_v55 = vld [vmem:[%s5772_s26 + $0xf04] ss:$16 sps:$4 sm:$0xff]   ;;  %v5202_v56 = vld [vmem:[%s5772_s26 + $0xd00] ss:$16 sps:$4 sm:$0xff]  }
  0xf6   : > { %3707 = vmatprep.subr.bf16.mxu1 %v5141_v57  ;;  %v5205_v57 = vld [vmem:[%s5772_s26 + $0xf00] ss:$16 sps:$4 sm:$0xff]  }
  0xf8   : > { %3667 = vmatpush1.bf16.msra.mxu0 %v5136_v58  ;;  %v774_v58 = vld [vmem:[%s6139_s25] sm:$0xf] }
  0xf9   : > { %3708 = vmatpush1.bf16.msra.mxu1 %v5139_v59  ;;  %3668 = vmatprep.subr.bf16.mxu0 %v5144_v60  ;;  %v778_v59 = vsub.s32 0, %v6131_v53  ;;  %v5214_v60 = vld [vmem:[%s5772_s26 + $0xec] ss:$16 sps:$4 sm:$0xff]  }
  0xfa   : > { %3709 = vmatprep.subr.bf16.mxu1 %v5147_v61  ;;  %v5217_v61 = vld [vmem:[%s5772_s26 + $0x2ec] ss:$16 sps:$4 sm:$0xff]  }
  0xfc   : > { %3669 = vmatpush1.bf16.msra.mxu0 %v5142_v62  ;;  %v782_v62 = vsub.s32 1, %v6131_v53 }
  0xfd   : > { %3710 = vmatpush1.bf16.msra.mxu1 %v5145_v63  ;;  %3670 = vmatprep.subr.bf16.mxu0 %v5150_v0  ;;  %v6150_v63 = vcombine.low %v6044_v35, %v6044_v35  ;;  %v6154_v0 = vcombine.low %v6057_v40, %v6057_v40  ;;  %v5218_v40 = vld [vmem:[%s5772_s26 + $0xc8] ss:$16 sps:$4 sm:$0xff]  }
  0xfe   : > { %3711 = vmatprep.subr.bf16.mxu1 %v5153_v1  ;;  %v5212_v1 = vld [vmem:[%s5772_s26 + $0xe8] ss:$16 sps:$4 sm:$0xff]  }
 0x100   : > { %3671 = vmatpush1.bf16.msra.mxu0 %v5148_v2  ;;  %v779_v2 = vrot.slane %v774_v58, %v778_v59  ;;  %v5265_v59 = vld [vmem:[%s5772_s26 + $0x3ec] ss:$16 sps:$4 sm:$0xff]  }
 0x101   : > { %3712 = vmatpush1.bf16.msra.mxu1 %v5151_v3  ;;  %3672 = vmatprep.subr.bf16.mxu0 %v5156_v4  ;;  %v5215_v3 = vld [vmem:[%s5772_s26 + $0x2e8] ss:$16 sps:$4 sm:$0xff]   ;;  %v5220_v4 = vld [vmem:[%s5772_s26 + $0xcc] ss:$16 sps:$4 sm:$0xff]  }
 0x102   : > { %3713 = vmatprep.subr.bf16.mxu1 %v5159_v5  ;;  %v5223_v5 = vld [vmem:[%s5772_s26 + $0x2cc] ss:$16 sps:$4 sm:$0xff]  }
 0x104   : > { %3673 = vmatpush1.bf16.msra.mxu0 %v5154_v8  ;;  %v783_v8 = vrot.slane %v774_v58, %v782_v62  ;;  %v5262_v58 = vld [vmem:[%s5772_s26 + $0x1ec] ss:$16 sps:$4 sm:$0xff]  }
 0x105   : > { %3714 = vmatpush1.bf16.msra.mxu1 %v5157_v9  ;;  %3674 = vmatprep.subr.bf16.mxu0 %v5162_v10  ;;  %v5268_v62 = vld [vmem:[%s5772_s26 + $0x1cc] ss:$16 sps:$4 sm:$0xff]  }
 0x106   : > { %3715 = vmatprep.subr.bf16.mxu1 %v5165_v11  ;;  %v5221_v11 = vld [vmem:[%s5772_s26 + $0x2c8] ss:$16 sps:$4 sm:$0xff]  }
 0x108   : > { %3675 = vmatpush2.bf16.msra.mxu0 %v5160_v12 }
 0x109   : > { %3716 = vmatpush2.bf16.msra.mxu1 %v5163_v13  ;;  %3676 = vmatprep.subr.bf16.mxu0 %v5168_v14  ;;  %v5226_v14 = vld [vmem:[%s5772_s26 + $0xac] ss:$16 sps:$4 sm:$0xff]  }
 0x10a   : > { %3717 = vmatprep.subr.bf16.mxu1 %v5171_v15  ;;  %v5229_v15 = vld [vmem:[%s5772_s26 + $0x2ac] ss:$16 sps:$4 sm:$0xff]  }
 0x10c   : > { %3677 = vmatpush2.bf16.msra.mxu0 %v5166_v18 }
 0x10d   : > { %3718 = vmatpush2.bf16.msra.mxu1 %v5169_v19  ;;  %3678 = vmatprep.subr.bf16.mxu0 %v5174_v20 }
 0x10e   : > { %3719 = vmatprep.subr.bf16.mxu1 %v5177_v21 }
 0x110   : > { %3679 = vmatpush2.bf16.msra.mxu0 %v5172_v26  ;;  %v5224_v26 = vld [vmem:[%s5772_s26 + $0xa8] ss:$16 sps:$4 sm:$0xff]  }
 0x111   : > { %3720 = vmatpush2.bf16.msra.mxu1 %v5175_v27  ;;  %3680 = vmatprep.subr.bf16.mxu0 %v5180_v28  ;;  %v5227_v28 = vld [vmem:[%s5772_s26 + $0x2a8] ss:$16 sps:$4 sm:$0xff]  }
 0x112   : > { %3721 = vmatprep.subr.bf16.mxu1 %v5183_v29 }
 0x114   : > { %3681 = vmatpush2.bf16.msra.mxu0 %v5178_v30 }
 0x115   : > { %3722 = vmatpush2.bf16.msra.mxu1 %v5181_v31  ;;  %3682 = vmatprep.subr.bf16.mxu0 %v5186_v32  ;;  %v5230_v31 = vld [vmem:[%s5772_s26 + $0x88] ss:$16 sps:$4 sm:$0xff]  }
 0x116   : > { %3723 = vmatprep.subr.bf16.mxu1 %v5189_v33  ;;  %v5233_v32 = vld [vmem:[%s5772_s26 + $0x288] ss:$16 sps:$4 sm:$0xff]   ;;  %v5238_v33 = vld [vmem:[%s5772_s26 + $0x6c] ss:$16 sps:$4 sm:$0xff]  }
 0x118   : > { %3683 = vmatpush2.bf16.msra.mxu0 %v5184_v34  ;;  %v5241_v34 = vld [vmem:[%s5772_s26 + $0x26c] ss:$16 sps:$4 sm:$0xff]  }
 0x119   : > { %3724 = vmatpush2.bf16.msra.mxu1 %v5187_v41  ;;  %3684 = vmatprep.subr.bf16.mxu0 %v5192_v42  ;;  %v5236_v41 = vld [vmem:[%s5772_s26 + $0x68] ss:$16 sps:$4 sm:$0xff]  }
 0x11a   : > { %3725 = vmatprep.subr.bf16.mxu1 %v5195_v22  ;;  %v5239_v42 = vld [vmem:[%s5772_s26 + $0x268] ss:$16 sps:$4 sm:$0xff]   ;;  %v5244_v22 = vld [vmem:[%s5772_s26 + $0x4c] ss:$16 sps:$4 sm:$0xff]  }
 0x11c   : > { %3685 = vmatpush2.bf16.msra.mxu0 %v5190_v44  ;;  %v5247_v44 = vld [vmem:[%s5772_s26 + $0x24c] ss:$16 sps:$4 sm:$0xff]  }
 0x11d   : > { %3726 = vmatpush2.bf16.msra.mxu1 %v5193_v45  ;;  %3686 = vmatprep.subr.bf16.mxu0 %v5198_v48  ;;  %v5242_v45 = vld [vmem:[%s5772_s26 + $0x48] ss:$16 sps:$4 sm:$0xff]   ;;  %v5250_v48 = vld [vmem:[%s5772_s26 + $0x2c] ss:$16 sps:$4 sm:$0xff]  }
 0x11e   : > { %3727 = vmatprep.subr.bf16.mxu1 %v5201_v49  ;;  %v5253_v49 = vld [vmem:[%s5772_s26 + $0x22c] ss:$16 sps:$4 sm:$0xff]  }
 0x120   : > { %3687 = vmatpush2.bf16.msra.mxu0 %v5196_v50  ;;  %v5248_v50 = vld [vmem:[%s5772_s26 + $0x28] ss:$16 sps:$4 sm:$0xff]  }
 0x121   : > { %3728 = vmatpush2.bf16.msra.mxu1 %v5199_v52  ;;  %3688 = vmatprep.subr.bf16.mxu0 %v5204_v54  ;;  %v5251_v52 = vld [vmem:[%s5772_s26 + $0x228] ss:$16 sps:$4 sm:$0xff]   ;;  %v5256_v54 = vld [vmem:[%s5772_s26 + $0xc] ss:$16 sps:$4 sm:$0xff]  }
 0x122   : > { %3729 = vmatprep.subr.bf16.mxu1 %v5207_v55  ;;  %v5259_v55 = vld [vmem:[%s5772_s26 + $0x20c] ss:$16 sps:$4 sm:$0xff]  }
 0x124   : > { %3689 = vmatpush2.bf16.msra.mxu0 %v5202_v56  ;;  %v5254_v56 = vld [vmem:[%s5772_s26 + $0x8] ss:$16 sps:$4 sm:$0xff]  }
 0x125   : > { %3730 = vmatpush2.bf16.msra.mxu1 %v5205_v57  ;;  %3740 = vmatprep.subr.bf16.mxu0 %v5214_v60  ;;  %v5257_v57 = vld [vmem:[%s5772_s26 + $0x208] ss:$16 sps:$4 sm:$0xff]  }
 0x126   : > { %3781 = vmatprep.subr.bf16.mxu1 %v5217_v61  ;;  %v5260_v60 = vld [vmem:[%s5772_s26 + $0x1e8] ss:$16 sps:$4 sm:$0xff]  }
 0x127   : > { %v3446_v35 = vpop.f32.mrf.mxu0  ;;  %3691 = vmatmul.mubr.bf16.vlgmr.msra.gmra.mxu0 %v6150_v63  ;;  %v5263_v61 = vld [vmem:[%s5772_s26 + $0x3e8] ss:$16 sps:$4 sm:$0xff]  }
 0x128   : > { %v3487_v9 = vpop.f32.mrf.mxu1  ;;  %3732 = vmatmul.mubr.bf16.vlgmr.msra.gmra.mxu1 %v6154_v0  ;;  %v3447_v10 = vadd.f32 %v3446_v35, %v779_v2  ;;  %3741 = vmatpush1.bf16.msra.mxu0 %v5212_v1  ;;  %v5271_v1 = vld [vmem:[%s5772_s26 + $0x3cc] ss:$16 sps:$4 sm:$0xff]   ;;  %v5266_v2 = vld [vmem:[%s5772_s26 + $0x1c8] ss:$16 sps:$4 sm:$0xff]  }
 0x129   : > { %3782 = vmatpush1.bf16.msra.mxu1 %v5215_v3  ;;  %v3448_v12 = vpop.f32.mrf.mxu0  ;;  %3742 = vmatprep.subr.bf16.mxu0 %v5220_v4  ;;  %v5269_v3 = vld [vmem:[%s5772_s26 + $0x3c8] ss:$16 sps:$4 sm:$0xff]   ;;  %v5274_v4 = vld [vmem:[%s5772_s26 + $0x1ac] ss:$16 sps:$4 sm:$0xff]  }
 0x12a   : > { %v3489_v13 = vpop.f32.mrf.mxu1  ;;  %3783 = vmatprep.subr.bf16.mxu1 %v5223_v5  ;;  %v6166_v18 = vadd.f32 %v3487_v9, %v3447_v10  ;;  %v3449_v19 = vadd.f32 %v3448_v12, %v783_v8  ;;  %3772 = vmatprep.mubr.bf16.mxu0 %v5827_v47  ;;  %v5232_v47 = vld [vmem:[%s5772_s26 + $0x8c] ss:$16 sps:$4 sm:$0xff]   ;;  %v5272_v8 = vld [vmem:[%s5772_s26 + $0x1a8] ss:$16 sps:$4 sm:$0xff]  }
 0x12b   : > { %3813 = vmatprep.mubr.bf16.mxu1 %v5834_v51  ;;  %v3450_v20 = vpop.f32.mrf.mxu0  ;;  %v5235_v51 = vld [vmem:[%s5772_s26 + $0x28c] ss:$16 sps:$4 sm:$0xff]   ;;  %v5275_v35 = vld [vmem:[%s5772_s26 + $0x3a8] ss:$16 sps:$4 sm:$0xff]  }
 0x12c   : > { %v3491_v21 = vpop.f32.mrf.mxu1  ;;  %v6171_v27 = vadd.f32 %v3489_v13, %v3449_v19  ;;  %3743 = vmatpush1.bf16.msra.mxu0 %v5218_v40  ;;  %v5277_v5 = vld [vmem:[%s5772_s26 + $0x3ac] ss:$16 sps:$4 sm:$0xff]   ;;  %v5278_v10 = vld [vmem:[%s5772_s26 + $0x188] ss:$16 sps:$4 sm:$0xff]  }
 0x12d   : > { %3784 = vmatpush1.bf16.msra.mxu1 %v5221_v11  ;;  %v3451_v29 = vpop.f32.mrf.mxu0  ;;  %3744 = vmatprep.subr.bf16.mxu0 %v5226_v14  ;;  %v5280_v9 = vld [vmem:[%s5772_s26 + $0x18c] ss:$16 sps:$4 sm:$0xff]   ;;  %v5281_v11 = vld [vmem:[%s5772_s26 + $0x388] ss:$16 sps:$4 sm:$0xff]  }
 0x12e   : > { %v3492_v30 = vpop.f32.mrf.mxu1  ;;  %3785 = vmatprep.subr.bf16.mxu1 %v5229_v15  ;;  %v5283_v40 = vld [vmem:[%s5772_s26 + $0x38c] ss:$16 sps:$4 sm:$0xff]   ;;  %v5284_v14 = vld [vmem:[%s5772_s26 + $0x168] ss:$16 sps:$4 sm:$0xff]  }
 0x12f   : > { %v5286_v12 = vld [vmem:[%s5772_s26 + $0x16c] ss:$16 sps:$4 sm:$0xff]   ;;  %v5287_v15 = vld [vmem:[%s5772_s26 + $0x368] ss:$16 sps:$4 sm:$0xff]  }
 0x130   : > { %3745 = vmatpush1.bf16.msra.mxu0 %v5224_v26  ;;  %v5289_v13 = vld [vmem:[%s5772_s26 + $0x36c] ss:$16 sps:$4 sm:$0xff]   ;;  %v5290_v21 = vld [vmem:[%s5772_s26 + $0x148] ss:$16 sps:$4 sm:$0xff]  }
 0x131   : > { %3786 = vmatpush1.bf16.msra.mxu1 %v5227_v28  ;;  %3746 = vmatprep.subr.bf16.mxu0 %v5232_v47  ;;  %v5292_v19 = vld [vmem:[%s5772_s26 + $0x14c] ss:$16 sps:$4 sm:$0xff]   ;;  %v5293_v26 = vld [vmem:[%s5772_s26 + $0x348] ss:$16 sps:$4 sm:$0xff]  }
 0x132   : > { %3787 = vmatprep.subr.bf16.mxu1 %v5235_v51  ;;  %v5295_v20 = vld [vmem:[%s5772_s26 + $0x34c] ss:$16 sps:$4 sm:$0xff]   ;;  %v5296_v30 = vld [vmem:[%s5772_s26 + $0x128] ss:$16 sps:$4 sm:$0xff]  }
 0x133   : > { %v5298_v28 = vld [vmem:[%s5772_s26 + $0x12c] ss:$16 sps:$4 sm:$0xff]   ;;  %v5299_v47 = vld [vmem:[%s5772_s26 + $0x328] ss:$16 sps:$4 sm:$0xff]  }
 0x134   : > { %3747 = vmatpush1.bf16.msra.mxu0 %v5230_v31  ;;  %v5301_v29 = vld [vmem:[%s5772_s26 + $0x32c] ss:$16 sps:$4 sm:$0xff]  }
 0x135   : > { %3788 = vmatpush1.bf16.msra.mxu1 %v5233_v32  ;;  %3748 = vmatprep.subr.bf16.mxu0 %v5238_v33  ;;  %v5304_v51 = vld [vmem:[%s5772_s26 + $0x10c] ss:$16 sps:$4 sm:$0xff]   ;;  %v5302_v32 = vld [vmem:[%s5772_s26 + $0x108] ss:$16 sps:$4 sm:$0xff]  }
 0x136   : > { %3789 = vmatprep.subr.bf16.mxu1 %v5241_v34  ;;  %v5307_v31 = vld [vmem:[%s5772_s26 + $0x30c] ss:$16 sps:$4 sm:$0xff]   ;;  %v5305_v33 = vld [vmem:[%s5772_s26 + $0x308] ss:$16 sps:$4 sm:$0xff]  }
 0x137   : > { %v5310_v34 = vld [vmem:[%s5772_s26 + $0x4ec] ss:$16 sps:$4 sm:$0xff]  }
 0x138   : > { %3749 = vmatpush1.bf16.msra.mxu0 %v5236_v41  ;;  %v5313_v41 = vld [vmem:[%s5772_s26 + $0x6ec] ss:$16 sps:$4 sm:$0xff]  }
 0x139   : > { %3790 = vmatpush1.bf16.msra.mxu1 %v5239_v42  ;;  %3750 = vmatprep.subr.bf16.mxu0 %v5244_v22  ;;  %v5308_v42 = vld [vmem:[%s5772_s26 + $0x4e8] ss:$16 sps:$4 sm:$0xff]  }
 0x13a   : > { %3791 = vmatprep.subr.bf16.mxu1 %v5247_v44  ;;  %v5311_v22 = vld [vmem:[%s5772_s26 + $0x6e8] ss:$16 sps:$4 sm:$0xff]   ;;  %v5316_v44 = vld [vmem:[%s5772_s26 + $0x4cc] ss:$16 sps:$4 sm:$0xff]  }
 0x13c   : > { %3751 = vmatpush1.bf16.msra.mxu0 %v5242_v45  ;;  %v5319_v45 = vld [vmem:[%s5772_s26 + $0x6cc] ss:$16 sps:$4 sm:$0xff]  }
 0x13d   : > { %3792 = vmatpush1.bf16.msra.mxu1 %v5245_v46  ;;  %3752 = vmatprep.subr.bf16.mxu0 %v5250_v48 }
 0x13e   : > { %3793 = vmatprep.subr.bf16.mxu1 %v5253_v49 }
 0x140   : > { %3753 = vmatpush1.bf16.msra.mxu0 %v5248_v50  ;;  %v5314_v50 = vld [vmem:[%s5772_s26 + $0x4c8] ss:$16 sps:$4 sm:$0xff]  }
 0x141   : > { %3794 = vmatpush1.bf16.msra.mxu1 %v5251_v52  ;;  %3754 = vmatprep.subr.bf16.mxu0 %v5256_v54  ;;  %v5317_v52 = vld [vmem:[%s5772_s26 + $0x6c8] ss:$16 sps:$4 sm:$0xff]  }
 0x142   : > { %3795 = vmatprep.subr.bf16.mxu1 %v5259_v55 }
 0x144   : > { %3755 = vmatpush1.bf16.msra.mxu0 %v5254_v56  ;;  %v5322_v56 = vld [vmem:[%s5772_s26 + $0x4ac] ss:$16 sps:$4 sm:$0xff]  }
 0x145   : > { %3796 = vmatpush1.bf16.msra.mxu1 %v5257_v57  ;;  %3756 = vmatprep.subr.bf16.mxu0 %v5262_v58  ;;  %v5325_v57 = vld [vmem:[%s5772_s26 + $0x6ac] ss:$16 sps:$4 sm:$0xff]  }
 0x146   : > { %3797 = vmatprep.subr.bf16.mxu1 %v5265_v59 }
 0x148   : > { %3757 = vmatpush2.bf16.msra.mxu0 %v5260_v60  ;;  %v5320_v60 = vld [vmem:[%s5772_s26 + $0x4a8] ss:$16 sps:$4 sm:$0xff]  }
 0x149   : > { %3798 = vmatpush2.bf16.msra.mxu1 %v5263_v61  ;;  %3758 = vmatprep.subr.bf16.mxu0 %v5268_v62  ;;  %v5323_v61 = vld [vmem:[%s5772_s26 + $0x6a8] ss:$16 sps:$4 sm:$0xff]  }
 0x14a   : > { %3799 = vmatprep.subr.bf16.mxu1 %v5271_v1 }
 0x14c   : > { %3759 = vmatpush2.bf16.msra.mxu0 %v5266_v2  ;;  %v5329_v2 = vld [vmem:[%s5772_s26 + $0x688] ss:$16 sps:$4 sm:$0xff]  }
 0x14d   : > { %3800 = vmatpush2.bf16.msra.mxu1 %v5269_v3  ;;  %3760 = vmatprep.subr.bf16.mxu0 %v5274_v4  ;;  %v5334_v3 = vld [vmem:[%s5772_s26 + $0x46c] ss:$16 sps:$4 sm:$0xff]  }
 0x14e   : > { %3801 = vmatprep.subr.bf16.mxu1 %v5277_v5  ;;  %v5337_v4 = vld [vmem:[%s5772_s26 + $0x66c] ss:$16 sps:$4 sm:$0xff]   ;;  %v5332_v5 = vld [vmem:[%s5772_s26 + $0x468] ss:$16 sps:$4 sm:$0xff]  }
 0x150   : > { %3761 = vmatpush2.bf16.msra.mxu0 %v5272_v8  ;;  %v5335_v8 = vld [vmem:[%s5772_s26 + $0x668] ss:$16 sps:$4 sm:$0xff]  }
 0x151   : > { %3802 = vmatpush2.bf16.msra.mxu1 %v5275_v35  ;;  %3762 = vmatprep.subr.bf16.mxu0 %v5280_v9  ;;  %v5340_v35 = vld [vmem:[%s5772_s26 + $0x44c] ss:$16 sps:$4 sm:$0xff]  }
 0x152   : > { %3803 = vmatprep.subr.bf16.mxu1 %v5283_v40  ;;  %v5343_v9 = vld [vmem:[%s5772_s26 + $0x64c] ss:$16 sps:$4 sm:$0xff]   ;;  %v5338_v40 = vld [vmem:[%s5772_s26 + $0x448] ss:$16 sps:$4 sm:$0xff]  }
 0x154   : > { %3763 = vmatpush2.bf16.msra.mxu0 %v5278_v10  ;;  %v5341_v10 = vld [vmem:[%s5772_s26 + $0x648] ss:$16 sps:$4 sm:$0xff]  }
 0x155   : > { %3804 = vmatpush2.bf16.msra.mxu1 %v5281_v11  ;;  %3764 = vmatprep.subr.bf16.mxu0 %v5286_v12  ;;  %v5346_v11 = vld [vmem:[%s5772_s26 + $0x42c] ss:$16 sps:$4 sm:$0xff]  }
 0x156   : > { %3805 = vmatprep.subr.bf16.mxu1 %v5289_v13  ;;  %v5349_v12 = vld [vmem:[%s5772_s26 + $0x62c] ss:$16 sps:$4 sm:$0xff]   ;;  %v5344_v13 = vld [vmem:[%s5772_s26 + $0x428] ss:$16 sps:$4 sm:$0xff]  }
 0x158   : > { %3765 = vmatpush2.bf16.msra.mxu0 %v5284_v14  ;;  %v5347_v14 = vld [vmem:[%s5772_s26 + $0x628] ss:$16 sps:$4 sm:$0xff]  }
 0x159   : > { %3806 = vmatpush2.bf16.msra.mxu1 %v5287_v15  ;;  %3766 = vmatprep.subr.bf16.mxu0 %v5292_v19  ;;  %v5352_v15 = vld [vmem:[%s5772_s26 + $0x40c] ss:$16 sps:$4 sm:$0xff]  }
 0x15a   : > { %3807 = vmatprep.subr.bf16.mxu1 %v5295_v20  ;;  %v5355_v19 = vld [vmem:[%s5772_s26 + $0x60c] ss:$16 sps:$4 sm:$0xff]   ;;  %v5350_v20 = vld [vmem:[%s5772_s26 + $0x408] ss:$16 sps:$4 sm:$0xff]  }
 0x15c   : > { %3767 = vmatpush2.bf16.msra.mxu0 %v5290_v21  ;;  %v5353_v21 = vld [vmem:[%s5772_s26 + $0x608] ss:$16 sps:$4 sm:$0xff]  }
 0x15d   : > { %3808 = vmatpush2.bf16.msra.mxu1 %v5293_v26  ;;  %3768 = vmatprep.subr.bf16.mxu0 %v5298_v28  ;;  %v5358_v26 = vld [vmem:[%s5772_s26 + $0x5ec] ss:$16 sps:$4 sm:$0xff]  }
 0x15e   : > { %3809 = vmatprep.subr.bf16.mxu1 %v5301_v29  ;;  %v5361_v28 = vld [vmem:[%s5772_s26 + $0x7ec] ss:$16 sps:$4 sm:$0xff]   ;;  %v5356_v29 = vld [vmem:[%s5772_s26 + $0x5e8] ss:$16 sps:$4 sm:$0xff]  }
 0x160   : > { %3769 = vmatpush2.bf16.msra.mxu0 %v5296_v30  ;;  %v5359_v30 = vld [vmem:[%s5772_s26 + $0x7e8] ss:$16 sps:$4 sm:$0xff]  }
 0x161   : > { %3810 = vmatpush2.bf16.msra.mxu1 %v5299_v47  ;;  %3770 = vmatprep.subr.bf16.mxu0 %v5304_v51  ;;  %v5364_v47 = vld [vmem:[%s5772_s26 + $0x5cc] ss:$16 sps:$4 sm:$0xff]  }
 0x162   : > { %3811 = vmatprep.subr.bf16.mxu1 %v5307_v31  ;;  %v5367_v51 = vld [vmem:[%s5772_s26 + $0x7cc] ss:$16 sps:$4 sm:$0xff]   ;;  %v5362_v31 = vld [vmem:[%s5772_s26 + $0x5c8] ss:$16 sps:$4 sm:$0xff]  }
 0x164   : > { %3771 = vmatpush2.bf16.msra.mxu0 %v5302_v32  ;;  %v5365_v32 = vld [vmem:[%s5772_s26 + $0x7c8] ss:$16 sps:$4 sm:$0xff]  }
 0x165   : > { %3812 = vmatpush2.bf16.msra.mxu1 %v5305_v33  ;;  %3822 = vmatprep.subr.bf16.mxu0 %v5310_v34  ;;  %v5370_v33 = vld [vmem:[%s5772_s26 + $0x5ac] ss:$16 sps:$4 sm:$0xff]  }
 0x166   : > { %3863 = vmatprep.subr.bf16.mxu1 %v5313_v41  ;;  %v5373_v34 = vld [vmem:[%s5772_s26 + $0x7ac] ss:$16 sps:$4 sm:$0xff]   ;;  %v5368_v41 = vld [vmem:[%s5772_s26 + $0x5a8] ss:$16 sps:$4 sm:$0xff]  }
 0x167   : > { %v3528_v46 = vpop.f32.mrf.mxu0  ;;  %3773 = vmatmul.mubr.bf16.vlgmr.msra.gmra.mxu0 %v5856_v6 }
 0x168   : > { %v3569_v48 = vpop.f32.mrf.mxu1  ;;  %3814 = vmatmul.mubr.bf16.vlgmr.msra.gmra.mxu1 %v5858_v7  ;;  %v3529_v49 = vadd.f32 %v3528_v46, %v6166_v18  ;;  %3823 = vmatpush1.bf16.msra.mxu0 %v5308_v42  ;;  %v5371_v42 = vld [vmem:[%s5772_s26 + $0x7a8] ss:$16 sps:$4 sm:$0xff]  }
 0x169   : > { %3864 = vmatpush1.bf16.msra.mxu1 %v5311_v22  ;;  %v3530_v54 = vpop.f32.mrf.mxu0  ;;  %3824 = vmatprep.subr.bf16.mxu0 %v5316_v44  ;;  %v5376_v22 = vld [vmem:[%s5772_s26 + $0x58c] ss:$16 sps:$4 sm:$0xff]   ;;  %v5377_v46 = vld [vmem:[%s5772_s26 + $0x788] ss:$16 sps:$4 sm:$0xff]  }
 0x16a   : > { %v3571_v55 = vpop.f32.mrf.mxu1  ;;  %3865 = vmatprep.subr.bf16.mxu1 %v5319_v45  ;;  %v6239_v58 = vadd.f32 %v3569_v48, %v3529_v49  ;;  %v3531_v6 = vadd.f32 %v3530_v54, %v6171_v27  ;;  %3854 = vmatprep.mubr.bf16.mxu0 %v5900_v36  ;;  %v5328_v36 = vld [vmem:[%s5772_s26 + $0x48c] ss:$16 sps:$4 sm:$0xff]   ;;  %v5326_v27 = vld [vmem:[%s5772_s26 + $0x488] ss:$16 sps:$4 sm:$0xff]  }
 0x16b   : > { %3895 = vmatprep.mubr.bf16.mxu1 %v5904_v37  ;;  %v3532_v7 = vpop.f32.mrf.mxu0  ;;  %v5331_v37 = vld [vmem:[%s5772_s26 + $0x68c] ss:$16 sps:$4 sm:$0xff]   ;;  %v5374_v45 = vld [vmem:[%s5772_s26 + $0x588] ss:$16 sps:$4 sm:$0xff]  }
 0x16c   : > { %v3573_v18 = vpop.f32.mrf.mxu1  ;;  %v6244_v59 = vadd.f32 %v3571_v55, %v3531_v6  ;;  %3825 = vmatpush1.bf16.msra.mxu0 %v5314_v50  ;;  %v5379_v44 = vld [vmem:[%s5772_s26 + $0x78c] ss:$16 sps:$4 sm:$0xff]   ;;  %v5380_v50 = vld [vmem:[%s5772_s26 + $0x568] ss:$16 sps:$4 sm:$0xff]  }
 0x16d   : > { %3866 = vmatpush1.bf16.msra.mxu1 %v5317_v52  ;;  %v3533_v62 = vpop.f32.mrf.mxu0  ;;  %3826 = vmatprep.subr.bf16.mxu0 %v5322_v56  ;;  %v5382_v48 = vld [vmem:[%s5772_s26 + $0x56c] ss:$16 sps:$4 sm:$0xff]   ;;  %v5383_v52 = vld [vmem:[%s5772_s26 + $0x768] ss:$16 sps:$4 sm:$0xff]  }
 0x16e   : > { %v3574_v1 = vpop.f32.mrf.mxu1  ;;  %3867 = vmatprep.subr.bf16.mxu1 %v5325_v57  ;;  %v5385_v49 = vld [vmem:[%s5772_s26 + $0x76c] ss:$16 sps:$4 sm:$0xff]   ;;  %v5386_v56 = vld [vmem:[%s5772_s26 + $0x548] ss:$16 sps:$4 sm:$0xff]  }
 0x16f   : > { %v5388_v54 = vld [vmem:[%s5772_s26 + $0x54c] ss:$16 sps:$4 sm:$0xff]   ;;  %v5389_v57 = vld [vmem:[%s5772_s26 + $0x748] ss:$16 sps:$4 sm:$0xff]  }
 0x170   : > { %3827 = vmatpush1.bf16.msra.mxu0 %v5320_v60  ;;  %v5391_v55 = vld [vmem:[%s5772_s26 + $0x74c] ss:$16 sps:$4 sm:$0xff]   ;;  %v5392_v18 = vld [vmem:[%s5772_s26 + $0x528] ss:$16 sps:$4 sm:$0xff]  }
 0x171   : > { %3868 = vmatpush1.bf16.msra.mxu1 %v5323_v61  ;;  %3828 = vmatprep.subr.bf16.mxu0 %v5328_v36  ;;  %v5394_v6 = vld [vmem:[%s5772_s26 + $0x52c] ss:$16 sps:$4 sm:$0xff]   ;;  %v5395_v60 = vld [vmem:[%s5772_s26 + $0x728] ss:$16 sps:$4 sm:$0xff]  }
 0x172   : > { %3869 = vmatprep.subr.bf16.mxu1 %v5331_v37  ;;  %v5397_v7 = vld [vmem:[%s5772_s26 + $0x72c] ss:$16 sps:$4 sm:$0xff]   ;;  %v5398_v1 = vld [vmem:[%s5772_s26 + $0x508] ss:$16 sps:$4 sm:$0xff]  }
 0x173   : > { %v5400_v61 = vld [vmem:[%s5772_s26 + $0x50c] ss:$16 sps:$4 sm:$0xff]   ;;  %v5401_v36 = vld [vmem:[%s5772_s26 + $0x708] ss:$16 sps:$4 sm:$0xff]  }
 0x174   : > { %3829 = vmatpush1.bf16.msra.mxu0 %v5326_v27  ;;  %v5403_v62 = vld [vmem:[%s5772_s26 + $0x70c] ss:$16 sps:$4 sm:$0xff]  }
 0x175   : > { %3870 = vmatpush1.bf16.msra.mxu1 %v5329_v2  ;;  %3830 = vmatprep.subr.bf16.mxu0 %v5334_v3  ;;  %v5406_v37 = vld [vmem:[%s5772_s26 + $0x8ec] ss:$16 sps:$4 sm:$0xff]   ;;  %v5404_v2 = vld [vmem:[%s5772_s26 + $0x8e8] ss:$16 sps:$4 sm:$0xff]  }
 0x176   : > { %3871 = vmatprep.subr.bf16.mxu1 %v5337_v4  ;;  %v5409_v27 = vld [vmem:[%s5772_s26 + $0xaec] ss:$16 sps:$4 sm:$0xff]   ;;  %v5407_v3 = vld [vmem:[%s5772_s26 + $0xae8] ss:$16 sps:$4 sm:$0xff]  }
 0x177   : > { %v5412_v4 = vld [vmem:[%s5772_s26 + $0x8cc] ss:$16 sps:$4 sm:$0xff]  }
 0x178   : > { %3831 = vmatpush1.bf16.msra.mxu0 %v5332_v5  ;;  %v5415_v5 = vld [vmem:[%s5772_s26 + $0xacc] ss:$16 sps:$4 sm:$0xff]  }
 0x179   : > { %3872 = vmatpush1.bf16.msra.mxu1 %v5335_v8  ;;  %3832 = vmatprep.subr.bf16.mxu0 %v5340_v35 }
 0x17a   : > { %3873 = vmatprep.subr.bf16.mxu1 %v5343_v9 }
 0x17c   : > { %3833 = vmatpush1.bf16.msra.mxu0 %v5338_v40  ;;  %v5410_v40 = vld [vmem:[%s5772_s26 + $0x8c8] ss:$16 sps:$4 sm:$0xff]  }
 0x17d   : > { %3874 = vmatpush1.bf16.msra.mxu1 %v5341_v10  ;;  %3834 = vmatprep.subr.bf16.mxu0 %v5346_v11  ;;  %v5413_v10 = vld [vmem:[%s5772_s26 + $0xac8] ss:$16 sps:$4 sm:$0xff]  }
 0x17e   : > { %3875 = vmatprep.subr.bf16.mxu1 %v5349_v12 }
 0x180   : > { %3835 = vmatpush1.bf16.msra.mxu0 %v5344_v13  ;;  %v5418_v13 = vld [vmem:[%s5772_s26 + $0x8ac] ss:$16 sps:$4 sm:$0xff]  }
 0x181   : > { %3876 = vmatpush1.bf16.msra.mxu1 %v5347_v14  ;;  %3836 = vmatprep.subr.bf16.mxu0 %v5352_v15  ;;  %v5416_v15 = vld [vmem:[%s5772_s26 + $0x8a8] ss:$16 sps:$4 sm:$0xff]  }
 0x182   : > { %3877 = vmatprep.subr.bf16.mxu1 %v5355_v19  ;;  %v5419_v19 = vld [vmem:[%s5772_s26 + $0xaa8] ss:$16 sps:$4 sm:$0xff]  }
 0x184   : > { %3837 = vmatpush1.bf16.msra.mxu0 %v5350_v20 }
 0x185   : > { %3878 = vmatpush1.bf16.msra.mxu1 %v5353_v21  ;;  %3838 = vmatprep.subr.bf16.mxu0 %v5358_v26  ;;  %v5424_v26 = vld [vmem:[%s5772_s26 + $0x88c] ss:$16 sps:$4 sm:$0xff]  }
 0x186   : > { %3879 = vmatprep.subr.bf16.mxu1 %v5361_v28  ;;  %v5425_v28 = vld [vmem:[%s5772_s26 + $0xa88] ss:$16 sps:$4 sm:$0xff]  }
 0x188   : > { %3839 = vmatpush2.bf16.msra.mxu0 %v5356_v29  ;;  %v5430_v29 = vld [vmem:[%s5772_s26 + $0x86c] ss:$16 sps:$4 sm:$0xff]  }
 0x189   : > { %3880 = vmatpush2.bf16.msra.mxu1 %v5359_v30  ;;  %3840 = vmatprep.subr.bf16.mxu0 %v5364_v47  ;;  %v5433_v30 = vld [vmem:[%s5772_s26 + $0xa6c] ss:$16 sps:$4 sm:$0xff]   ;;  %v5428_v47 = vld [vmem:[%s5772_s26 + $0x868] ss:$16 sps:$4 sm:$0xff]  }
 0x18a   : > { %3881 = vmatprep.subr.bf16.mxu1 %v5367_v51  ;;  %v5431_v51 = vld [vmem:[%s5772_s26 + $0xa68] ss:$16 sps:$4 sm:$0xff]  }
 0x18c   : > { %3841 = vmatpush2.bf16.msra.mxu0 %v5362_v31  ;;  %v5436_v31 = vld [vmem:[%s5772_s26 + $0x84c] ss:$16 sps:$4 sm:$0xff]  }
 0x18d   : > { %3882 = vmatpush2.bf16.msra.mxu1 %v5365_v32  ;;  %3842 = vmatprep.subr.bf16.mxu0 %v5370_v33  ;;  %v5439_v32 = vld [vmem:[%s5772_s26 + $0xa4c] ss:$16 sps:$4 sm:$0xff]   ;;  %v5434_v33 = vld [vmem:[%s5772_s26 + $0x848] ss:$16 sps:$4 sm:$0xff]  }
 0x18e   : > { %3883 = vmatprep.subr.bf16.mxu1 %v5373_v34  ;;  %v5437_v34 = vld [vmem:[%s5772_s26 + $0xa48] ss:$16 sps:$4 sm:$0xff]  }
 0x190   : > { %3843 = vmatpush2.bf16.msra.mxu0 %v5368_v41  ;;  %v5442_v41 = vld [vmem:[%s5772_s26 + $0x82c] ss:$16 sps:$4 sm:$0xff]  }
 0x191   : > { %3884 = vmatpush2.bf16.msra.mxu1 %v5371_v42  ;;  %3844 = vmatprep.subr.bf16.mxu0 %v5376_v22  ;;  %v5445_v42 = vld [vmem:[%s5772_s26 + $0xa2c] ss:$16 sps:$4 sm:$0xff]   ;;  %v5440_v22 = vld [vmem:[%s5772_s26 + $0x828] ss:$16 sps:$4 sm:$0xff]  }
 0x192   : > { %3885 = vmatprep.subr.bf16.mxu1 %v5379_v44  ;;  %v5443_v44 = vld [vmem:[%s5772_s26 + $0xa28] ss:$16 sps:$4 sm:$0xff]  }
 0x194   : > { %3845 = vmatpush2.bf16.msra.mxu0 %v5374_v45  ;;  %v5448_v45 = vld [vmem:[%s5772_s26 + $0x80c] ss:$16 sps:$4 sm:$0xff]  }
 0x195   : > { %3886 = vmatpush2.bf16.msra.mxu1 %v5377_v46  ;;  %3846 = vmatprep.subr.bf16.mxu0 %v5382_v48  ;;  %v5451_v46 = vld [vmem:[%s5772_s26 + $0xa0c] ss:$16 sps:$4 sm:$0xff]   ;;  %v5446_v48 = vld [vmem:[%s5772_s26 + $0x808] ss:$16 sps:$4 sm:$0xff]  }
 0x196   : > { %3887 = vmatprep.subr.bf16.mxu1 %v5385_v49  ;;  %v5449_v49 = vld [vmem:[%s5772_s26 + $0xa08] ss:$16 sps:$4 sm:$0xff]  }
 0x198   : > { %3847 = vmatpush2.bf16.msra.mxu0 %v5380_v50  ;;  %v5454_v50 = vld [vmem:[%s5772_s26 + $0x9ec] ss:$16 sps:$4 sm:$0xff]  }
 0x199   : > { %3888 = vmatpush2.bf16.msra.mxu1 %v5383_v52  ;;  %3848 = vmatprep.subr.bf16.mxu0 %v5388_v54  ;;  %v5457_v52 = vld [vmem:[%s5772_s26 + $0xbec] ss:$16 sps:$4 sm:$0xff]   ;;  %v5452_v54 = vld [vmem:[%s5772_s26 + $0x9e8] ss:$16 sps:$4 sm:$0xff]  }
 0x19a   : > { %3889 = vmatprep.subr.bf16.mxu1 %v5391_v55  ;;  %v5455_v55 = vld [vmem:[%s5772_s26 + $0xbe8] ss:$16 sps:$4 sm:$0xff]  }
 0x19c   : > { %3849 = vmatpush2.bf16.msra.mxu0 %v5386_v56  ;;  %v5460_v56 = vld [vmem:[%s5772_s26 + $0x9cc] ss:$16 sps:$4 sm:$0xff]  }
 0x19d   : > { %3890 = vmatpush2.bf16.msra.mxu1 %v5389_v57  ;;  %3850 = vmatprep.subr.bf16.mxu0 %v5394_v6  ;;  %v5463_v57 = vld [vmem:[%s5772_s26 + $0xbcc] ss:$16 sps:$4 sm:$0xff]   ;;  %v5458_v6 = vld [vmem:[%s5772_s26 + $0x9c8] ss:$16 sps:$4 sm:$0xff]  }
 0x19e   : > { %3891 = vmatprep.subr.bf16.mxu1 %v5397_v7  ;;  %v5461_v7 = vld [vmem:[%s5772_s26 + $0xbc8] ss:$16 sps:$4 sm:$0xff]  }
 0x1a0   : > { %3851 = vmatpush2.bf16.msra.mxu0 %v5392_v18  ;;  %v5466_v18 = vld [vmem:[%s5772_s26 + $0x9ac] ss:$16 sps:$4 sm:$0xff]  }
 0x1a1   : > { %3892 = vmatpush2.bf16.msra.mxu1 %v5395_v60  ;;  %3852 = vmatprep.subr.bf16.mxu0 %v5400_v61  ;;  %v5469_v60 = vld [vmem:[%s5772_s26 + $0xbac] ss:$16 sps:$4 sm:$0xff]   ;;  %v5464_v61 = vld [vmem:[%s5772_s26 + $0x9a8] ss:$16 sps:$4 sm:$0xff]  }
 0x1a2   : > { %3893 = vmatprep.subr.bf16.mxu1 %v5403_v62  ;;  %v5467_v62 = vld [vmem:[%s5772_s26 + $0xba8] ss:$16 sps:$4 sm:$0xff]  }
 0x1a4   : > { %3853 = vmatpush2.bf16.msra.mxu0 %v5398_v1  ;;  %v5472_v1 = vld [vmem:[%s5772_s26 + $0x98c] ss:$16 sps:$4 sm:$0xff]  }
 0x1a5   : > { %3894 = vmatpush2.bf16.msra.mxu1 %v5401_v36  ;;  %3904 = vmatprep.subr.bf16.mxu0 %v5406_v37  ;;  %v5475_v36 = vld [vmem:[%s5772_s26 + $0xb8c] ss:$16 sps:$4 sm:$0xff]   ;;  %v5470_v37 = vld [vmem:[%s5772_s26 + $0x988] ss:$16 sps:$4 sm:$0xff]  }
 0x1a6   : > { %3945 = vmatprep.subr.bf16.mxu1 %v5409_v27  ;;  %v5473_v27 = vld [vmem:[%s5772_s26 + $0xb88] ss:$16 sps:$4 sm:$0xff]  }
 0x1a7   : > { %v3610_v8 = vpop.f32.mrf.mxu0  ;;  %3855 = vmatmul.mubr.bf16.vlgmr.msra.gmra.mxu0 %v5948_v16  ;;  %v5421_v16 = vld [vmem:[%s5772_s26 + $0xaac] ss:$16 sps:$4 sm:$0xff]  }
 0x1a8   : > { %v3651_v35 = vpop.f32.mrf.mxu1  ;;  %3896 = vmatmul.mubr.bf16.vlgmr.msra.gmra.mxu1 %v5952_v17  ;;  %v3611_v9 = vadd.f32 %v3610_v8, %v6239_v58  ;;  %3905 = vmatpush1.bf16.msra.mxu0 %v5404_v2  ;;  %v5478_v2 = vld [vmem:[%s5772_s26 + $0x96c] ss:$16 sps:$4 sm:$0xff]  }
 0x1a9   : > { %3946 = vmatpush1.bf16.msra.mxu1 %v5407_v3  ;;  %v6311_v11 = vpop.f32.mrf.mxu0  ;;  %3906 = vmatprep.subr.bf16.mxu0 %v5412_v4  ;;  %v5481_v3 = vld [vmem:[%s5772_s26 + $0xb6c] ss:$16 sps:$4 sm:$0xff]   ;;  %v5476_v4 = vld [vmem:[%s5772_s26 + $0x968] ss:$16 sps:$4 sm:$0xff]  }
 0x1aa   : > { %v6313_v12 = vpop.f32.mrf.mxu1  ;;  %3947 = vmatprep.subr.bf16.mxu1 %v5415_v5  ;;  %v6317_v14 = vadd.f32 %v3651_v35, %v3611_v9  ;;  %3936 = vmatprep.mubr.bf16.mxu0 %v5970_v24  ;;  %v5427_v24 = vld [vmem:[%s5772_s26 + $0xa8c] ss:$16 sps:$4 sm:$0xff]   ;;  %v5479_v5 = vld [vmem:[%s5772_s26 + $0xb68] ss:$16 sps:$4 sm:$0xff]  }
 0x1ab   : > { %3977 = vmatprep.mubr.bf16.mxu1 %v5974_v25  ;;  %v3614_v17 = vpop.f32.mrf.mxu0  ;;  %v5422_v25 = vld [vmem:[%s5772_s26 + $0x888] ss:$16 sps:$4 sm:$0xff]   ;;  %v5484_v8 = vld [vmem:[%s5772_s26 + $0x94c] ss:$16 sps:$4 sm:$0xff]  }
 0x1ac   : > { %v3655_v58 = vpop.f32.mrf.mxu1  ;;  %3907 = vmatpush1.bf16.msra.mxu0 %v5410_v40  ;;  %v5487_v35 = vld [vmem:[%s5772_s26 + $0xb4c] ss:$16 sps:$4 sm:$0xff]   ;;  %v5482_v9 = vld [vmem:[%s5772_s26 + $0x948] ss:$16 sps:$4 sm:$0xff]  }
 0x1ad   : > { %3948 = vmatpush1.bf16.msra.mxu1 %v5413_v10  ;;  %v3615_v20 = vpop.f32.mrf.mxu0  ;;  %3908 = vmatprep.subr.bf16.mxu0 %v5418_v13  ;;  %v5485_v40 = vld [vmem:[%s5772_s26 + $0xb48] ss:$16 sps:$4 sm:$0xff]   ;;  %v5490_v10 = vld [vmem:[%s5772_s26 + $0x92c] ss:$16 sps:$4 sm:$0xff]  }
 0x1ae   : > { %v3656_v21 = vpop.f32.mrf.mxu1  ;;  %3949 = vmatprep.subr.bf16.mxu1 %v5421_v16  ;;  %v5493_v13 = vld [vmem:[%s5772_s26 + $0xb2c] ss:$16 sps:$4 sm:$0xff]   ;;  %v5488_v16 = vld [vmem:[%s5772_s26 + $0x928] ss:$16 sps:$4 sm:$0xff]  }
 0x1af   : > { %v5491_v17 = vld [vmem:[%s5772_s26 + $0xb28] ss:$16 sps:$4 sm:$0xff]   ;;  %v5496_v58 = vld [vmem:[%s5772_s26 + $0x90c] ss:$16 sps:$4 sm:$0xff]  }
 0x1b0   : > { %3909 = vmatpush1.bf16.msra.mxu0 %v5416_v15  ;;  %v5499_v15 = vld [vmem:[%s5772_s26 + $0xb0c] ss:$16 sps:$4 sm:$0xff]   ;;  %v5497_v20 = vld [vmem:[%s5772_s26 + $0xb08] ss:$16 sps:$4 sm:$0xff]  }
 0x1b1   : > { %3950 = vmatpush1.bf16.msra.mxu1 %v5419_v19  ;;  %3910 = vmatprep.subr.bf16.mxu0 %v5424_v26  ;;  %v5494_v19 = vld [vmem:[%s5772_s26 + $0x908] ss:$16 sps:$4 sm:$0xff]   ;;  %v5502_v21 = vld [vmem:[%s5772_s26 + $0xcec] ss:$16 sps:$4 sm:$0xff]  }
 0x1b2   : > { %3951 = vmatprep.subr.bf16.mxu1 %v5427_v24  ;;  %v5505_v26 = vld [vmem:[%s5772_s26 + $0xeec] ss:$16 sps:$4 sm:$0xff]   ;;  %v3613_v24 = vadd.f32 %v6311_v11, %v6244_v59 }
 0x1b4   : > { %3911 = vmatpush1.bf16.msra.mxu0 %v5422_v25  ;;  %v5500_v25 = vld [vmem:[%s5772_s26 + $0xce8] ss:$16 sps:$4 sm:$0xff]   ;;  %v3654_v59 = vadd.f32 %v6313_v12, %v3613_v24 }
 0x1b5   : > { %3952 = vmatpush1.bf16.msra.mxu1 %v5425_v28  ;;  %3912 = vmatprep.subr.bf16.mxu0 %v5430_v29  ;;  %v5503_v28 = vld [vmem:[%s5772_s26 + $0xee8] ss:$16 sps:$4 sm:$0xff]   ;;  %v5508_v29 = vld [vmem:[%s5772_s26 + $0xccc] ss:$16 sps:$4 sm:$0xff]  }
 0x1b6   : > { %3953 = vmatprep.subr.bf16.mxu1 %v5433_v30  ;;  %v5511_v30 = vld [vmem:[%s5772_s26 + $0xecc] ss:$16 sps:$4 sm:$0xff]   ;;  %v5566_v24 = vld [vmem:[%s5772_s26 + $0xd88] ss:$16 sps:$4 sm:$0xff]  }
 0x1b8   : > { %3913 = vmatpush1.bf16.msra.mxu0 %v5428_v47 }
 0x1b9   : > { %3954 = vmatpush1.bf16.msra.mxu1 %v5431_v51  ;;  %3914 = vmatprep.subr.bf16.mxu0 %v5436_v31  ;;  %v5506_v31 = vld [vmem:[%s5772_s26 + $0xcc8] ss:$16 sps:$4 sm:$0xff]  }
 0x1ba   : > { %3955 = vmatprep.subr.bf16.mxu1 %v5439_v32  ;;  %v5509_v32 = vld [vmem:[%s5772_s26 + $0xec8] ss:$16 sps:$4 sm:$0xff]  }
 0x1bc   : > { %3915 = vmatpush1.bf16.msra.mxu0 %v5434_v33 }
 0x1bd   : > { %3956 = vmatpush1.bf16.msra.mxu1 %v5437_v34  ;;  %3916 = vmatprep.subr.bf16.mxu0 %v5442_v41  ;;  %v5514_v41 = vld [vmem:[%s5772_s26 + $0xcac] ss:$16 sps:$4 sm:$0xff]  }
 0x1be   : > { %3957 = vmatprep.subr.bf16.mxu1 %v5445_v42  ;;  %v5517_v42 = vld [vmem:[%s5772_s26 + $0xeac] ss:$16 sps:$4 sm:$0xff]  }
 0x1c0   : > { %3917 = vmatpush1.bf16.msra.mxu0 %v5440_v22 }
 0x1c1   : > { %3958 = vmatpush1.bf16.msra.mxu1 %v5443_v44  ;;  %3918 = vmatprep.subr.bf16.mxu0 %v5448_v45  ;;  %v5512_v44 = vld [vmem:[%s5772_s26 + $0xca8] ss:$16 sps:$4 sm:$0xff]  }
 0x1c2   : > { %3959 = vmatprep.subr.bf16.mxu1 %v5451_v46  ;;  %v5515_v45 = vld [vmem:[%s5772_s26 + $0xea8] ss:$16 sps:$4 sm:$0xff]  }
 0x1c4   : > { %3919 = vmatpush1.bf16.msra.mxu0 %v5446_v48 }
 0x1c5   : > { %3960 = vmatpush1.bf16.msra.mxu1 %v5449_v49  ;;  %3920 = vmatprep.subr.bf16.mxu0 %v5454_v50  ;;  %v5520_v49 = vld [vmem:[%s5772_s26 + $0xc8c] ss:$16 sps:$4 sm:$0xff]  }
 0x1c6   : > { %3961 = vmatprep.subr.bf16.mxu1 %v5457_v52 }
 0x1c8   : > { %3921 = vmatpush2.bf16.msra.mxu0 %v5452_v54  ;;  %v5518_v54 = vld [vmem:[%s5772_s26 + $0xc88] ss:$16 sps:$4 sm:$0xff]  }
 0x1c9   : > { %3962 = vmatpush2.bf16.msra.mxu1 %v5455_v55  ;;  %3922 = vmatprep.subr.bf16.mxu0 %v5460_v56  ;;  %v5521_v55 = vld [vmem:[%s5772_s26 + $0xe88] ss:$16 sps:$4 sm:$0xff]   ;;  %v5526_v56 = vld [vmem:[%s5772_s26 + $0xc6c] ss:$16 sps:$4 sm:$0xff]  }
 0x1ca   : > { %3963 = vmatprep.subr.bf16.mxu1 %v5463_v57  ;;  %v5529_v57 = vld [vmem:[%s5772_s26 + $0xe6c] ss:$16 sps:$4 sm:$0xff]  }
 0x1cc   : > { %3923 = vmatpush2.bf16.msra.mxu0 %v5458_v6  ;;  %v5524_v6 = vld [vmem:[%s5772_s26 + $0xc68] ss:$16 sps:$4 sm:$0xff]  }
 0x1cd   : > { %3964 = vmatpush2.bf16.msra.mxu1 %v5461_v7  ;;  %3924 = vmatprep.subr.bf16.mxu0 %v5466_v18  ;;  %v5527_v7 = vld [vmem:[%s5772_s26 + $0xe68] ss:$16 sps:$4 sm:$0xff]   ;;  %v5532_v18 = vld [vmem:[%s5772_s26 + $0xc4c] ss:$16 sps:$4 sm:$0xff]  }
 0x1ce   : > { %3965 = vmatprep.subr.bf16.mxu1 %v5469_v60  ;;  %v5535_v60 = vld [vmem:[%s5772_s26 + $0xe4c] ss:$16 sps:$4 sm:$0xff]  }
 0x1d0   : > { %3925 = vmatpush2.bf16.msra.mxu0 %v5464_v61  ;;  %v5530_v61 = vld [vmem:[%s5772_s26 + $0xc48] ss:$16 sps:$4 sm:$0xff]  }
 0x1d1   : > { %3966 = vmatpush2.bf16.msra.mxu1 %v5467_v62  ;;  %3926 = vmatprep.subr.bf16.mxu0 %v5472_v1  ;;  %v5533_v62 = vld [vmem:[%s5772_s26 + $0xe48] ss:$16 sps:$4 sm:$0xff]   ;;  %v5538_v1 = vld [vmem:[%s5772_s26 + $0xc2c] ss:$16 sps:$4 sm:$0xff]  }
 0x1d2   : > { %3967 = vmatprep.subr.bf16.mxu1 %v5475_v36  ;;  %v5541_v36 = vld [vmem:[%s5772_s26 + $0xe2c] ss:$16 sps:$4 sm:$0xff]  }
 0x1d4   : > { %3927 = vmatpush2.bf16.msra.mxu0 %v5470_v37  ;;  %v5536_v37 = vld [vmem:[%s5772_s26 + $0xc28] ss:$16 sps:$4 sm:$0xff]  }
 0x1d5   : > { %3968 = vmatpush2.bf16.msra.mxu1 %v5473_v27  ;;  %3928 = vmatprep.subr.bf16.mxu0 %v5478_v2  ;;  %v5539_v27 = vld [vmem:[%s5772_s26 + $0xe28] ss:$16 sps:$4 sm:$0xff]   ;;  %v5544_v2 = vld [vmem:[%s5772_s26 + $0xc0c] ss:$16 sps:$4 sm:$0xff]  }
 0x1d6   : > { %3969 = vmatprep.subr.bf16.mxu1 %v5481_v3  ;;  %v5547_v3 = vld [vmem:[%s5772_s26 + $0xe0c] ss:$16 sps:$4 sm:$0xff]  }
 0x1d8   : > { %3929 = vmatpush2.bf16.msra.mxu0 %v5476_v4  ;;  %v5542_v4 = vld [vmem:[%s5772_s26 + $0xc08] ss:$16 sps:$4 sm:$0xff]  }
 0x1d9   : > { %3970 = vmatpush2.bf16.msra.mxu1 %v5479_v5  ;;  %3930 = vmatprep.subr.bf16.mxu0 %v5484_v8  ;;  %v5545_v5 = vld [vmem:[%s5772_s26 + $0xe08] ss:$16 sps:$4 sm:$0xff]   ;;  %v5550_v8 = vld [vmem:[%s5772_s26 + $0xdec] ss:$16 sps:$4 sm:$0xff]  }
 0x1da   : > { %3971 = vmatprep.subr.bf16.mxu1 %v5487_v35  ;;  %v5553_v35 = vld [vmem:[%s5772_s26 + $0xfec] ss:$16 sps:$4 sm:$0xff]  }
 0x1dc   : > { %3931 = vmatpush2.bf16.msra.mxu0 %v5482_v9  ;;  %v5548_v9 = vld [vmem:[%s5772_s26 + $0xde8] ss:$16 sps:$4 sm:$0xff]  }
 0x1dd   : > { %3972 = vmatpush2.bf16.msra.mxu1 %v5485_v40  ;;  %3932 = vmatprep.subr.bf16.mxu0 %v5490_v10  ;;  %v5551_v40 = vld [vmem:[%s5772_s26 + $0xfe8] ss:$16 sps:$4 sm:$0xff]   ;;  %v5556_v10 = vld [vmem:[%s5772_s26 + $0xdcc] ss:$16 sps:$4 sm:$0xff]  }
 0x1de   : > { %3973 = vmatprep.subr.bf16.mxu1 %v5493_v13  ;;  %v5559_v13 = vld [vmem:[%s5772_s26 + $0xfcc] ss:$16 sps:$4 sm:$0xff]  }
 0x1e0   : > { %3933 = vmatpush2.bf16.msra.mxu0 %v5488_v16  ;;  %v5554_v16 = vld [vmem:[%s5772_s26 + $0xdc8] ss:$16 sps:$4 sm:$0xff]  }
 0x1e1   : > { %3974 = vmatpush2.bf16.msra.mxu1 %v5491_v17  ;;  %3934 = vmatprep.subr.bf16.mxu0 %v5496_v58  ;;  %v5557_v17 = vld [vmem:[%s5772_s26 + $0xfc8] ss:$16 sps:$4 sm:$0xff]   ;;  %v5562_v58 = vld [vmem:[%s5772_s26 + $0xdac] ss:$16 sps:$4 sm:$0xff]  }
 0x1e2   : > { %3975 = vmatprep.subr.bf16.mxu1 %v5499_v15  ;;  %v5565_v15 = vld [vmem:[%s5772_s26 + $0xfac] ss:$16 sps:$4 sm:$0xff]  }
 0x1e4   : > { %3935 = vmatpush2.bf16.msra.mxu0 %v5494_v19  ;;  %v5560_v19 = vld [vmem:[%s5772_s26 + $0xda8] ss:$16 sps:$4 sm:$0xff]  }
 0x1e5   : > { %3976 = vmatpush2.bf16.msra.mxu1 %v5497_v20  ;;  %3986 = vmatprep.subr.bf16.mxu0 %v5502_v21  ;;  %v5563_v20 = vld [vmem:[%s5772_s26 + $0xfa8] ss:$16 sps:$4 sm:$0xff]   ;;  %v5568_v21 = vld [vmem:[%s5772_s26 + $0xd8c] ss:$16 sps:$4 sm:$0xff]  }
 0x1e6   : > { %4027 = vmatprep.subr.bf16.mxu1 %v5505_v26  ;;  %v5571_v26 = vld [vmem:[%s5772_s26 + $0xf8c] ss:$16 sps:$4 sm:$0xff]  }
 0x1e7   : > { %v3692_v47 = vpop.f32.mrf.mxu0  ;;  %3937 = vmatmul.mubr.bf16.vlgmr.msra.gmra.mxu0 %v6048_v38 }
 0x1e8   : > { %v3733_v51 = vpop.f32.mrf.mxu1  ;;  %3978 = vmatmul.mubr.bf16.vlgmr.msra.gmra.mxu1 %v6052_v39  ;;  %v3693_v11 = vadd.f32 %v3692_v47, %v6317_v14  ;;  %3987 = vmatpush1.bf16.msra.mxu0 %v5500_v25  ;;  %v5569_v25 = vld [vmem:[%s5772_s26 + $0xf88] ss:$16 sps:$4 sm:$0xff]  }
 0x1e9   : > { %4028 = vmatpush1.bf16.msra.mxu1 %v5503_v28  ;;  %v3694_v33 = vpop.f32.mrf.mxu0  ;;  %3988 = vmatprep.subr.bf16.mxu0 %v5508_v29  ;;  %v5574_v28 = vld [vmem:[%s5772_s26 + $0xd6c] ss:$16 sps:$4 sm:$0xff]   ;;  %v5575_v47 = vld [vmem:[%s5772_s26 + $0xf68] ss:$16 sps:$4 sm:$0xff]  }
 0x1ea   : > { %v3735_v34 = vpop.f32.mrf.mxu1  ;;  %4029 = vmatprep.subr.bf16.mxu1 %v5511_v30  ;;  %v3734_v38 = vadd.f32 %v3733_v51, %v3693_v11  ;;  %v3695_v39 = vadd.f32 %v3694_v33, %v3654_v59  ;;  %4018 = vmatprep.mubr.bf16.mxu0 %v6064_v23  ;;  %v5523_v23 = vld [vmem:[%s5772_s26 + $0xe8c] ss:$16 sps:$4 sm:$0xff]   ;;  %v5572_v30 = vld [vmem:[%s5772_s26 + $0xd68] ss:$16 sps:$4 sm:$0xff]  }
 0x1eb   : > { %4059 = vmatprep.mubr.bf16.mxu1 %v6068_v43  ;;  %v3696_v12 = vpop.f32.mrf.mxu0  ;;  %v5577_v29 = vld [vmem:[%s5772_s26 + $0xf6c] ss:$16 sps:$4 sm:$0xff]   ;;  %v5578_v11 = vld [vmem:[%s5772_s26 + $0xd48] ss:$16 sps:$4 sm:$0xff]  }
 0x1ec   : > { %v3737_v14 = vpop.f32.mrf.mxu1  ;;  %v3736_v22 = vadd.f32 %v3735_v34, %v3695_v39  ;;  %3989 = vmatpush1.bf16.msra.mxu0 %v5506_v31  ;;  %v4068_v43 = vmax.f32 %v3734_v38, 0.0  ;;  %v5580_v51 = vld [vmem:[%s5772_s26 + $0xd4c] ss:$16 sps:$4 sm:$0xff]   ;;  %v5581_v31 = vld [vmem:[%s5772_s26 + $0xf48] ss:$16 sps:$4 sm:$0xff]  }
 0x1ed   : > { %4030 = vmatpush1.bf16.msra.mxu1 %v5509_v32  ;;  %v3697_v46 = vpop.f32.mrf.mxu0  ;;  %3990 = vmatprep.subr.bf16.mxu0 %v5514_v41  ;;  %v5583_v59 = vld [vmem:[%s5772_s26 + $0xf4c] ss:$16 sps:$4 sm:$0xff]   ;;  %v5584_v34 = vld [vmem:[%s5772_s26 + $0xd28] ss:$16 sps:$4 sm:$0xff]   ;;  %v786_v14 = vsub.s32 2, %v6131_v53 }
 0x1ee   : > { %v3738_v48 = vpop.f32.mrf.mxu1  ;;  %4031 = vmatprep.subr.bf16.mxu1 %v5517_v42  ;;  %v4069_v50 = vmax.f32 %v3736_v22, 0.0  ;;  %v5586_v32 = vld [vmem:[%s5772_s26 + $0xd2c] ss:$16 sps:$4 sm:$0xff]   ;;  %v5587_v41 = vld [vmem:[%s5772_s26 + $0xf28] ss:$16 sps:$4 sm:$0xff]   ;;  %v790_v22 = vsub.s32 3, %v6131_v53 }
 0x1ef   : > { %v5589_v33 = vld [vmem:[%s5772_s26 + $0xf2c] ss:$16 sps:$4 sm:$0xff]   ;;  %v5590_v39 = vld [vmem:[%s5772_s26 + $0xd08] ss:$16 sps:$4 sm:$0xff]  }
 0x1f0   : > { %v4752_v52 = vpack.c.bf16 %v4069_v50, %v4068_v43  ;;  %3991 = vmatpush1.bf16.msra.mxu0 %v5512_v44  ;;  %v5592_v42 = vld [vmem:[%s5772_s26 + $0xd0c] ss:$16 sps:$4 sm:$0xff]   ;;  %v5593_v12 = vld [vmem:[%s5772_s26 + $0xf08] ss:$16 sps:$4 sm:$0xff]   ;;  %v5596_v44 = vld [vmem:[%s6139_s25] sm:$0xf] }
 0x1f1   : > { %4032 = vmatpush1.bf16.msra.mxu1 %v5515_v45  ;;  %3992 = vmatprep.subr.bf16.mxu0 %v5520_v49  ;;  %v5595_v38 = vld [vmem:[%s5772_s26 + $0xf0c] ss:$16 sps:$4 sm:$0xff]   ;;  %v787_v45 = vrot.slane %v5596_v44, %v786_v14  ;;  %v791_v46 = vrot.slane %v5596_v44, %v790_v22 }
 0x1f2   : > { %4033 = vmatprep.subr.bf16.mxu1 %v5523_v23  ;;  %4088 = vst [vmem:[%s6401_s29] sm:$0xff] %v4752_v52 }
 0x1f4   : > { %3993 = vmatpush1.bf16.msra.mxu0 %v5518_v54 }
 0x1f5   : > { %4034 = vmatpush1.bf16.msra.mxu1 %v5521_v55  ;;  %3994 = vmatprep.subr.bf16.mxu0 %v5526_v56 }
 0x1f6   : > { %4035 = vmatprep.subr.bf16.mxu1 %v5529_v57 }
 0x1f8   : > { %3995 = vmatpush1.bf16.msra.mxu0 %v5524_v6 }
 0x1f9   : > { %4036 = vmatpush1.bf16.msra.mxu1 %v5527_v7  ;;  %3996 = vmatprep.subr.bf16.mxu0 %v5532_v18 }
 0x1fa   : > { %4037 = vmatprep.subr.bf16.mxu1 %v5535_v60 }
 0x1fc   : > { %3997 = vmatpush1.bf16.msra.mxu0 %v5530_v61 }
 0x1fd   : > { %4038 = vmatpush1.bf16.msra.mxu1 %v5533_v62  ;;  %3998 = vmatprep.subr.bf16.mxu0 %v5538_v1 }
 0x1fe   : > { %4039 = vmatprep.subr.bf16.mxu1 %v5541_v36 }
 0x200   : > { %3999 = vmatpush1.bf16.msra.mxu0 %v5536_v37 }
 0x201   : > { %4040 = vmatpush1.bf16.msra.mxu1 %v5539_v27  ;;  %4000 = vmatprep.subr.bf16.mxu0 %v5544_v2 }
 0x202   : > { %4041 = vmatprep.subr.bf16.mxu1 %v5547_v3 }
 0x204   : > { %4001 = vmatpush1.bf16.msra.mxu0 %v5542_v4 }
 0x205   : > { %4042 = vmatpush1.bf16.msra.mxu1 %v5545_v5  ;;  %4002 = vmatprep.subr.bf16.mxu0 %v5550_v8 }
 0x206   : > { %4043 = vmatprep.subr.bf16.mxu1 %v5553_v35 }
 0x208   : > { %4003 = vmatpush2.bf16.msra.mxu0 %v5548_v9 }
 0x209   : > { %4044 = vmatpush2.bf16.msra.mxu1 %v5551_v40  ;;  %4004 = vmatprep.subr.bf16.mxu0 %v5556_v10 }
 0x20a   : > { %4045 = vmatprep.subr.bf16.mxu1 %v5559_v13 }
 0x20c   : > { %4005 = vmatpush2.bf16.msra.mxu0 %v5554_v16 }
 0x20d   : > { %4046 = vmatpush2.bf16.msra.mxu1 %v5557_v17  ;;  %4006 = vmatprep.subr.bf16.mxu0 %v5562_v58 }
 0x20e   : > { %4047 = vmatprep.subr.bf16.mxu1 %v5565_v15 }
 0x210   : > { %4007 = vmatpush2.bf16.msra.mxu0 %v5560_v19 }
 0x211   : > { %4048 = vmatpush2.bf16.msra.mxu1 %v5563_v20  ;;  %4008 = vmatprep.subr.bf16.mxu0 %v5568_v21 }
 0x212   : > { %4049 = vmatprep.subr.bf16.mxu1 %v5571_v26 }
 0x214   : > { %4009 = vmatpush2.bf16.msra.mxu0 %v5566_v24 }
 0x215   : > { %4050 = vmatpush2.bf16.msra.mxu1 %v5569_v25  ;;  %4010 = vmatprep.subr.bf16.mxu0 %v5574_v28 }
 0x216   : > { %4051 = vmatprep.subr.bf16.mxu1 %v5577_v29 }
 0x218   : > { %4011 = vmatpush2.bf16.msra.mxu0 %v5572_v30 }
 0x219   : > { %4052 = vmatpush2.bf16.msra.mxu1 %v5575_v47  ;;  %4012 = vmatprep.subr.bf16.mxu0 %v5580_v51 }
 0x21a   : > { %4053 = vmatprep.subr.bf16.mxu1 %v5583_v59 }
 0x21c   : > { %4013 = vmatpush2.bf16.msra.mxu0 %v5578_v11 }
 0x21d   : > { %4054 = vmatpush2.bf16.msra.mxu1 %v5581_v31  ;;  %4014 = vmatprep.subr.bf16.mxu0 %v5586_v32 }
 0x21e   : > { %4055 = vmatprep.subr.bf16.mxu1 %v5589_v33 }
 0x220   : > { %4015 = vmatpush2.bf16.msra.mxu0 %v5584_v34 }
 0x221   : > { %4056 = vmatpush2.bf16.msra.mxu1 %v5587_v41  ;;  %4016 = vmatprep.subr.bf16.mxu0 %v5592_v42 }
 0x222   : > { %4057 = vmatprep.subr.bf16.mxu1 %v5595_v38 }
 0x224   : > { %4017 = vmatpush2.bf16.msra.mxu0 %v5590_v39 }
 0x225   : > { %4058 = vmatpush2.bf16.msra.mxu1 %v5593_v12 }
 0x227   : > { %v3774_v48 = vpop.f32.mrf.mxu0  ;;  %4019 = vmatmul.mubr.bf16.vlgmr.msra.gmra.mxu0 %v6150_v63 }
 0x228   : > { %v3815_v49 = vpop.f32.mrf.mxu1  ;;  %4060 = vmatmul.mubr.bf16.vlgmr.msra.gmra.mxu1 %v6154_v0  ;;  %v3775_v23 = vadd.f32 %v3774_v48, %v787_v45 }
 0x229   : > { %v3776_v43 = vpop.f32.mrf.mxu0 }
 0x22a   : > { %v3817_v50 = vpop.f32.mrf.mxu1  ;;  %v3816_v52 = vadd.f32 %v3815_v49, %v3775_v23  ;;  %v3777_v54 = vadd.f32 %v3776_v43, %v791_v46 }
 0x22b   : > { %v3778_v55 = vpop.f32.mrf.mxu0 }
 0x22c   : > { %v3819_v56 = vpop.f32.mrf.mxu1  ;;  %v3818_v57 = vadd.f32 %v3817_v50, %v3777_v54 }
 0x22d   : > { %v3779_v53 = vpop.f32.mrf.mxu0 }
 0x22e   : > { %v3820_v6 = vpop.f32.mrf.mxu1 }
 0x267   : > { %v3856_v7 = vpop.f32.mrf.mxu0 }
 0x268   : > { %v3897_v18 = vpop.f32.mrf.mxu1  ;;  %v3857_v60 = vadd.f32 %v3856_v7, %v3816_v52 }
 0x269   : > { %v3858_v61 = vpop.f32.mrf.mxu0 }
 0x26a   : > { %v3899_v62 = vpop.f32.mrf.mxu1  ;;  %v3898_v1 = vadd.f32 %v3897_v18, %v3857_v60  ;;  %v3859_v36 = vadd.f32 %v3858_v61, %v3818_v57 }
 0x26b   : > { %v3860_v63 = vpop.f32.mrf.mxu0 }
 0x26c   : > { %v3901_v37 = vpop.f32.mrf.mxu1  ;;  %v3900_v0 = vadd.f32 %v3899_v62, %v3859_v36 }
 0x26d   : > { %v3861_v27 = vpop.f32.mrf.mxu0 }
 0x26e   : > { %v3902_v2 = vpop.f32.mrf.mxu1 }
 0x2a7   : > { %v3938_v3 = vpop.f32.mrf.mxu0 }
 0x2a8   : > { %v3979_v4 = vpop.f32.mrf.mxu1  ;;  %v3939_v5 = vadd.f32 %v3938_v3, %v3898_v1 }
 0x2a9   : > { %v3940_v8 = vpop.f32.mrf.mxu0 }
 0x2aa   : > { %v3981_v35 = vpop.f32.mrf.mxu1  ;;  %v3980_v9 = vadd.f32 %v3979_v4, %v3939_v5  ;;  %v3941_v17 = vadd.f32 %v3940_v8, %v3900_v0 }
 0x2ab   : > { %v3942_v40 = vpop.f32.mrf.mxu0 }
 0x2ac   : > { %v3983_v10 = vpop.f32.mrf.mxu1  ;;  %v3982_v19 = vadd.f32 %v3981_v35, %v3941_v17 }
 0x2ad   : > { %v3943_v13 = vpop.f32.mrf.mxu0 }
 0x2ae   : > { %v3984_v16 = vpop.f32.mrf.mxu1 }
 0x2e7   : > { %v4020_v58 = vpop.f32.mrf.mxu0 }
 0x2e8   : > { %v4061_v15 = vpop.f32.mrf.mxu1  ;;  %v4021_v20 = vadd.f32 %v4020_v58, %v3980_v9 }
 0x2e9   : > { %v4022_v21 = vpop.f32.mrf.mxu0 }
 0x2ea   : > { %v4063_v26 = vpop.f32.mrf.mxu1  ;;  %v4062_v24 = vadd.f32 %v4061_v15, %v4021_v20  ;;  %v4023_v25 = vadd.f32 %v4022_v21, %v3982_v19 }
 0x2eb   : > { %v4024_v28 = vpop.f32.mrf.mxu0 }
 0x2ec   : > { %v4065_v29 = vpop.f32.mrf.mxu1  ;;  %v4064_v30 = vadd.f32 %v4063_v26, %v4023_v25  ;;  %v4070_v59 = vmax.f32 %v4062_v24, 0.0 }
 0x2ed   : > { %v4025_v47 = vpop.f32.mrf.mxu0 }
 0x2ee   : > { %v4066_v51 = vpop.f32.mrf.mxu1  ;;  %v4071_v11 = vmax.f32 %v4064_v30, 0.0 }
 0x2f0   : > { %v4753_v31 = vpack.c.bf16 %v4071_v11, %v4070_v59 }
 0x2f2   : > { %4089 = vst [vmem:[%s6401_s29 + $0x8] sm:$0xff] %v4753_v31 }
 0x2f3 PF: > { %s16_s17 = sadd.s32 1, %s5675_s17   ;;  %s6485_s12 = smov %s5659_s13 }
 0x2f4   : > { %p13_p8 = scmp.ge.s32.totalorder %s16_s17, 6   ;;  %s6486_s13 = smov %s5663_s14 }
 0x2f5   : > { %s6487_s14 = smov %s5750_s24  ;;  %s6488_s15 = smov %s5671_s16 }
 0x2f6   : > { %s6489_s16 = smov %s6491_s19  ;;  %15 = sbr.rel (!%p13_p8) target bundleno = 4 (0x4), region = 78 }
 0x2fb   :  { %4120 = vsyncpa [#allocation3], 1 }
 0x2fc   :  { %4122 = vsyncpa [#allocation3 + $0x1], 1 }

// kernel: ae_forward.13
= control target key start
LH: loop header
LB: loop body
LE: loop exit
PB: predicated region body
PF: predicated region fallthrough
CT: control target
= control target key end

     0   :  { %s1171_s1 = inlined_call_operand.vmem [shape: bf16[512,128], index: 1, kind: input, shape index: {}]   ;;  %s1172_s0 = inlined_call_operand.vmem [shape: bf16[96,512], index: 0, kind: input, shape index: {}]   ;;  %s1173_s2 = inlined_call_operand.vmem [shape: f32[1,128], index: 2, kind: input, shape index: {}]   ;;  %s1174_s3 = inlined_call_operand.vmem [shape: bf16[96,128], index: 3, kind: output, shape index: {}]  }
   0x1   :  { %v880_v0 = vld [vmem:[%s1171_s1 + $0x78] sm:$0xff]   ;;  %v884_v4 = vld [vmem:[%s1171_s1 + $0x70] sm:$0xff]   ;;  %v888_v8 = vld [vmem:[%s1171_s1 + $0x68] sm:$0xff]  }
   0x2   :  { %v881_v1 = vld [vmem:[%s1171_s1 + $0xf8] sm:$0xff]   ;;  %776 = vmatprep.subr.bf16.mxu0 %v880_v0  ;;  %v885_v5 = vld [vmem:[%s1171_s1 + $0xf0] sm:$0xff]   ;;  %v889_v9 = vld [vmem:[%s1171_s1 + $0xe8] sm:$0xff]  }
   0x3   :  { %v882_v2 = vld [vmem:[%s1171_s1 + $0x38] sm:$0xff]   ;;  %828 = vmatprep.subr.bf16.mxu1 %v881_v1  ;;  %v886_v6 = vld [vmem:[%s1171_s1 + $0x30] sm:$0xff]   ;;  %v890_v10 = vld [vmem:[%s1171_s1 + $0x28] sm:$0xff]  }
   0x4   :  { %v883_v3 = vld [vmem:[%s1171_s1 + $0xb8] sm:$0xff]   ;;  %777 = vmatpush3.bf16.msra.mxu0 %v882_v2  ;;  %v887_v7 = vld [vmem:[%s1171_s1 + $0xb0] sm:$0xff]   ;;  %v891_v11 = vld [vmem:[%s1171_s1 + $0xa8] sm:$0xff]  }
   0x5   :  { %829 = vmatpush3.bf16.msra.mxu1 %v883_v3  ;;  %778 = vmatprep.subr.bf16.mxu0 %v884_v4  ;;  %v892_v12 = vld [vmem:[%s1171_s1 + $0x60] sm:$0xff]   ;;  %v896_v16 = vld [vmem:[%s1171_s1 + $0x58] sm:$0xff]   ;;  %v900_v20 = vld [vmem:[%s1171_s1 + $0x50] sm:$0xff]  }
   0x6   :  { %830 = vmatprep.subr.bf16.mxu1 %v885_v5  ;;  %v893_v13 = vld [vmem:[%s1171_s1 + $0xe0] sm:$0xff]   ;;  %v897_v17 = vld [vmem:[%s1171_s1 + $0xd8] sm:$0xff]   ;;  %v901_v21 = vld [vmem:[%s1171_s1 + $0xd0] sm:$0xff]  }
   0x7   :  { %v894_v14 = vld [vmem:[%s1171_s1 + $0x20] sm:$0xff]   ;;  %v898_v18 = vld [vmem:[%s1171_s1 + $0x18] sm:$0xff]   ;;  %v902_v22 = vld [vmem:[%s1171_s1 + $0x10] sm:$0xff]  }
   0x8   :  { %779 = vmatpush3.bf16.msra.mxu0 %v886_v6  ;;  %v895_v15 = vld [vmem:[%s1171_s1 + $0xa0] sm:$0xff]   ;;  %v899_v19 = vld [vmem:[%s1171_s1 + $0x98] sm:$0xff]   ;;  %v903_v23 = vld [vmem:[%s1171_s1 + $0x90] sm:$0xff]  }
   0x9   :  { %831 = vmatpush3.bf16.msra.mxu1 %v887_v7  ;;  %780 = vmatprep.subr.bf16.mxu0 %v888_v8  ;;  %v904_v24 = vld [vmem:[%s1171_s1 + $0x48] sm:$0xff]   ;;  %v908_v28 = vld [vmem:[%s1171_s1 + $0x40] sm:$0xff]  }
   0xa   :  { %832 = vmatprep.subr.bf16.mxu1 %v889_v9  ;;  %v905_v25 = vld [vmem:[%s1171_s1 + $0xc8] sm:$0xff]   ;;  %v909_v29 = vld [vmem:[%s1171_s1 + $0xc0] sm:$0xff]  }
   0xb   :  { %v906_v26 = vld [vmem:[%s1171_s1 + $0x8] sm:$0xff]   ;;  %v910_v30 = vld [vmem:[%s1171_s1] sm:$0xff]  }
   0xc   :  { %781 = vmatpush3.bf16.msra.mxu0 %v890_v10  ;;  %v907_v27 = vld [vmem:[%s1171_s1 + $0x88] sm:$0xff]   ;;  %v911_v31 = vld [vmem:[%s1171_s1 + $0x80] sm:$0xff]  }
   0xd   :  { %833 = vmatpush3.bf16.msra.mxu1 %v891_v11  ;;  %782 = vmatprep.subr.bf16.mxu0 %v892_v12  ;;  %v912_v32 = vld [vmem:[%s1172_s0] ss:$16 sps:$4 sm:$0xff]   ;;  %v914_v33 = vld [vmem:[%s1172_s0 + $0x4] ss:$16 sps:$4 sm:$0xff]   ;;  %v915_v34 = vld [vmem:[%s1172_s0 + $0x8] ss:$16 sps:$4 sm:$0xff]  }
   0xe   :  { %834 = vmatprep.subr.bf16.mxu1 %v893_v13  ;;  %v917_v35 = vld [vmem:[%s1172_s0 + $0xc] ss:$16 sps:$4 sm:$0xff]   ;;  %454 = vmatprep.mubr.bf16.mxu0 %v914_v33  ;;  %v918_v36 = vld [vmem:[%s1172_s0 + $0x24] ss:$16 sps:$4 sm:$0xff]   ;;  %v922_v38 = vld [vmem:[%s1172_s0 + $0x20] ss:$16 sps:$4 sm:$0xff]  }
   0xf   :  { %535 = vmatprep.mubr.bf16.mxu1 %v917_v35  ;;  %v920_v37 = vld [vmem:[%s1172_s0 + $0x2c] ss:$16 sps:$4 sm:$0xff]   ;;  %v923_v39 = vld [vmem:[%s1172_s0 + $0x28] ss:$16 sps:$4 sm:$0xff]   ;;  %v924_v40 = vld [vmem:[%s1172_s0 + $0x44] ss:$16 sps:$4 sm:$0xff]  }
  0x10   :  { %783 = vmatpush3.bf16.msra.mxu0 %v894_v14  ;;  %v926_v41 = vld [vmem:[%s1172_s0 + $0x4c] ss:$16 sps:$4 sm:$0xff]   ;;  %v928_v42 = vld [vmem:[%s1172_s0 + $0x40] ss:$16 sps:$4 sm:$0xff]   ;;  %v929_v43 = vld [vmem:[%s1172_s0 + $0x48] ss:$16 sps:$4 sm:$0xff]  }
  0x11   :  { %835 = vmatpush3.bf16.msra.mxu1 %v895_v15  ;;  %784 = vmatprep.subr.bf16.mxu0 %v896_v16  ;;  %v930_v44 = vld [vmem:[%s1172_s0 + $0x64] ss:$16 sps:$4 sm:$0xff]   ;;  %v932_v45 = vld [vmem:[%s1172_s0 + $0x6c] ss:$16 sps:$4 sm:$0xff]   ;;  %v934_v46 = vld [vmem:[%s1172_s0 + $0x60] ss:$16 sps:$4 sm:$0xff]  }
  0x12   :  { %836 = vmatprep.subr.bf16.mxu1 %v897_v17  ;;  %v935_v47 = vld [vmem:[%s1172_s0 + $0x68] ss:$16 sps:$4 sm:$0xff]   ;;  %v936_v48 = vld [vmem:[%s1172_s0 + $0x84] ss:$16 sps:$4 sm:$0xff]   ;;  %v938_v49 = vld [vmem:[%s1172_s0 + $0x8c] ss:$16 sps:$4 sm:$0xff]  }
  0x13   :  { %v940_v50 = vld [vmem:[%s1172_s0 + $0x80] ss:$16 sps:$4 sm:$0xff]   ;;  %v941_v51 = vld [vmem:[%s1172_s0 + $0x88] ss:$16 sps:$4 sm:$0xff]   ;;  %v942_v52 = vld [vmem:[%s1172_s0 + $0xa4] ss:$16 sps:$4 sm:$0xff]  }
  0x14   :  { %785 = vmatpush3.bf16.msra.mxu0 %v898_v18  ;;  %v944_v53 = vld [vmem:[%s1172_s0 + $0xac] ss:$16 sps:$4 sm:$0xff]   ;;  %v946_v54 = vld [vmem:[%s1172_s0 + $0xa0] ss:$16 sps:$4 sm:$0xff]   ;;  %v947_v55 = vld [vmem:[%s1172_s0 + $0xa8] ss:$16 sps:$4 sm:$0xff]  }
  0x15   :  { %837 = vmatpush3.bf16.msra.mxu1 %v899_v19  ;;  %786 = vmatprep.subr.bf16.mxu0 %v900_v20  ;;  %v1139_v58 = vld [vmem:[%s1173_s2] ss:$0 sm:$0xff] }
  0x16   :  { %838 = vmatprep.subr.bf16.mxu1 %v901_v21 }
  0x18   :  { %787 = vmatpush3.bf16.msra.mxu0 %v902_v22 }
  0x19   :  { %839 = vmatpush3.bf16.msra.mxu1 %v903_v23  ;;  %788 = vmatprep.subr.bf16.mxu0 %v904_v24 }
  0x1a   :  { %840 = vmatprep.subr.bf16.mxu1 %v905_v25 }
  0x1c   :  { %789 = vmatpush3.bf16.msra.mxu0 %v906_v26 }
  0x1d   :  { %841 = vmatpush3.bf16.msra.mxu1 %v907_v27  ;;  %790 = vmatprep.subr.bf16.mxu0 %v908_v28 }
  0x1e   :  { %842 = vmatprep.subr.bf16.mxu1 %v909_v29 }
  0x20   :  { %791 = vmatpush3.bf16.msra.mxu0 %v910_v30 }
  0x21   :  { %843 = vmatpush3.bf16.msra.mxu1 %v911_v31 }
  0x23   :  { %455 = vmatmul.mubr.bf16.vlgmr.msra.gmra.mxu0 %v912_v32 }
  0x24   :  { %536 = vmatmul.mubr.bf16.vlgmr.msra.gmra.mxu1 %v915_v34  ;;  %462 = vmatprep.mubr.bf16.mxu0 %v918_v36 }
  0x25   :  { %543 = vmatprep.mubr.bf16.mxu1 %v920_v37 }
  0x2b   :  { %463 = vmatmul.mubr.bf16.gmra.mxu0 %v922_v38 }
  0x2c   :  { %544 = vmatmul.mubr.bf16.gmra.mxu1 %v923_v39  ;;  %470 = vmatprep.mubr.bf16.mxu0 %v924_v40 }
  0x2d   :  { %551 = vmatprep.mubr.bf16.mxu1 %v926_v41 }
  0x33   :  { %471 = vmatmul.mubr.bf16.gmra.mxu0 %v928_v42 }
  0x34   :  { %552 = vmatmul.mubr.bf16.gmra.mxu1 %v929_v43  ;;  %478 = vmatprep.mubr.bf16.mxu0 %v930_v44 }
  0x35   :  { %559 = vmatprep.mubr.bf16.mxu1 %v932_v45 }
  0x3b   :  { %479 = vmatmul.mubr.bf16.gmra.mxu0 %v934_v46 }
  0x3c   :  { %560 = vmatmul.mubr.bf16.gmra.mxu1 %v935_v47  ;;  %486 = vmatprep.mubr.bf16.mxu0 %v936_v48 }
  0x3d   :  { %567 = vmatprep.mubr.bf16.mxu1 %v938_v49 }
  0x43   :  { %487 = vmatmul.mubr.bf16.gmra.mxu0 %v940_v50 }
  0x44   :  { %568 = vmatmul.mubr.bf16.gmra.mxu1 %v941_v51  ;;  %494 = vmatprep.mubr.bf16.mxu0 %v942_v52 }
  0x45   :  { %575 = vmatprep.mubr.bf16.mxu1 %v944_v53 }
  0x4b   :  { %495 = vmatmul.mubr.bf16.gmra.mxu0 %v946_v54 }
  0x4c   :  { %576 = vmatmul.mubr.bf16.gmra.mxu1 %v947_v55 }
  0xe3   :  { %v792_v56 = vpop.f32.mrf.mxu0 }
  0xe4   :  { %v844_v57 = vpop.f32.mrf.mxu1 }
  0xe5   :  { %v793_v59 = vpop.f32.mrf.mxu0 }
  0xe6   :  { %v794_v60 = vadd.f32 %v793_v59, %v792_v56  ;;  %v845_v61 = vpop.f32.mrf.mxu1 }
  0xe7   :  { %v795_v62 = vpop.f32.mrf.mxu0  ;;  %v846_v2 = vadd.f32 %v845_v61, %v844_v57 }
  0xe8   :  { %v457_v63 = vadd.f32 %v794_v60, %v1139_v58  ;;  %v847_v0 = vpop.f32.mrf.mxu1 }
  0xe9   :  { %v796_v1 = vpop.f32.mrf.mxu0 }
  0xea   :  { %v797_v3 = vadd.f32 %v796_v1, %v795_v62  ;;  %v848_v4 = vpop.f32.mrf.mxu1  ;;  %v538_v6 = vadd.f32 %v846_v2, %v457_v63 }
  0xeb   :  { %v798_v5 = vpop.f32.mrf.mxu0  ;;  %v849_v8 = vadd.f32 %v848_v4, %v847_v0 }
  0xec   :  { %v460_v7 = vadd.f32 %v797_v3, %v1139_v58  ;;  %v850_v9 = vpop.f32.mrf.mxu1  ;;  %v584_v15 = vmax.f32 %v538_v6, 0.0 }
  0xed   :  { %v799_v10 = vpop.f32.mrf.mxu0 }
  0xee   :  { %v541_v11 = vadd.f32 %v849_v8, %v460_v7  ;;  %v800_v12 = vadd.f32 %v799_v10, %v798_v5  ;;  %v851_v13 = vpop.f32.mrf.mxu1 }
  0xef   :  { %v801_v14 = vpop.f32.mrf.mxu0  ;;  %v852_v21 = vadd.f32 %v851_v13, %v850_v9 }
  0xf0   :  { %v585_v16 = vmax.f32 %v541_v11, 0.0  ;;  %v465_v17 = vadd.f32 %v800_v12, %v1139_v58  ;;  %v853_v18 = vpop.f32.mrf.mxu1 }
  0xf1   :  { %v802_v19 = vpop.f32.mrf.mxu0 }
  0xf2   :  { %v744_v20 = vpack.c.bf16 %v585_v16, %v584_v15  ;;  %v803_v22 = vadd.f32 %v802_v19, %v801_v14  ;;  %v854_v23 = vpop.f32.mrf.mxu1  ;;  %v546_v25 = vadd.f32 %v852_v21, %v465_v17 }
  0xf3   :  { %v804_v24 = vpop.f32.mrf.mxu0  ;;  %v855_v27 = vadd.f32 %v854_v23, %v853_v18 }
  0xf4   :  { %745 = vst [vmem:[%s1174_s3] sm:$0xff] %v744_v20   ;;  %v468_v26 = vadd.f32 %v803_v22, %v1139_v58  ;;  %v856_v28 = vpop.f32.mrf.mxu1  ;;  %v586_v34 = vmax.f32 %v546_v25, 0.0 }
  0xf5   :  { %v805_v29 = vpop.f32.mrf.mxu0 }
  0xf6   :  { %v549_v30 = vadd.f32 %v855_v27, %v468_v26  ;;  %v806_v31 = vadd.f32 %v805_v29, %v804_v24  ;;  %v857_v32 = vpop.f32.mrf.mxu1 }
  0xf7   :  { %v807_v33 = vpop.f32.mrf.mxu0  ;;  %v858_v40 = vadd.f32 %v857_v32, %v856_v28 }
  0xf8   :  { %v587_v35 = vmax.f32 %v549_v30, 0.0  ;;  %v473_v36 = vadd.f32 %v806_v31, %v1139_v58  ;;  %v859_v37 = vpop.f32.mrf.mxu1 }
  0xf9   :  { %v808_v38 = vpop.f32.mrf.mxu0 }
  0xfa   :  { %v749_v39 = vpack.c.bf16 %v587_v35, %v586_v34  ;;  %v809_v41 = vadd.f32 %v808_v38, %v807_v33  ;;  %v860_v42 = vpop.f32.mrf.mxu1  ;;  %v554_v44 = vadd.f32 %v858_v40, %v473_v36 }
  0xfb   :  { %v810_v43 = vpop.f32.mrf.mxu0  ;;  %v861_v46 = vadd.f32 %v860_v42, %v859_v37 }
  0xfc   :  { %771 = vst [vmem:[%s1174_s3 + $0x8] sm:$0xff] %v749_v39   ;;  %v476_v45 = vadd.f32 %v809_v41, %v1139_v58  ;;  %v862_v47 = vpop.f32.mrf.mxu1  ;;  %v588_v53 = vmax.f32 %v554_v44, 0.0 }
  0xfd   :  { %v811_v48 = vpop.f32.mrf.mxu0 }
  0xfe   :  { %v557_v49 = vadd.f32 %v861_v46, %v476_v45  ;;  %v812_v50 = vadd.f32 %v811_v48, %v810_v43  ;;  %v863_v51 = vpop.f32.mrf.mxu1 }
  0xff   :  { %v813_v52 = vpop.f32.mrf.mxu0  ;;  %v864_v60 = vadd.f32 %v863_v51, %v862_v47 }
 0x100   :  { %v589_v54 = vmax.f32 %v557_v49, 0.0  ;;  %v481_v55 = vadd.f32 %v812_v50, %v1139_v58  ;;  %v865_v56 = vpop.f32.mrf.mxu1 }
 0x101   :  { %v814_v57 = vpop.f32.mrf.mxu0 }
 0x102   :  { %v754_v59 = vpack.c.bf16 %v589_v54, %v588_v53  ;;  %v815_v61 = vadd.f32 %v814_v57, %v813_v52  ;;  %v866_v62 = vpop.f32.mrf.mxu1  ;;  %v562_v0 = vadd.f32 %v864_v60, %v481_v55 }
 0x103   :  { %v816_v63 = vpop.f32.mrf.mxu0  ;;  %v867_v2 = vadd.f32 %v866_v62, %v865_v56 }
 0x104   :  { %772 = vst [vmem:[%s1174_s3 + $0x10] sm:$0xff] %v754_v59   ;;  %v484_v1 = vadd.f32 %v815_v61, %v1139_v58  ;;  %v868_v3 = vpop.f32.mrf.mxu1  ;;  %v590_v9 = vmax.f32 %v562_v0, 0.0 }
 0x105   :  { %v817_v4 = vpop.f32.mrf.mxu0 }
 0x106   :  { %v565_v5 = vadd.f32 %v867_v2, %v484_v1  ;;  %v818_v6 = vadd.f32 %v817_v4, %v816_v63  ;;  %v869_v7 = vpop.f32.mrf.mxu1 }
 0x107   :  { %v819_v8 = vpop.f32.mrf.mxu0  ;;  %v870_v15 = vadd.f32 %v869_v7, %v868_v3 }
 0x108   :  { %v591_v10 = vmax.f32 %v565_v5, 0.0  ;;  %v489_v11 = vadd.f32 %v818_v6, %v1139_v58  ;;  %v871_v12 = vpop.f32.mrf.mxu1 }
 0x109   :  { %v820_v13 = vpop.f32.mrf.mxu0 }
 0x10a   :  { %v759_v14 = vpack.c.bf16 %v591_v10, %v590_v9  ;;  %v821_v16 = vadd.f32 %v820_v13, %v819_v8  ;;  %v872_v17 = vpop.f32.mrf.mxu1  ;;  %v570_v19 = vadd.f32 %v870_v15, %v489_v11 }
 0x10b   :  { %v822_v18 = vpop.f32.mrf.mxu0  ;;  %v873_v21 = vadd.f32 %v872_v17, %v871_v12 }
 0x10c   :  { %773 = vst [vmem:[%s1174_s3 + $0x18] sm:$0xff] %v759_v14   ;;  %v492_v20 = vadd.f32 %v821_v16, %v1139_v58  ;;  %v874_v22 = vpop.f32.mrf.mxu1  ;;  %v592_v28 = vmax.f32 %v570_v19, 0.0 }
 0x10d   :  { %v823_v23 = vpop.f32.mrf.mxu0 }
 0x10e   :  { %v573_v24 = vadd.f32 %v873_v21, %v492_v20  ;;  %v824_v25 = vadd.f32 %v823_v23, %v822_v18  ;;  %v875_v26 = vpop.f32.mrf.mxu1 }
 0x10f   :  { %v825_v27 = vpop.f32.mrf.mxu0  ;;  %v876_v34 = vadd.f32 %v875_v26, %v874_v22 }
 0x110   :  { %v593_v29 = vmax.f32 %v573_v24, 0.0  ;;  %v497_v30 = vadd.f32 %v824_v25, %v1139_v58  ;;  %v877_v31 = vpop.f32.mrf.mxu1 }
 0x111   :  { %v826_v32 = vpop.f32.mrf.mxu0 }
 0x112   :  { %v764_v33 = vpack.c.bf16 %v593_v29, %v592_v28  ;;  %v827_v35 = vadd.f32 %v826_v32, %v825_v27  ;;  %v878_v36 = vpop.f32.mrf.mxu1  ;;  %v578_v37 = vadd.f32 %v876_v34, %v497_v30 }
 0x113   :  { %v879_v39 = vadd.f32 %v878_v36, %v877_v31 }
 0x114   :  { %774 = vst [vmem:[%s1174_s3 + $0x20] sm:$0xff] %v764_v33   ;;  %v500_v38 = vadd.f32 %v827_v35, %v1139_v58  ;;  %v594_v41 = vmax.f32 %v578_v37, 0.0 }
 0x116   :  { %v581_v40 = vadd.f32 %v879_v39, %v500_v38 }
 0x118   :  { %v595_v42 = vmax.f32 %v581_v40, 0.0 }
 0x11a   :  { %v769_v43 = vpack.c.bf16 %v595_v42, %v594_v41 }
 0x11c   :  { %775 = vst [vmem:[%s1174_s3 + $0x28] sm:$0xff] %v769_v43  }

// kernel: ae_forward.14
= control target key start
LH: loop header
LB: loop body
LE: loop exit
PB: predicated region body
PF: predicated region fallthrough
CT: control target
= control target key end

     0   :  { %s917_s1 = inlined_call_operand.vmem [shape: bf16[512,256], index: 1, kind: input, shape index: {}]   ;;  %s918_s0 = inlined_call_operand.vmem [shape: bf16[8,512], index: 0, kind: input, shape index: {}]   ;;  %s919_s2 = inlined_call_operand.vmem [shape: f32[1,256], index: 2, kind: input, shape index: {}]   ;;  %s920_s3 = inlined_call_operand.vmem [shape: bf16[8,256], index: 3, kind: output, shape index: {}]  }
   0x1   :  { %v593_v0 = vld [vmem:[%s917_s1 + $0x74] ss:$8 sps:$4 sm:$0xff]   ;;  %v597_v2 = vld [vmem:[%s917_s1 + $0x70] ss:$8 sps:$4 sm:$0xff]   ;;  %v599_v4 = vld [vmem:[%s917_s1 + $0x64] ss:$8 sps:$4 sm:$0xff]  }
   0x2   :  { %v595_v1 = vld [vmem:[%s917_s1 + $0x174] ss:$8 sps:$4 sm:$0xff]   ;;  %426 = vmatprep.subr.bf16.mxu0 %v593_v0  ;;  %v598_v3 = vld [vmem:[%s917_s1 + $0x170] ss:$8 sps:$4 sm:$0xff]   ;;  %v601_v5 = vld [vmem:[%s917_s1 + $0x164] ss:$8 sps:$4 sm:$0xff]  }
   0x3   :  { %467 = vmatprep.subr.bf16.mxu1 %v595_v1  ;;  %427 = vmatpush1.bf16.msra.mxu0 %v597_v2  ;;  %v603_v6 = vld [vmem:[%s917_s1 + $0x60] ss:$8 sps:$4 sm:$0xff]   ;;  %v605_v8 = vld [vmem:[%s917_s1 + $0x54] ss:$8 sps:$4 sm:$0xff]   ;;  %v609_v10 = vld [vmem:[%s917_s1 + $0x50] ss:$8 sps:$4 sm:$0xff]  }
   0x4   :  { %468 = vmatpush1.bf16.msra.mxu1 %v598_v3  ;;  %428 = vmatprep.subr.bf16.mxu0 %v599_v4  ;;  %v604_v7 = vld [vmem:[%s917_s1 + $0x160] ss:$8 sps:$4 sm:$0xff]   ;;  %v607_v9 = vld [vmem:[%s917_s1 + $0x154] ss:$8 sps:$4 sm:$0xff]   ;;  %v610_v11 = vld [vmem:[%s917_s1 + $0x150] ss:$8 sps:$4 sm:$0xff]  }
   0x5   :  { %469 = vmatprep.subr.bf16.mxu1 %v601_v5  ;;  %v611_v12 = vld [vmem:[%s917_s1 + $0x44] ss:$8 sps:$4 sm:$0xff]   ;;  %v615_v14 = vld [vmem:[%s917_s1 + $0x40] ss:$8 sps:$4 sm:$0xff]   ;;  %v617_v16 = vld [vmem:[%s917_s1 + $0x34] ss:$8 sps:$4 sm:$0xff]  }
   0x6   :  { %v613_v13 = vld [vmem:[%s917_s1 + $0x144] ss:$8 sps:$4 sm:$0xff]   ;;  %v616_v15 = vld [vmem:[%s917_s1 + $0x140] ss:$8 sps:$4 sm:$0xff]   ;;  %v619_v17 = vld [vmem:[%s917_s1 + $0x134] ss:$8 sps:$4 sm:$0xff]  }
   0x7   :  { %429 = vmatpush1.bf16.msra.mxu0 %v603_v6  ;;  %v621_v18 = vld [vmem:[%s917_s1 + $0x30] ss:$8 sps:$4 sm:$0xff]   ;;  %v623_v20 = vld [vmem:[%s917_s1 + $0x24] ss:$8 sps:$4 sm:$0xff]   ;;  %v627_v22 = vld [vmem:[%s917_s1 + $0x20] ss:$8 sps:$4 sm:$0xff]   ;;  %v82_v6 = vlaneseq }
   0x8   :  { %470 = vmatpush1.bf16.msra.mxu1 %v604_v7  ;;  %430 = vmatprep.subr.bf16.mxu0 %v605_v8  ;;  %v622_v19 = vld [vmem:[%s917_s1 + $0x130] ss:$8 sps:$4 sm:$0xff]   ;;  %v625_v21 = vld [vmem:[%s917_s1 + $0x124] ss:$8 sps:$4 sm:$0xff]   ;;  %v628_v23 = vld [vmem:[%s917_s1 + $0x120] ss:$8 sps:$4 sm:$0xff]  }
   0x9   :  { %471 = vmatprep.subr.bf16.mxu1 %v607_v9  ;;  %v629_v24 = vld [vmem:[%s917_s1 + $0x14] ss:$8 sps:$4 sm:$0xff]   ;;  %v633_v26 = vld [vmem:[%s917_s1 + $0x10] ss:$8 sps:$4 sm:$0xff]   ;;  %v635_v28 = vld [vmem:[%s917_s1 + $0x4] ss:$8 sps:$4 sm:$0xff]  }
   0xa   :  { %v631_v25 = vld [vmem:[%s917_s1 + $0x114] ss:$8 sps:$4 sm:$0xff]   ;;  %v634_v27 = vld [vmem:[%s917_s1 + $0x110] ss:$8 sps:$4 sm:$0xff]   ;;  %v637_v29 = vld [vmem:[%s917_s1 + $0x104] ss:$8 sps:$4 sm:$0xff]  }
   0xb   :  { %431 = vmatpush1.bf16.msra.mxu0 %v609_v10  ;;  %v639_v30 = vld [vmem:[%s917_s1] ss:$8 sps:$4 sm:$0xff]   ;;  %v641_v32 = vld [vmem:[%s917_s1 + $0xf4] ss:$8 sps:$4 sm:$0xff]   ;;  %v645_v34 = vld [vmem:[%s917_s1 + $0xf0] ss:$8 sps:$4 sm:$0xff]  }
   0xc   :  { %472 = vmatpush1.bf16.msra.mxu1 %v610_v11  ;;  %432 = vmatprep.subr.bf16.mxu0 %v611_v12  ;;  %v640_v31 = vld [vmem:[%s917_s1 + $0x100] ss:$8 sps:$4 sm:$0xff]   ;;  %v643_v33 = vld [vmem:[%s917_s1 + $0x1f4] ss:$8 sps:$4 sm:$0xff]   ;;  %v646_v35 = vld [vmem:[%s917_s1 + $0x1f0] ss:$8 sps:$4 sm:$0xff]  }
   0xd   :  { %473 = vmatprep.subr.bf16.mxu1 %v613_v13  ;;  %v647_v36 = vld [vmem:[%s917_s1 + $0xe4] ss:$8 sps:$4 sm:$0xff]   ;;  %v651_v38 = vld [vmem:[%s917_s1 + $0xe0] ss:$8 sps:$4 sm:$0xff]   ;;  %v653_v40 = vld [vmem:[%s917_s1 + $0xd4] ss:$8 sps:$4 sm:$0xff]  }
   0xe   :  { %v649_v37 = vld [vmem:[%s917_s1 + $0x1e4] ss:$8 sps:$4 sm:$0xff]   ;;  %v652_v39 = vld [vmem:[%s917_s1 + $0x1e0] ss:$8 sps:$4 sm:$0xff]   ;;  %v655_v41 = vld [vmem:[%s917_s1 + $0x1d4] ss:$8 sps:$4 sm:$0xff]  }
   0xf   :  { %433 = vmatpush1.bf16.msra.mxu0 %v615_v14  ;;  %v657_v42 = vld [vmem:[%s917_s1 + $0xd0] ss:$8 sps:$4 sm:$0xff]   ;;  %v659_v44 = vld [vmem:[%s917_s1 + $0xc4] ss:$8 sps:$4 sm:$0xff]   ;;  %v663_v49 = vld [vmem:[%s917_s1 + $0xc0] ss:$8 sps:$4 sm:$0xff]  }
  0x10   :  { %474 = vmatpush1.bf16.msra.mxu1 %v616_v15  ;;  %434 = vmatprep.subr.bf16.mxu0 %v617_v16  ;;  %v658_v43 = vld [vmem:[%s917_s1 + $0x1d0] ss:$8 sps:$4 sm:$0xff]   ;;  %v661_v45 = vld [vmem:[%s917_s1 + $0x1c4] ss:$8 sps:$4 sm:$0xff]   ;;  %v664_v50 = vld [vmem:[%s917_s1 + $0x1c0] ss:$8 sps:$4 sm:$0xff]  }
  0x11   :  { %475 = vmatprep.subr.bf16.mxu1 %v619_v17  ;;  %v14_v46 = vld [vmem:[%s918_s0] sm:$0xff]  ;;  %v15_v48 = vld [vmem:[%s918_s0 + $0x8] sm:$0xff]  ;;  %v665_v52 = vld [vmem:[%s917_s1 + $0xb4] ss:$8 sps:$4 sm:$0xff]   ;;  %v83_v7 = vshrl.u32 %v82_v6, 7 }
  0x12   :  { %v524_v47 = vcombine.high %v14_v46, %v14_v46  ;;  %v526_v51 = vcombine.high %v15_v48, %v15_v48  ;;  %v667_v53 = vld [vmem:[%s917_s1 + $0x1b4] ss:$8 sps:$4 sm:$0xff]   ;;  %v669_v54 = vld [vmem:[%s917_s1 + $0xb0] ss:$8 sps:$4 sm:$0xff]   ;;  %v671_v56 = vld [vmem:[%s917_s1 + $0xa4] ss:$8 sps:$4 sm:$0xff]   ;;  %v523_v4 = vcombine.low %v14_v46, %v14_v46  ;;  %v525_v5 = vcombine.low %v15_v48, %v15_v48 }
  0x13   :  { %435 = vmatpush1.bf16.msra.mxu0 %v621_v18  ;;  %v670_v55 = vld [vmem:[%s917_s1 + $0x1b0] ss:$8 sps:$4 sm:$0xff]   ;;  %v673_v57 = vld [vmem:[%s917_s1 + $0x1a4] ss:$8 sps:$4 sm:$0xff]   ;;  %v675_v58 = vld [vmem:[%s917_s1 + $0xa0] ss:$8 sps:$4 sm:$0xff]  }
  0x14   :  { %476 = vmatpush1.bf16.msra.mxu1 %v622_v19  ;;  %436 = vmatprep.subr.bf16.mxu0 %v623_v20  ;;  %v676_v59 = vld [vmem:[%s917_s1 + $0x1a0] ss:$8 sps:$4 sm:$0xff]   ;;  %v677_v60 = vld [vmem:[%s917_s1 + $0x94] ss:$8 sps:$4 sm:$0xff]   ;;  %v681_v62 = vld [vmem:[%s917_s1 + $0x90] ss:$8 sps:$4 sm:$0xff]  }
  0x15   :  { %477 = vmatprep.subr.bf16.mxu1 %v625_v21  ;;  %458 = vmatprep.mubr.bf16.mxu0 %v524_v47  ;;  %v679_v61 = vld [vmem:[%s917_s1 + $0x194] ss:$8 sps:$4 sm:$0xff]   ;;  %v682_v63 = vld [vmem:[%s917_s1 + $0x190] ss:$8 sps:$4 sm:$0xff]   ;;  %v683_v0 = vld [vmem:[%s917_s1 + $0x84] ss:$8 sps:$4 sm:$0xff]  }
  0x16   :  { %499 = vmatprep.mubr.bf16.mxu1 %v526_v51  ;;  %v685_v1 = vld [vmem:[%s917_s1 + $0x184] ss:$8 sps:$4 sm:$0xff]   ;;  %v687_v2 = vld [vmem:[%s917_s1 + $0x80] ss:$8 sps:$4 sm:$0xff]   ;;  %v84_v8 = vsub.s32 0, %v83_v7  ;;  %v88_v10 = vsub.s32 1, %v83_v7 }
  0x17   :  { %437 = vmatpush1.bf16.msra.mxu0 %v627_v22  ;;  %v688_v3 = vld [vmem:[%s917_s1 + $0x180] ss:$8 sps:$4 sm:$0xff]  }
  0x18   :  { %478 = vmatpush1.bf16.msra.mxu1 %v628_v23  ;;  %438 = vmatprep.subr.bf16.mxu0 %v629_v24  ;;  %v80_v9 = vld [vmem:[%s919_s2] sm:$0x3] }
  0x19   :  { %479 = vmatprep.subr.bf16.mxu1 %v631_v25  ;;  %v85_v11 = vrot.slane %v80_v9, %v84_v8  ;;  %v89_v12 = vrot.slane %v80_v9, %v88_v10 }
  0x1b   :  { %439 = vmatpush1.bf16.msra.mxu0 %v633_v26 }
  0x1c   :  { %480 = vmatpush1.bf16.msra.mxu1 %v634_v27  ;;  %440 = vmatprep.subr.bf16.mxu0 %v635_v28 }
  0x1d   :  { %481 = vmatprep.subr.bf16.mxu1 %v637_v29 }
  0x1f   :  { %441 = vmatpush1.bf16.msra.mxu0 %v639_v30 }
  0x20   :  { %482 = vmatpush1.bf16.msra.mxu1 %v640_v31  ;;  %442 = vmatprep.subr.bf16.mxu0 %v641_v32 }
  0x21   :  { %483 = vmatprep.subr.bf16.mxu1 %v643_v33 }
  0x23   :  { %443 = vmatpush2.bf16.msra.mxu0 %v645_v34 }
  0x24   :  { %484 = vmatpush2.bf16.msra.mxu1 %v646_v35  ;;  %444 = vmatprep.subr.bf16.mxu0 %v647_v36 }
  0x25   :  { %485 = vmatprep.subr.bf16.mxu1 %v649_v37 }
  0x27   :  { %445 = vmatpush2.bf16.msra.mxu0 %v651_v38 }
  0x28   :  { %486 = vmatpush2.bf16.msra.mxu1 %v652_v39  ;;  %446 = vmatprep.subr.bf16.mxu0 %v653_v40 }
  0x29   :  { %487 = vmatprep.subr.bf16.mxu1 %v655_v41 }
  0x2b   :  { %447 = vmatpush2.bf16.msra.mxu0 %v657_v42 }
  0x2c   :  { %488 = vmatpush2.bf16.msra.mxu1 %v658_v43  ;;  %448 = vmatprep.subr.bf16.mxu0 %v659_v44 }
  0x2d   :  { %489 = vmatprep.subr.bf16.mxu1 %v661_v45 }
  0x2f   :  { %449 = vmatpush2.bf16.msra.mxu0 %v663_v49 }
  0x30   :  { %490 = vmatpush2.bf16.msra.mxu1 %v664_v50  ;;  %450 = vmatprep.subr.bf16.mxu0 %v665_v52 }
  0x31   :  { %491 = vmatprep.subr.bf16.mxu1 %v667_v53 }
  0x33   :  { %451 = vmatpush2.bf16.msra.mxu0 %v669_v54 }
  0x34   :  { %492 = vmatpush2.bf16.msra.mxu1 %v670_v55  ;;  %452 = vmatprep.subr.bf16.mxu0 %v671_v56 }
  0x35   :  { %493 = vmatprep.subr.bf16.mxu1 %v673_v57 }
  0x37   :  { %453 = vmatpush2.bf16.msra.mxu0 %v675_v58 }
  0x38   :  { %494 = vmatpush2.bf16.msra.mxu1 %v676_v59  ;;  %454 = vmatprep.subr.bf16.mxu0 %v677_v60 }
  0x39   :  { %495 = vmatprep.subr.bf16.mxu1 %v679_v61 }
  0x3b   :  { %455 = vmatpush2.bf16.msra.mxu0 %v681_v62 }
  0x3c   :  { %496 = vmatpush2.bf16.msra.mxu1 %v682_v63  ;;  %456 = vmatprep.subr.bf16.mxu0 %v683_v0 }
  0x3d   :  { %497 = vmatprep.subr.bf16.mxu1 %v685_v1 }
  0x3f   :  { %457 = vmatpush2.bf16.msra.mxu0 %v687_v2 }
  0x40   :  { %498 = vmatpush2.bf16.msra.mxu1 %v688_v3 }
  0x42   :  { %459 = vmatmul.mubr.bf16.vlgmr.msra.gmra.mxu0 %v523_v4 }
  0x43   :  { %500 = vmatmul.mubr.bf16.vlgmr.msra.gmra.mxu1 %v525_v5 }
 0x102   :  { %v460_v13 = vpop.f32.mrf.mxu0 }
 0x103   :  { %v501_v14 = vpop.f32.mrf.mxu1  ;;  %v461_v15 = vadd.f32 %v460_v13, %v85_v11 }
 0x104   :  { %v462_v16 = vpop.f32.mrf.mxu0 }
 0x105   :  { %v503_v17 = vpop.f32.mrf.mxu1  ;;  %v502_v18 = vadd.f32 %v501_v14, %v461_v15  ;;  %v463_v19 = vadd.f32 %v462_v16, %v89_v12 }
 0x106   :  { %v464_v20 = vpop.f32.mrf.mxu0 }
 0x107   :  { %v505_v21 = vpop.f32.mrf.mxu1  ;;  %v504_v22 = vadd.f32 %v503_v17, %v463_v19  ;;  %v508_v25 = vmax.f32 %v502_v18, 0.0 }
 0x108   :  { %v465_v23 = vpop.f32.mrf.mxu0 }
 0x109   :  { %v506_v24 = vpop.f32.mrf.mxu1  ;;  %v509_v26 = vmax.f32 %v504_v22, 0.0 }
 0x10b   :  { %v592_v27 = vpack.c.bf16 %v509_v26, %v508_v25 }
 0x10d   :  { %518 = vst [vmem:[%s920_s3] sm:$0xff] %v592_v27 }

// kernel: ae_forward.15
= control target key start
LH: loop header
LB: loop body
LE: loop exit
PB: predicated region body
PF: predicated region fallthrough
CT: control target
= control target key end

     0   :  { %s339_s1 = inlined_call_operand.vmem [shape: bf16[256,128], index: 1, kind: input, shape index: {}]   ;;  %s340_s0 = inlined_call_operand.vmem [shape: bf16[8,256], index: 0, kind: input, shape index: {}]   ;;  %s341_s2 = inlined_call_operand.vmem [shape: f32[1,128], index: 2, kind: input, shape index: {}]   ;;  %s342_s3 = inlined_call_operand.vmem [shape: f32[8,128], index: 3, kind: output, shape index: {}]  }
   0x1   :  { %v244_v0 = vld [vmem:[%s339_s1 + $0x78] sm:$0xff]   ;;  %v246_v2 = vld [vmem:[%s339_s1 + $0x70] sm:$0xff]   ;;  %v248_v4 = vld [vmem:[%s339_s1 + $0x68] sm:$0xff]  }
   0x2   :  { %v245_v1 = vld [vmem:[%s339_s1 + $0x38] sm:$0xff]   ;;  %222 = vmatprep.subr.bf16.mxu0 %v244_v0  ;;  %v247_v3 = vld [vmem:[%s339_s1 + $0x30] sm:$0xff]   ;;  %v249_v5 = vld [vmem:[%s339_s1 + $0x28] sm:$0xff]  }
   0x3   :  { %223 = vmatpush3.bf16.msra.mxu0 %v245_v1  ;;  %v250_v6 = vld [vmem:[%s339_s1 + $0x60] sm:$0xff]   ;;  %v252_v8 = vld [vmem:[%s339_s1 + $0x58] sm:$0xff]   ;;  %v254_v10 = vld [vmem:[%s339_s1 + $0x50] sm:$0xff]  }
   0x4   :  { %224 = vmatprep.subr.bf16.mxu0 %v246_v2  ;;  %v251_v7 = vld [vmem:[%s339_s1 + $0x20] sm:$0xff]   ;;  %v253_v9 = vld [vmem:[%s339_s1 + $0x18] sm:$0xff]   ;;  %v255_v13 = vld [vmem:[%s339_s1 + $0x10] sm:$0xff]  }
   0x5   :  { %v15_v11 = vld [vmem:[%s340_s0] sm:$0xff]  ;;  %v256_v14 = vld [vmem:[%s339_s1 + $0x48] sm:$0xff]  }
   0x6   :  { %v205_v12 = vcombine.high %v15_v11, %v15_v11  ;;  %v257_v15 = vld [vmem:[%s339_s1 + $0x8] sm:$0xff]   ;;  %v258_v16 = vld [vmem:[%s339_s1 + $0x40] sm:$0xff]   ;;  %v204_v18 = vcombine.low %v15_v11, %v15_v11 }
   0x7   :  { %225 = vmatpush3.bf16.msra.mxu0 %v247_v3  ;;  %v259_v17 = vld [vmem:[%s339_s1] sm:$0xff]  }
   0x8   :  { %226 = vmatprep.subr.bf16.mxu0 %v248_v4  ;;  %190 = vmatprep.mubr.bf16.mxu0 %v205_v12  ;;  %v203_v20 = vld [vmem:[%s341_s2] ss:$0 sm:$0xff] }
   0xb   :  { %227 = vmatpush3.bf16.msra.mxu0 %v249_v5 }
   0xc   :  { %228 = vmatprep.subr.bf16.mxu0 %v250_v6 }
   0xf   :  { %229 = vmatpush3.bf16.msra.mxu0 %v251_v7 }
  0x10   :  { %230 = vmatprep.subr.bf16.mxu0 %v252_v8 }
  0x13   :  { %231 = vmatpush3.bf16.msra.mxu0 %v253_v9 }
  0x14   :  { %232 = vmatprep.subr.bf16.mxu0 %v254_v10 }
  0x17   :  { %233 = vmatpush3.bf16.msra.mxu0 %v255_v13 }
  0x18   :  { %234 = vmatprep.subr.bf16.mxu0 %v256_v14 }
  0x1b   :  { %235 = vmatpush3.bf16.msra.mxu0 %v257_v15 }
  0x1c   :  { %236 = vmatprep.subr.bf16.mxu0 %v258_v16 }
  0x1f   :  { %237 = vmatpush3.bf16.msra.mxu0 %v259_v17 }
  0x22   :  { %191 = vmatmul.mubr.bf16.vlgmr.msra.gmra.mxu0 %v204_v18 }
  0xe2   :  { %v238_v19 = vpop.f32.mrf.mxu0 }
  0xe4   :  { %v239_v21 = vpop.f32.mrf.mxu0 }
  0xe5   :  { %v240_v22 = vadd.f32 %v239_v21, %v238_v19 }
  0xe6   :  { %v241_v23 = vpop.f32.mrf.mxu0 }
  0xe7   :  { %v193_v24 = vadd.f32 %v240_v22, %v203_v20 }
  0xe8   :  { %v242_v25 = vpop.f32.mrf.mxu0 }
  0xe9   :  { %198 = vst [vmem:[%s342_s3] sm:$0xff] %v193_v24 }

</bundles_post_ra>
